<compile_context>
chip_gen: v7x
topology: tpu7x:2x2x1
jax: 0.10.0
libtpu: 0.0.40
codegen_flags: <defaults>
</compile_context>

<pallas_src>
from functools import partial

import jax
import jax.numpy as jnp
from jax.experimental import pallas as pl
from jax.experimental.pallas import tpu as pltpu


def _make_kernel(S, B, H, I):
    """Build the kernel closed over static (seq_len, padded_batch, hidden, in)."""

    def kernel(x_ref,                       # (S*B, I) f32, time-major, flattened
               w1_ref, b1_ref,              # (I, H), (1, H)          linear_1
               wih0_ref, b0_ref,            # (H, 4H) bf16, (1, 4H)   layer-0 input proj (g-gate x2)
               whh0_ref,                    # (H, 4H) bf16            layer-0 recurrent   (g-gate x2)
               wih1_ref, whh1_ref,          # (H, 4H) bf16 each       layer-1 ih / hh     (g-gate x2)
               bL1_ref,                     # (1, 4H)                 layer-1 bias        (g-gate x2)
               w2t_ref, b2_ref,             # (1, 2H), (1, 1)         linear_2 (transposed)
               out_ref,                     # (B, 1) f32
               g0_scr):                     # VMEM scratch (S*B, 4H) f32
        # ---- linear_1 + ReLU: K=1 contraction -> pure VPU broadcast mul-add.
        x2d = x_ref[...]                                                  # (S*B, I)
        if I == 1:
            z = x2d * w1_ref[...] + b1_ref[...]                           # (S*B, H)
        else:
            z = jnp.dot(x2d, w1_ref[...],
                        preferred_element_type=jnp.float32) + b1_ref[...]
        z = jnp.maximum(z, 0.0)

        # ---- layer-0 input projection for all timesteps at once (bf16 MXU,
        #      f32 accumulation), combined bias folded in; parked in VMEM
        #      scratch so the unrolled recurrence reads one vld per step.
        g0_scr[...] = (jnp.dot(z.astype(jnp.bfloat16), wih0_ref[...],
                               preferred_element_type=jnp.float32)
                       + b0_ref[...])                                     # (S*B, 4H)

        whh0 = whh0_ref[...]                                              # (H, 4H) bf16
        wih1 = wih1_ref[...]                                              # (H, 4H) bf16
        whh1 = whh1_ref[...]                                              # (H, 4H) bf16
        bias1 = jnp.broadcast_to(bL1_ref[...], (B, 4 * H))                # hoisted broadcast

        def gate_act(g):
            # One full-width (B, 4H) sigmoid on the EUP; tanh of the g-gate is
            # recovered via tanh(x) = 2*sigmoid(2x) - 1 (weights pre-scaled x2).
            sig = jax.nn.sigmoid(g)
            i_g = sig[:, 0 * H:1 * H]
            f_g = sig[:, 1 * H:2 * H]
            g_g = 2.0 * sig[:, 2 * H:3 * H] - 1.0
            o_g = sig[:, 3 * H:4 * H]
            return i_g, f_g, g_g, o_g

        zeroH = jnp.zeros((B, H), jnp.float32)
        zero4 = jnp.zeros((B, 4 * H), jnp.float32)
        h1, c0, c1 = zeroH, zeroH, zeroH
        r0 = zero4          # h0_{-1} @ Whh0 == 0
        r1 = zero4          # h1_{-1} @ Whh1 == 0
        h0 = zeroH

        # ---- recurrence, fully unrolled (S is small & static; g0 slices come
        #      from VMEM scratch so live ranges stay bounded).
        for t in range(S):
            # layer 0: precomputed input projection + recurrent term from the
            # matmul issued at the end of the previous step.
            g0 = g0_scr[pl.ds(t * B, B), :] + r0
            i0, f0, gg0, o0 = gate_act(g0)
            c0 = f0 * c0 + i0 * gg0
            h0 = o0 * jnp.tanh(c0)
            h0b = h0.astype(jnp.bfloat16)
            if t + 1 < S:
                # issue next step's layer-0 recurrent matmul immediately.
                r0 = jnp.dot(h0b, whh0, preferred_element_type=jnp.float32)

            # layer 1: un-fused ih/hh matmuls (no concat on the critical path);
            # the hh term r1 was issued right after h1 in the previous step.
            g1 = jnp.dot(h0b, wih1, preferred_element_type=jnp.float32) + r1 + bias1
            i1, f1, gg1, o1 = gate_act(g1)
            c1 = f1 * c1 + i1 * gg1
            h1 = o1 * jnp.tanh(c1)
            if t + 1 < S:
                r1 = jnp.dot(h1.astype(jnp.bfloat16), whh1,
                             preferred_element_type=jnp.float32)

        # h_n.permute(1, 0, 2).reshape(B, -1) == concat([h_layer0, h_layer1], -1).
        # linear_2 with output_size == 1: VPU multiply + lane reduction instead
        # of an N=1 MXU matmul; the concat is folded into two row slices of w2.
        # TODO(synk): nn.Dropout is identity at inference time; no-op here.
        w2t = w2t_ref[...]                                                # (1, 2H)
        pred = jnp.sum(h0 * w2t[:, :H] + h1 * w2t[:, H:2 * H],
                       axis=-1, keepdims=True) + b2_ref[...]              # (B, 1)
        out_ref[...] = pred.astype(out_ref.dtype)

    return kernel


def prepare_params(params):
    """One-time, out-of-hot-path conversion to kernel-ready weights.

    - g-gate column block (2H:3H) of every LSTM weight/bias scaled by 2 so the
      kernel can use tanh(x) = 2*sigmoid(2x) - 1 with a single sigmoid.
    - recurrent / projection weights cast to bf16 (f32 accumulation in-kernel).
    - linear_2 weight pre-transposed for the VPU epilogue.
    """
    H = params["w1"].shape[1]

    def scale_g(w):
        return w.at[..., 2 * H:3 * H].multiply(2.0)

    return dict(
        w1=params["w1"],                                   # (I, H)  f32
        b1=params["b1"],                                   # (1, H)  f32
        wih0=scale_g(params["wih0"]).astype(jnp.bfloat16),  # (H, 4H) bf16
        b0=scale_g(params["blstm0"]),                       # (1, 4H) f32
        whh0=scale_g(params["whh0"]).astype(jnp.bfloat16),  # (H, 4H) bf16
        wih1=scale_g(params["wih1"]).astype(jnp.bfloat16),  # (H, 4H) bf16
        whh1=scale_g(params["whh1"]).astype(jnp.bfloat16),  # (H, 4H) bf16
        bL1=scale_g(params["blstm1"]),                      # (1, 4H) f32
        w2t=params["w2"].T,                                 # (1, 2H) f32 (output_size == 1)
        b2=params["b2"],                                    # (1, 1)  f32
    )


@jax.jit
def lstm_model_forward(x, prepped):
    """x: (batch, seq, input_size) float32 -> (batch,) float32."""
    B0, S, I = x.shape
    H = prepped["w1"].shape[1]
    O = prepped["w2t"].shape[0]
    assert O == 1, "kernel epilogue is specialized for output_size == 1"

    # Pad batch to a full sublane group (8) so every per-step tile is dense.
    # Under jit the transpose/pad/reshape fuse into a single XLA fusion.
    B = max(8, ((B0 + 7) // 8) * 8)
    x_tm = jnp.transpose(x, (1, 0, 2))                     # time-major (S, B0, I)
    if B != B0:
        x_tm = jnp.pad(x_tm, ((0, 0), (0, B - B0), (0, 0)))
    x2d = x_tm.reshape(S * B, I)                           # (S*B, I)

    vmem = pl.BlockSpec(memory_space=pltpu.MemorySpace.VMEM)
    kernel = _make_kernel(S, B, H, I)
    out = pl.pallas_call(
        kernel,
        out_shape=jax.ShapeDtypeStruct((B, 1), jnp.float32),
        in_specs=[vmem] * 11,
        out_specs=vmem,
        scratch_shapes=[pltpu.VMEM((S * B, 4 * H), jnp.float32)],
    )(x2d,
      prepped["w1"], prepped["b1"],
      prepped["wih0"], prepped["b0"], prepped["whh0"],
      prepped["wih1"], prepped["whh1"], prepped["bL1"],
      prepped["w2t"], prepped["b2"])

    # predictions[:, -1] with output_size == 1; drop padded batch rows.
    return out[:B0, -1]


def _reference_forward(x, params):
    """Pure-JAX f32 reference mirroring the PyTorch forward (for validation)."""
    B, S, _ = x.shape
    H = params["w1"].shape[1]
    z = jnp.maximum(jnp.einsum("bsi,ih->bsh", x, params["w1"]) + params["b1"], 0.0)

    def cell(h, c, x_t, wih, whh, b):
        g = x_t @ wih + h @ whh + b
        i = jax.nn.sigmoid(g[:, :H])
        f = jax.nn.sigmoid(g[:, H:2 * H])
        gg = jnp.tanh(g[:, 2 * H:3 * H])
        o = jax.nn.sigmoid(g[:, 3 * H:])
        c = f * c + i * gg
        h = o * jnp.tanh(c)
        return h, c

    h0 = c0 = h1 = c1 = jnp.zeros((B, H), jnp.float32)
    for t in range(S):
        h0, c0 = cell(h0, c0, z[:, t, :],
                      params["wih0"], params["whh0"], params["blstm0"])
        h1, c1 = cell(h1, c1, h0,
                      params["wih1"], params["whh1"], params["blstm1"])
    feat = jnp.concatenate([h0, h1], axis=-1)
    pred = feat @ params["w2"] + params["b2"]
    return pred[:, -1]


def init_params(key, input_size=1, hidden=32, num_layers=2, output_size=1):
    """Deterministic synthetic init mirroring the module's init_weights()."""
    H = hidden
    ks = jax.random.split(key, 8)
    # linear_1: PyTorch default uniform(+-1/sqrt(fan_in))
    lim1 = 1.0 / (input_size ** 0.5)
    w1 = jax.random.uniform(ks[0], (input_size, H), jnp.float32, -lim1, lim1)
    b1 = jax.random.uniform(ks[1], (1, H), jnp.float32, -lim1, lim1)
    # LSTM: weight_ih kaiming_normal (fan_in = H), weight_hh orthogonal, biases 0
    std_ih = (2.0 / H) ** 0.5
    ortho = jax.nn.initializers.orthogonal()
    wih0 = (std_ih * jax.random.normal(ks[2], (4 * H, H), jnp.float32)).T
    whh0 = ortho(ks[3], (4 * H, H), jnp.float32).T
    wih1 = (std_ih * jax.random.normal(ks[4], (4 * H, H), jnp.float32)).T
    whh1 = ortho(ks[5], (4 * H, H), jnp.float32).T
    blstm0 = jnp.zeros((1, 4 * H), jnp.float32)          # b_ih + b_hh, both zero
    blstm1 = jnp.zeros((1, 4 * H), jnp.float32)
    # linear_2: PyTorch default uniform(+-1/sqrt(num_layers*H))
    lim2 = 1.0 / ((num_layers * H) ** 0.5)
    w2 = jax.random.uniform(ks[6], (num_layers * H, output_size), jnp.float32, -lim2, lim2)
    b2 = jax.random.uniform(ks[7], (1, output_size), jnp.float32, -lim2, lim2)
    return dict(w1=w1, b1=b1,
                wih0=wih0, whh0=whh0, blstm0=blstm0,
                wih1=wih1, whh1=whh1, blstm1=blstm1,
                w2=w2, b2=b2)


if __name__ == "__main__":
    key = jax.random.PRNGKey(0)
    k_params, k_x = jax.random.split(key)
    params = init_params(k_params, input_size=1, hidden=32, num_layers=2, output_size=1)
    prepped = prepare_params(params)      # one-time weight prep (cached / reused)

    # batch=2, seq=20 (config window_size), input_size=1
    B, S, I = 2, 20, 1
    x = jax.random.normal(k_x, (B, S, I), jnp.float32)

    preds = jax.block_until_ready(lstm_model_forward(x, prepped))
    assert preds.shape == (B,), preds.shape
    assert preds.dtype == jnp.float32

    # Validate against the pure-JAX f32 reference (bf16 recurrent weights ->
    # loose tolerance).
    ref = jax.block_until_ready(_reference_forward(x, params))
    assert jnp.allclose(preds, ref, rtol=5e-2, atol=5e-2), (preds, ref)

    print("KERNEL_OK")
</pallas_src>

<mosaic_0001>
module attributes {stable_mosaic.version = 11 : i64} {
  func.func @kernel(%arg0: memref<160x1xf32, #tpu.memory_space<vmem>>, %arg1: memref<1x32xf32, #tpu.memory_space<vmem>>, %arg2: memref<1x32xf32, #tpu.memory_space<vmem>>, %arg3: memref<32x128xbf16, #tpu.memory_space<vmem>>, %arg4: memref<1x128xf32, #tpu.memory_space<vmem>>, %arg5: memref<32x128xbf16, #tpu.memory_space<vmem>>, %arg6: memref<32x128xbf16, #tpu.memory_space<vmem>>, %arg7: memref<32x128xbf16, #tpu.memory_space<vmem>>, %arg8: memref<1x128xf32, #tpu.memory_space<vmem>>, %arg9: memref<1x64xf32, #tpu.memory_space<vmem>>, %arg10: memref<1x1xf32, #tpu.memory_space<vmem>>, %arg11: memref<8x1xf32, #tpu.memory_space<vmem>>, %arg12: memref<160x128xf32, #tpu.memory_space<vmem>>) attributes {dimension_semantics = [], scalar_prefetch = 0 : i64, scratch_operands = 1 : i64, tpu.core_type = #tpu.core_type<tc>} {
    %c0 = arith.constant 0 : index
    %c0_0 = arith.constant 0 : index
    %0 = vector.load %arg0[%c0, %c0_0] : memref<160x1xf32, #tpu.memory_space<vmem>>, vector<160x1xf32>
    %c0_1 = arith.constant 0 : index
    %c0_2 = arith.constant 0 : index
    %1 = vector.load %arg1[%c0_1, %c0_2] : memref<1x32xf32, #tpu.memory_space<vmem>>, vector<1x32xf32>
    %2 = vector.broadcast %0 : vector<160x1xf32> to vector<160x32xf32>
    %3 = vector.broadcast %1 : vector<1x32xf32> to vector<160x32xf32>
    %4 = arith.mulf %2, %3 : vector<160x32xf32>
    %c0_3 = arith.constant 0 : index
    %c0_4 = arith.constant 0 : index
    %5 = vector.load %arg2[%c0_3, %c0_4] : memref<1x32xf32, #tpu.memory_space<vmem>>, vector<1x32xf32>
    %6 = vector.broadcast %5 : vector<1x32xf32> to vector<160x32xf32>
    %7 = arith.addf %4, %6 : vector<160x32xf32>
    %cst = arith.constant 0.000000e+00 : f32
    %8 = vector.broadcast %cst : f32 to vector<160x32xf32>
    %9 = arith.maximumf %7, %8 : vector<160x32xf32>
    %10 = arith.truncf %9 : vector<160x32xf32> to vector<160x32xbf16>
    %c0_5 = arith.constant 0 : index
    %c0_6 = arith.constant 0 : index
    %11 = vector.load %arg3[%c0_5, %c0_6] : memref<32x128xbf16, #tpu.memory_space<vmem>>, vector<32x128xbf16>
    %cst_7 = arith.constant dense<0.000000e+00> : vector<160x128xf32>
    %12 = tpu.matmul %10, %11, %cst_7 {dimension_numbers = #tpu.dot_dimension_numbers<[1], [0], [0], [1], [0, 0, 1, 1], [], []>} : vector<160x32xbf16>, vector<32x128xbf16>, vector<160x128xf32> -> vector<160x128xf32>
    %c0_8 = arith.constant 0 : index
    %c0_9 = arith.constant 0 : index
    %13 = vector.load %arg4[%c0_8, %c0_9] : memref<1x128xf32, #tpu.memory_space<vmem>>, vector<1x128xf32>
    %14 = vector.broadcast %13 : vector<1x128xf32> to vector<160x128xf32>
    %15 = arith.addf %12, %14 : vector<160x128xf32>
    %c0_10 = arith.constant 0 : index
    %c0_11 = arith.constant 0 : index
    %16 = vector.load %arg12[%c0_10, %c0_11] : memref<160x128xf32, #tpu.memory_space<vmem>>, vector<160x128xf32>
    tpu.vector_store %arg12[%c0_10, %c0_11], %15 {strides = array<i32>} : memref<160x128xf32, #tpu.memory_space<vmem>>, vector<160x128xf32>,
    %c0_12 = arith.constant 0 : index
    %c0_13 = arith.constant 0 : index
    %17 = vector.load %arg5[%c0_12, %c0_13] : memref<32x128xbf16, #tpu.memory_space<vmem>>, vector<32x128xbf16>
    %c0_14 = arith.constant 0 : index
    %c0_15 = arith.constant 0 : index
    %18 = vector.load %arg6[%c0_14, %c0_15] : memref<32x128xbf16, #tpu.memory_space<vmem>>, vector<32x128xbf16>
    %c0_16 = arith.constant 0 : index
    %c0_17 = arith.constant 0 : index
    %19 = vector.load %arg7[%c0_16, %c0_17] : memref<32x128xbf16, #tpu.memory_space<vmem>>, vector<32x128xbf16>
    %c0_18 = arith.constant 0 : index
    %c0_19 = arith.constant 0 : index
    %20 = vector.load %arg8[%c0_18, %c0_19] : memref<1x128xf32, #tpu.memory_space<vmem>>, vector<1x128xf32>
    %21 = vector.shape_cast %20 : vector<1x128xf32> to vector<1x128xf32>
    %22 = vector.broadcast %21 : vector<1x128xf32> to vector<8x128xf32>
    %cst_20 = arith.constant 0.000000e+00 : f32
    %23 = vector.broadcast %cst_20 : f32 to vector<8x32xf32>
    %cst_21 = arith.constant 0.000000e+00 : f32
    %24 = vector.broadcast %cst_21 : f32 to vector<8x128xf32>
    %c0_22 = arith.constant 0 : index
    %c0_23 = arith.constant 0 : index
    %25 = vector.load %arg12[%c0_22, %c0_23] : memref<160x128xf32, #tpu.memory_space<vmem>>, vector<8x128xf32>
    %26 = arith.addf %25, %24 : vector<8x128xf32>
    %27 = arith.negf %26 : vector<8x128xf32>
    %28 = math.exp %27 : vector<8x128xf32>
    %cst_24 = arith.constant 1.000000e+00 : f32
    %29 = vector.broadcast %cst_24 : f32 to vector<8x128xf32>
    %30 = arith.addf %29, %28 : vector<8x128xf32>
    %31 = arith.divf %29, %30 : vector<8x128xf32>
    %32 = vector.extract_strided_slice %31 {offsets = [0, 0], sizes = [8, 32], strides = [1, 1]} : vector<8x128xf32> to vector<8x32xf32>
    %33 = vector.extract_strided_slice %31 {offsets = [0, 32], sizes = [8, 32], strides = [1, 1]} : vector<8x128xf32> to vector<8x32xf32>
    %34 = vector.extract_strided_slice %31 {offsets = [0, 64], sizes = [8, 32], strides = [1, 1]} : vector<8x128xf32> to vector<8x32xf32>
    %cst_25 = arith.constant 2.000000e+00 : f32
    %35 = vector.broadcast %cst_25 : f32 to vector<8x32xf32>
    %36 = arith.mulf %35, %34 : vector<8x32xf32>
    %cst_26 = arith.constant 1.000000e+00 : f32
    %37 = vector.broadcast %cst_26 : f32 to vector<8x32xf32>
    %38 = arith.subf %36, %37 : vector<8x32xf32>
    %39 = vector.extract_strided_slice %31 {offsets = [0, 96], sizes = [8, 32], strides = [1, 1]} : vector<8x128xf32> to vector<8x32xf32>
    %40 = arith.mulf %33, %23 : vector<8x32xf32>
    %41 = arith.mulf %32, %38 : vector<8x32xf32>
    %42 = arith.addf %40, %41 : vector<8x32xf32>
    %43 = math.tanh %42 : vector<8x32xf32>
    %44 = arith.mulf %39, %43 : vector<8x32xf32>
    %45 = arith.truncf %44 : vector<8x32xf32> to vector<8x32xbf16>
    %cst_27 = arith.constant dense<0.000000e+00> : vector<8x128xf32>
    %46 = tpu.matmul %45, %17, %cst_27 {dimension_numbers = #tpu.dot_dimension_numbers<[1], [0], [0], [1], [0, 0, 1, 1], [], []>} : vector<8x32xbf16>, vector<32x128xbf16>, vector<8x128xf32> -> vector<8x128xf32>
    %cst_28 = arith.constant dense<0.000000e+00> : vector<8x128xf32>
    %47 = tpu.matmul %45, %18, %cst_28 {dimension_numbers = #tpu.dot_dimension_numbers<[1], [0], [0], [1], [0, 0, 1, 1], [], []>} : vector<8x32xbf16>, vector<32x128xbf16>, vector<8x128xf32> -> vector<8x128xf32>
    %48 = arith.addf %47, %24 : vector<8x128xf32>
    %49 = arith.addf %48, %22 : vector<8x128xf32>
    %50 = arith.negf %49 : vector<8x128xf32>
    %51 = math.exp %50 : vector<8x128xf32>
    %cst_29 = arith.constant 1.000000e+00 : f32
    %52 = vector.broadcast %cst_29 : f32 to vector<8x128xf32>
    %53 = arith.addf %52, %51 : vector<8x128xf32>
    %54 = arith.divf %52, %53 : vector<8x128xf32>
    %55 = vector.extract_strided_slice %54 {offsets = [0, 0], sizes = [8, 32], strides = [1, 1]} : vector<8x128xf32> to vector<8x32xf32>
    %56 = vector.extract_strided_slice %54 {offsets = [0, 32], sizes = [8, 32], strides = [1, 1]} : vector<8x128xf32> to vector<8x32xf32>
    %57 = vector.extract_strided_slice %54 {offsets = [0, 64], sizes = [8, 32], strides = [1, 1]} : vector<8x128xf32> to vector<8x32xf32>
    %cst_30 = arith.constant 2.000000e+00 : f32
    %58 = vector.broadcast %cst_30 : f32 to vector<8x32xf32>
    %59 = arith.mulf %58, %57 : vector<8x32xf32>
    %cst_31 = arith.constant 1.000000e+00 : f32
    %60 = vector.broadcast %cst_31 : f32 to vector<8x32xf32>
    %61 = arith.subf %59, %60 : vector<8x32xf32>
    %62 = vector.extract_strided_slice %54 {offsets = [0, 96], sizes = [8, 32], strides = [1, 1]} : vector<8x128xf32> to vector<8x32xf32>
    %63 = arith.mulf %56, %23 : vector<8x32xf32>
    %64 = arith.mulf %55, %61 : vector<8x32xf32>
    %65 = arith.addf %63, %64 : vector<8x32xf32>
    %66 = math.tanh %65 : vector<8x32xf32>
    %67 = arith.mulf %62, %66 : vector<8x32xf32>
    %68 = arith.truncf %67 : vector<8x32xf32> to vector<8x32xbf16>
    %cst_32 = arith.constant dense<0.000000e+00> : vector<8x128xf32>
    %69 = tpu.matmul %68, %19, %cst_32 {dimension_numbers = #tpu.dot_dimension_numbers<[1], [0], [0], [1], [0, 0, 1, 1], [], []>} : vector<8x32xbf16>, vector<32x128xbf16>, vector<8x128xf32> -> vector<8x128xf32>
    %c8 = arith.constant 8 : index
    %c0_33 = arith.constant 0 : index
    %70 = vector.load %arg12[%c8, %c0_33] : memref<160x128xf32, #tpu.memory_space<vmem>>, vector<8x128xf32>
    %71 = arith.addf %70, %46 : vector<8x128xf32>
    %72 = arith.negf %71 : vector<8x128xf32>
    %73 = math.exp %72 : vector<8x128xf32>
    %cst_34 = arith.constant 1.000000e+00 : f32
    %74 = vector.broadcast %cst_34 : f32 to vector<8x128xf32>
    %75 = arith.addf %74, %73 : vector<8x128xf32>
    %76 = arith.divf %74, %75 : vector<8x128xf32>
    %77 = vector.extract_strided_slice %76 {offsets = [0, 0], sizes = [8, 32], strides = [1, 1]} : vector<8x128xf32> to vector<8x32xf32>
    %78 = vector.extract_strided_slice %76 {offsets = [0, 32], sizes = [8, 32], strides = [1, 1]} : vector<8x128xf32> to vector<8x32xf32>
    %79 = vector.extract_strided_slice %76 {offsets = [0, 64], sizes = [8, 32], strides = [1, 1]} : vector<8x128xf32> to vector<8x32xf32>
    %cst_35 = arith.constant 2.000000e+00 : f32
    %80 = vector.broadcast %cst_35 : f32 to vector<8x32xf32>
    %81 = arith.mulf %80, %79 : vector<8x32xf32>
    %cst_36 = arith.constant 1.000000e+00 : f32
    %82 = vector.broadcast %cst_36 : f32 to vector<8x32xf32>
    %83 = arith.subf %81, %82 : vector<8x32xf32>
    %84 = vector.extract_strided_slice %76 {offsets = [0, 96], sizes = [8, 32], strides = [1, 1]} : vector<8x128xf32> to vector<8x32xf32>
    %85 = arith.mulf %78, %42 : vector<8x32xf32>
    %86 = arith.mulf %77, %83 : vector<8x32xf32>
    %87 = arith.addf %85, %86 : vector<8x32xf32>
    %88 = math.tanh %87 : vector<8x32xf32>
    %89 = arith.mulf %84, %88 : vector<8x32xf32>
    %90 = arith.truncf %89 : vector<8x32xf32> to vector<8x32xbf16>
    %cst_37 = arith.constant dense<0.000000e+00> : vector<8x128xf32>
    %91 = tpu.matmul %90, %17, %cst_37 {dimension_numbers = #tpu.dot_dimension_numbers<[1], [0], [0], [1], [0, 0, 1, 1], [], []>} : vector<8x32xbf16>, vector<32x128xbf16>, vector<8x128xf32> -> vector<8x128xf32>
    %cst_38 = arith.constant dense<0.000000e+00> : vector<8x128xf32>
    %92 = tpu.matmul %90, %18, %cst_38 {dimension_numbers = #tpu.dot_dimension_numbers<[1], [0], [0], [1], [0, 0, 1, 1], [], []>} : vector<8x32xbf16>, vector<32x128xbf16>, vector<8x128xf32> -> vector<8x128xf32>
    %93 = arith.addf %92, %69 : vector<8x128xf32>
    %94 = arith.addf %93, %22 : vector<8x128xf32>
    %95 = arith.negf %94 : vector<8x128xf32>
    %96 = math.exp %95 : vector<8x128xf32>
    %cst_39 = arith.constant 1.000000e+00 : f32
    %97 = vector.broadcast %cst_39 : f32 to vector<8x128xf32>
    %98 = arith.addf %97, %96 : vector<8x128xf32>
    %99 = arith.divf %97, %98 : vector<8x128xf32>
    %100 = vector.extract_strided_slice %99 {offsets = [0, 0], sizes = [8, 32], strides = [1, 1]} : vector<8x128xf32> to vector<8x32xf32>
    %101 = vector.extract_strided_slice %99 {offsets = [0, 32], sizes = [8, 32], strides = [1, 1]} : vector<8x128xf32> to vector<8x32xf32>
    %102 = vector.extract_strided_slice %99 {offsets = [0, 64], sizes = [8, 32], strides = [1, 1]} : vector<8x128xf32> to vector<8x32xf32>
    %cst_40 = arith.constant 2.000000e+00 : f32
    %103 = vector.broadcast %cst_40 : f32 to vector<8x32xf32>
    %104 = arith.mulf %103, %102 : vector<8x32xf32>
    %cst_41 = arith.constant 1.000000e+00 : f32
    %105 = vector.broadcast %cst_41 : f32 to vector<8x32xf32>
    %106 = arith.subf %104, %105 : vector<8x32xf32>
    %107 = vector.extract_strided_slice %99 {offsets = [0, 96], sizes = [8, 32], strides = [1, 1]} : vector<8x128xf32> to vector<8x32xf32>
    %108 = arith.mulf %101, %65 : vector<8x32xf32>
    %109 = arith.mulf %100, %106 : vector<8x32xf32>
    %110 = arith.addf %108, %109 : vector<8x32xf32>
    %111 = math.tanh %110 : vector<8x32xf32>
    %112 = arith.mulf %107, %111 : vector<8x32xf32>
    %113 = arith.truncf %112 : vector<8x32xf32> to vector<8x32xbf16>
    %cst_42 = arith.constant dense<0.000000e+00> : vector<8x128xf32>
    %114 = tpu.matmul %113, %19, %cst_42 {dimension_numbers = #tpu.dot_dimension_numbers<[1], [0], [0], [1], [0, 0, 1, 1], [], []>} : vector<8x32xbf16>, vector<32x128xbf16>, vector<8x128xf32> -> vector<8x128xf32>
    %c16 = arith.constant 16 : index
    %c0_43 = arith.constant 0 : index
    %115 = vector.load %arg12[%c16, %c0_43] : memref<160x128xf32, #tpu.memory_space<vmem>>, vector<8x128xf32>
    %116 = arith.addf %115, %91 : vector<8x128xf32>
    %117 = arith.negf %116 : vector<8x128xf32>
    %118 = math.exp %117 : vector<8x128xf32>
    %cst_44 = arith.constant 1.000000e+00 : f32
    %119 = vector.broadcast %cst_44 : f32 to vector<8x128xf32>
    %120 = arith.addf %119, %118 : vector<8x128xf32>
    %121 = arith.divf %119, %120 : vector<8x128xf32>
    %122 = vector.extract_strided_slice %121 {offsets = [0, 0], sizes = [8, 32], strides = [1, 1]} : vector<8x128xf32> to vector<8x32xf32>
    %123 = vector.extract_strided_slice %121 {offsets = [0, 32], sizes = [8, 32], strides = [1, 1]} : vector<8x128xf32> to vector<8x32xf32>
    %124 = vector.extract_strided_slice %121 {offsets = [0, 64], sizes = [8, 32], strides = [1, 1]} : vector<8x128xf32> to vector<8x32xf32>
    %cst_45 = arith.constant 2.000000e+00 : f32
    %125 = vector.broadcast %cst_45 : f32 to vector<8x32xf32>
    %126 = arith.mulf %125, %124 : vector<8x32xf32>
    %cst_46 = arith.constant 1.000000e+00 : f32
    %127 = vector.broadcast %cst_46 : f32 to vector<8x32xf32>
    %128 = arith.subf %126, %127 : vector<8x32xf32>
    %129 = vector.extract_strided_slice %121 {offsets = [0, 96], sizes = [8, 32], strides = [1, 1]} : vector<8x128xf32> to vector<8x32xf32>
    %130 = arith.mulf %123, %87 : vector<8x32xf32>
    %131 = arith.mulf %122, %128 : vector<8x32xf32>
    %132 = arith.addf %130, %131 : vector<8x32xf32>
    %133 = math.tanh %132 : vector<8x32xf32>
    %134 = arith.mulf %129, %133 : vector<8x32xf32>
    %135 = arith.truncf %134 : vector<8x32xf32> to vector<8x32xbf16>
    %cst_47 = arith.constant dense<0.000000e+00> : vector<8x128xf32>
    %136 = tpu.matmul %135, %17, %cst_47 {dimension_numbers = #tpu.dot_dimension_numbers<[1], [0], [0], [1], [0, 0, 1, 1], [], []>} : vector<8x32xbf16>, vector<32x128xbf16>, vector<8x128xf32> -> vector<8x128xf32>
    %cst_48 = arith.constant dense<0.000000e+00> : vector<8x128xf32>
    %137 = tpu.matmul %135, %18, %cst_48 {dimension_numbers = #tpu.dot_dimension_numbers<[1], [0], [0], [1], [0, 0, 1, 1], [], []>} : vector<8x32xbf16>, vector<32x128xbf16>, vector<8x128xf32> -> vector<8x128xf32>
    %138 = arith.addf %137, %114 : vector<8x128xf32>
    %139 = arith.addf %138, %22 : vector<8x128xf32>
    %140 = arith.negf %139 : vector<8x128xf32>
    %141 = math.exp %140 : vector<8x128xf32>
    %cst_49 = arith.constant 1.000000e+00 : f32
    %142 = vector.broadcast %cst_49 : f32 to vector<8x128xf32>
    %143 = arith.addf %142, %141 : vector<8x128xf32>
    %144 = arith.divf %142, %143 : vector<8x128xf32>
    %145 = vector.extract_strided_slice %144 {offsets = [0, 0], sizes = [8, 32], strides = [1, 1]} : vector<8x128xf32> to vector<8x32xf32>
    %146 = vector.extract_strided_slice %144 {offsets = [0, 32], sizes = [8, 32], strides = [1, 1]} : vector<8x128xf32> to vector<8x32xf32>
    %147 = vector.extract_strided_slice %144 {offsets = [0, 64], sizes = [8, 32], strides = [1, 1]} : vector<8x128xf32> to vector<8x32xf32>
    %cst_50 = arith.constant 2.000000e+00 : f32
    %148 = vector.broadcast %cst_50 : f32 to vector<8x32xf32>
    %149 = arith.mulf %148, %147 : vector<8x32xf32>
    %cst_51 = arith.constant 1.000000e+00 : f32
    %150 = vector.broadcast %cst_51 : f32 to vector<8x32xf32>
    %151 = arith.subf %149, %150 : vector<8x32xf32>
    %152 = vector.extract_strided_slice %144 {offsets = [0, 96], sizes = [8, 32], strides = [1, 1]} : vector<8x128xf32> to vector<8x32xf32>
    %153 = arith.mulf %146, %110 : vector<8x32xf32>
    %154 = arith.mulf %145, %151 : vector<8x32xf32>
    %155 = arith.addf %153, %154 : vector<8x32xf32>
    %156 = math.tanh %155 : vector<8x32xf32>
    %157 = arith.mulf %152, %156 : vector<8x32xf32>
    %158 = arith.truncf %157 : vector<8x32xf32> to vector<8x32xbf16>
    %cst_52 = arith.constant dense<0.000000e+00> : vector<8x128xf32>
    %159 = tpu.matmul %158, %19, %cst_52 {dimension_numbers = #tpu.dot_dimension_numbers<[1], [0], [0], [1], [0, 0, 1, 1], [], []>} : vector<8x32xbf16>, vector<32x128xbf16>, vector<8x128xf32> -> vector<8x128xf32>
    %c24 = arith.constant 24 : index
    %c0_53 = arith.constant 0 : index
    %160 = vector.load %arg12[%c24, %c0_53] : memref<160x128xf32, #tpu.memory_space<vmem>>, vector<8x128xf32>
    %161 = arith.addf %160, %136 : vector<8x128xf32>
    %162 = arith.negf %161 : vector<8x128xf32>
    %163 = math.exp %162 : vector<8x128xf32>
    %cst_54 = arith.constant 1.000000e+00 : f32
    %164 = vector.broadcast %cst_54 : f32 to vector<8x128xf32>
    %165 = arith.addf %164, %163 : vector<8x128xf32>
    %166 = arith.divf %164, %165 : vector<8x128xf32>
    %167 = vector.extract_strided_slice %166 {offsets = [0, 0], sizes = [8, 32], strides = [1, 1]} : vector<8x128xf32> to vector<8x32xf32>
    %168 = vector.extract_strided_slice %166 {offsets = [0, 32], sizes = [8, 32], strides = [1, 1]} : vector<8x128xf32> to vector<8x32xf32>
    %169 = vector.extract_strided_slice %166 {offsets = [0, 64], sizes = [8, 32], strides = [1, 1]} : vector<8x128xf32> to vector<8x32xf32>
    %cst_55 = arith.constant 2.000000e+00 : f32
    %170 = vector.broadcast %cst_55 : f32 to vector<8x32xf32>
    %171 = arith.mulf %170, %169 : vector<8x32xf32>
    %cst_56 = arith.constant 1.000000e+00 : f32
    %172 = vector.broadcast %cst_56 : f32 to vector<8x32xf32>
    %173 = arith.subf %171, %172 : vector<8x32xf32>
    %174 = vector.extract_strided_slice %166 {offsets = [0, 96], sizes = [8, 32], strides = [1, 1]} : vector<8x128xf32> to vector<8x32xf32>
    %175 = arith.mulf %168, %132 : vector<8x32xf32>
    %176 = arith.mulf %167, %173 : vector<8x32xf32>
    %177 = arith.addf %175, %176 : vector<8x32xf32>
    %178 = math.tanh %177 : vector<8x32xf32>
    %179 = arith.mulf %174, %178 : vector<8x32xf32>
    %180 = arith.truncf %179 : vector<8x32xf32> to vector<8x32xbf16>
    %cst_57 = arith.constant dense<0.000000e+00> : vector<8x128xf32>
    %181 = tpu.matmul %180, %17, %cst_57 {dimension_numbers = #tpu.dot_dimension_numbers<[1], [0], [0], [1], [0, 0, 1, 1], [], []>} : vector<8x32xbf16>, vector<32x128xbf16>, vector<8x128xf32> -> vector<8x128xf32>
    %cst_58 = arith.constant dense<0.000000e+00> : vector<8x128xf32>
    %182 = tpu.matmul %180, %18, %cst_58 {dimension_numbers = #tpu.dot_dimension_numbers<[1], [0], [0], [1], [0, 0, 1, 1], [], []>} : vector<8x32xbf16>, vector<32x128xbf16>, vector<8x128xf32> -> vector<8x128xf32>
    %183 = arith.addf %182, %159 : vector<8x128xf32>
    %184 = arith.addf %183, %22 : vector<8x128xf32>
    %185 = arith.negf %184 : vector<8x128xf32>
    %186 = math.exp %185 : vector<8x128xf32>
    %cst_59 = arith.constant 1.000000e+00 : f32
    %187 = vector.broadcast %cst_59 : f32 to vector<8x128xf32>
    %188 = arith.addf %187, %186 : vector<8x128xf32>
    %189 = arith.divf %187, %188 : vector<8x128xf32>
    %190 = vector.extract_strided_slice %189 {offsets = [0, 0], sizes = [8, 32], strides = [1, 1]} : vector<8x128xf32> to vector<8x32xf32>
    %191 = vector.extract_strided_slice %189 {offsets = [0, 32], sizes = [8, 32], strides = [1, 1]} : vector<8x128xf32> to vector<8x32xf32>
    %192 = vector.extract_strided_slice %189 {offsets = [0, 64], sizes = [8, 32], strides = [1, 1]} : vector<8x128xf32> to vector<8x32xf32>
    %cst_60 = arith.constant 2.000000e+00 : f32
    %193 = vector.broadcast %cst_60 : f32 to vector<8x32xf32>
    %194 = arith.mulf %193, %192 : vector<8x32xf32>
    %cst_61 = arith.constant 1.000000e+00 : f32
    %195 = vector.broadcast %cst_61 : f32 to vector<8x32xf32>
    %196 = arith.subf %194, %195 : vector<8x32xf32>
    %197 = vector.extract_strided_slice %189 {offsets = [0, 96], sizes = [8, 32], strides = [1, 1]} : vector<8x128xf32> to vector<8x32xf32>
    %198 = arith.mulf %191, %155 : vector<8x32xf32>
    %199 = arith.mulf %190, %196 : vector<8x32xf32>
    %200 = arith.addf %198, %199 : vector<8x32xf32>
    %201 = math.tanh %200 : vector<8x32xf32>
    %202 = arith.mulf %197, %201 : vector<8x32xf32>
    %203 = arith.truncf %202 : vector<8x32xf32> to vector<8x32xbf16>
    %cst_62 = arith.constant dense<0.000000e+00> : vector<8x128xf32>
    %204 = tpu.matmul %203, %19, %cst_62 {dimension_numbers = #tpu.dot_dimension_numbers<[1], [0], [0], [1], [0, 0, 1, 1], [], []>} : vector<8x32xbf16>, vector<32x128xbf16>, vector<8x128xf32> -> vector<8x128xf32>
    %c32 = arith.constant 32 : index
    %c0_63 = arith.constant 0 : index
    %205 = vector.load %arg12[%c32, %c0_63] : memref<160x128xf32, #tpu.memory_space<vmem>>, vector<8x128xf32>
    %206 = arith.addf %205, %181 : vector<8x128xf32>
    %207 = arith.negf %206 : vector<8x128xf32>
    %208 = math.exp %207 : vector<8x128xf32>
    %cst_64 = arith.constant 1.000000e+00 : f32
    %209 = vector.broadcast %cst_64 : f32 to vector<8x128xf32>
    %210 = arith.addf %209, %208 : vector<8x128xf32>
    %211 = arith.divf %209, %210 : vector<8x128xf32>
    %212 = vector.extract_strided_slice %211 {offsets = [0, 0], sizes = [8, 32], strides = [1, 1]} : vector<8x128xf32> to vector<8x32xf32>
    %213 = vector.extract_strided_slice %211 {offsets = [0, 32], sizes = [8, 32], strides = [1, 1]} : vector<8x128xf32> to vector<8x32xf32>
    %214 = vector.extract_strided_slice %211 {offsets = [0, 64], sizes = [8, 32], strides = [1, 1]} : vector<8x128xf32> to vector<8x32xf32>
    %cst_65 = arith.constant 2.000000e+00 : f32
    %215 = vector.broadcast %cst_65 : f32 to vector<8x32xf32>
    %216 = arith.mulf %215, %214 : vector<8x32xf32>
    %cst_66 = arith.constant 1.000000e+00 : f32
    %217 = vector.broadcast %cst_66 : f32 to vector<8x32xf32>
    %218 = arith.subf %216, %217 : vector<8x32xf32>
    %219 = vector.extract_strided_slice %211 {offsets = [0, 96], sizes = [8, 32], strides = [1, 1]} : vector<8x128xf32> to vector<8x32xf32>
    %220 = arith.mulf %213, %177 : vector<8x32xf32>
    %221 = arith.mulf %212, %218 : vector<8x32xf32>
    %222 = arith.addf %220, %221 : vector<8x32xf32>
    %223 = math.tanh %222 : vector<8x32xf32>
    %224 = arith.mulf %219, %223 : vector<8x32xf32>
    %225 = arith.truncf %224 : vector<8x32xf32> to vector<8x32xbf16>
    %cst_67 = arith.constant dense<0.000000e+00> : vector<8x128xf32>
    %226 = tpu.matmul %225, %17, %cst_67 {dimension_numbers = #tpu.dot_dimension_numbers<[1], [0], [0], [1], [0, 0, 1, 1], [], []>} : vector<8x32xbf16>, vector<32x128xbf16>, vector<8x128xf32> -> vector<8x128xf32>
    %cst_68 = arith.constant dense<0.000000e+00> : vector<8x128xf32>
    %227 = tpu.matmul %225, %18, %cst_68 {dimension_numbers = #tpu.dot_dimension_numbers<[1], [0], [0], [1], [0, 0, 1, 1], [], []>} : vector<8x32xbf16>, vector<32x128xbf16>, vector<8x128xf32> -> vector<8x128xf32>
    %228 = arith.addf %227, %204 : vector<8x128xf32>
    %229 = arith.addf %228, %22 : vector<8x128xf32>
    %230 = arith.negf %229 : vector<8x128xf32>
    %231 = math.exp %230 : vector<8x128xf32>
    %cst_69 = arith.constant 1.000000e+00 : f32
    %232 = vector.broadcast %cst_69 : f32 to vector<8x128xf32>
    %233 = arith.addf %232, %231 : vector<8x128xf32>
    %234 = arith.divf %232, %233 : vector<8x128xf32>
    %235 = vector.extract_strided_slice %234 {offsets = [0, 0], sizes = [8, 32], strides = [1, 1]} : vector<8x128xf32> to vector<8x32xf32>
    %236 = vector.extract_strided_slice %234 {offsets = [0, 32], sizes = [8, 32], strides = [1, 1]} : vector<8x128xf32> to vector<8x32xf32>
    %237 = vector.extract_strided_slice %234 {offsets = [0, 64], sizes = [8, 32], strides = [1, 1]} : vector<8x128xf32> to vector<8x32xf32>
    %cst_70 = arith.constant 2.000000e+00 : f32
    %238 = vector.broadcast %cst_70 : f32 to vector<8x32xf32>
    %239 = arith.mulf %238, %237 : vector<8x32xf32>
    %cst_71 = arith.constant 1.000000e+00 : f32
    %240 = vector.broadcast %cst_71 : f32 to vector<8x32xf32>
    %241 = arith.subf %239, %240 : vector<8x32xf32>
    %242 = vector.extract_strided_slice %234 {offsets = [0, 96], sizes = [8, 32], strides = [1, 1]} : vector<8x128xf32> to vector<8x32xf32>
    %243 = arith.mulf %236, %200 : vector<8x32xf32>
    %244 = arith.mulf %235, %241 : vector<8x32xf32>
    %245 = arith.addf %243, %244 : vector<8x32xf32>
    %246 = math.tanh %245 : vector<8x32xf32>
    %247 = arith.mulf %242, %246 : vector<8x32xf32>
    %248 = arith.truncf %247 : vector<8x32xf32> to vector<8x32xbf16>
    %cst_72 = arith.constant dense<0.000000e+00> : vector<8x128xf32>
    %249 = tpu.matmul %248, %19, %cst_72 {dimension_numbers = #tpu.dot_dimension_numbers<[1], [0], [0], [1], [0, 0, 1, 1], [], []>} : vector<8x32xbf16>, vector<32x128xbf16>, vector<8x128xf32> -> vector<8x128xf32>
    %c40 = arith.constant 40 : index
    %c0_73 = arith.constant 0 : index
    %250 = vector.load %arg12[%c40, %c0_73] : memref<160x128xf32, #tpu.memory_space<vmem>>, vector<8x128xf32>
    %251 = arith.addf %250, %226 : vector<8x128xf32>
    %252 = arith.negf %251 : vector<8x128xf32>
    %253 = math.exp %252 : vector<8x128xf32>
    %cst_74 = arith.constant 1.000000e+00 : f32
    %254 = vector.broadcast %cst_74 : f32 to vector<8x128xf32>
    %255 = arith.addf %254, %253 : vector<8x128xf32>
    %256 = arith.divf %254, %255 : vector<8x128xf32>
    %257 = vector.extract_strided_slice %256 {offsets = [0, 0], sizes = [8, 32], strides = [1, 1]} : vector<8x128xf32> to vector<8x32xf32>
    %258 = vector.extract_strided_slice %256 {offsets = [0, 32], sizes = [8, 32], strides = [1, 1]} : vector<8x128xf32> to vector<8x32xf32>
    %259 = vector.extract_strided_slice %256 {offsets = [0, 64], sizes = [8, 32], strides = [1, 1]} : vector<8x128xf32> to vector<8x32xf32>
    %cst_75 = arith.constant 2.000000e+00 : f32
    %260 = vector.broadcast %cst_75 : f32 to vector<8x32xf32>
    %261 = arith.mulf %260, %259 : vector<8x32xf32>
    %cst_76 = arith.constant 1.000000e+00 : f32
    %262 = vector.broadcast %cst_76 : f32 to vector<8x32xf32>
    %263 = arith.subf %261, %262 : vector<8x32xf32>
    %264 = vector.extract_strided_slice %256 {offsets = [0, 96], sizes = [8, 32], strides = [1, 1]} : vector<8x128xf32> to vector<8x32xf32>
    %265 = arith.mulf %258, %222 : vector<8x32xf32>
    %266 = arith.mulf %257, %263 : vector<8x32xf32>
    %267 = arith.addf %265, %266 : vector<8x32xf32>
    %268 = math.tanh %267 : vector<8x32xf32>
    %269 = arith.mulf %264, %268 : vector<8x32xf32>
    %270 = arith.truncf %269 : vector<8x32xf32> to vector<8x32xbf16>
    %cst_77 = arith.constant dense<0.000000e+00> : vector<8x128xf32>
    %271 = tpu.matmul %270, %17, %cst_77 {dimension_numbers = #tpu.dot_dimension_numbers<[1], [0], [0], [1], [0, 0, 1, 1], [], []>} : vector<8x32xbf16>, vector<32x128xbf16>, vector<8x128xf32> -> vector<8x128xf32>
    %cst_78 = arith.constant dense<0.000000e+00> : vector<8x128xf32>
    %272 = tpu.matmul %270, %18, %cst_78 {dimension_numbers = #tpu.dot_dimension_numbers<[1], [0], [0], [1], [0, 0, 1, 1], [], []>} : vector<8x32xbf16>, vector<32x128xbf16>, vector<8x128xf32> -> vector<8x128xf32>
    %273 = arith.addf %272, %249 : vector<8x128xf32>
    %274 = arith.addf %273, %22 : vector<8x128xf32>
    %275 = arith.negf %274 : vector<8x128xf32>
    %276 = math.exp %275 : vector<8x128xf32>
    %cst_79 = arith.constant 1.000000e+00 : f32
    %277 = vector.broadcast %cst_79 : f32 to vector<8x128xf32>
    %278 = arith.addf %277, %276 : vector<8x128xf32>
    %279 = arith.divf %277, %278 : vector<8x128xf32>
    %280 = vector.extract_strided_slice %279 {offsets = [0, 0], sizes = [8, 32], strides = [1, 1]} : vector<8x128xf32> to vector<8x32xf32>
    %281 = vector.extract_strided_slice %279 {offsets = [0, 32], sizes = [8, 32], strides = [1, 1]} : vector<8x128xf32> to vector<8x32xf32>
    %282 = vector.extract_strided_slice %279 {offsets = [0, 64], sizes = [8, 32], strides = [1, 1]} : vector<8x128xf32> to vector<8x32xf32>
    %cst_80 = arith.constant 2.000000e+00 : f32
    %283 = vector.broadcast %cst_80 : f32 to vector<8x32xf32>
    %284 = arith.mulf %283, %282 : vector<8x32xf32>
    %cst_81 = arith.constant 1.000000e+00 : f32
    %285 = vector.broadcast %cst_81 : f32 to vector<8x32xf32>
    %286 = arith.subf %284, %285 : vector<8x32xf32>
    %287 = vector.extract_strided_slice %279 {offsets = [0, 96], sizes = [8, 32], strides = [1, 1]} : vector<8x128xf32> to vector<8x32xf32>
    %288 = arith.mulf %281, %245 : vector<8x32xf32>
    %289 = arith.mulf %280, %286 : vector<8x32xf32>
    %290 = arith.addf %288, %289 : vector<8x32xf32>
    %291 = math.tanh %290 : vector<8x32xf32>
    %292 = arith.mulf %287, %291 : vector<8x32xf32>
    %293 = arith.truncf %292 : vector<8x32xf32> to vector<8x32xbf16>
    %cst_82 = arith.constant dense<0.000000e+00> : vector<8x128xf32>
    %294 = tpu.matmul %293, %19, %cst_82 {dimension_numbers = #tpu.dot_dimension_numbers<[1], [0], [0], [1], [0, 0, 1, 1], [], []>} : vector<8x32xbf16>, vector<32x128xbf16>, vector<8x128xf32> -> vector<8x128xf32>
    %c48 = arith.constant 48 : index
    %c0_83 = arith.constant 0 : index
    %295 = vector.load %arg12[%c48, %c0_83] : memref<160x128xf32, #tpu.memory_space<vmem>>, vector<8x128xf32>
    %296 = arith.addf %295, %271 : vector<8x128xf32>
    %297 = arith.negf %296 : vector<8x128xf32>
    %298 = math.exp %297 : vector<8x128xf32>
    %cst_84 = arith.constant 1.000000e+00 : f32
    %299 = vector.broadcast %cst_84 : f32 to vector<8x128xf32>
    %300 = arith.addf %299, %298 : vector<8x128xf32>
    %301 = arith.divf %299, %300 : vector<8x128xf32>
    %302 = vector.extract_strided_slice %301 {offsets = [0, 0], sizes = [8, 32], strides = [1, 1]} : vector<8x128xf32> to vector<8x32xf32>
    %303 = vector.extract_strided_slice %301 {offsets = [0, 32], sizes = [8, 32], strides = [1, 1]} : vector<8x128xf32> to vector<8x32xf32>
    %304 = vector.extract_strided_slice %301 {offsets = [0, 64], sizes = [8, 32], strides = [1, 1]} : vector<8x128xf32> to vector<8x32xf32>
    %cst_85 = arith.constant 2.000000e+00 : f32
    %305 = vector.broadcast %cst_85 : f32 to vector<8x32xf32>
    %306 = arith.mulf %305, %304 : vector<8x32xf32>
    %cst_86 = arith.constant 1.000000e+00 : f32
    %307 = vector.broadcast %cst_86 : f32 to vector<8x32xf32>
    %308 = arith.subf %306, %307 : vector<8x32xf32>
    %309 = vector.extract_strided_slice %301 {offsets = [0, 96], sizes = [8, 32], strides = [1, 1]} : vector<8x128xf32> to vector<8x32xf32>
    %310 = arith.mulf %303, %267 : vector<8x32xf32>
    %311 = arith.mulf %302, %308 : vector<8x32xf32>
    %312 = arith.addf %310, %311 : vector<8x32xf32>
    %313 = math.tanh %312 : vector<8x32xf32>
    %314 = arith.mulf %309, %313 : vector<8x32xf32>
    %315 = arith.truncf %314 : vector<8x32xf32> to vector<8x32xbf16>
    %cst_87 = arith.constant dense<0.000000e+00> : vector<8x128xf32>
    %316 = tpu.matmul %315, %17, %cst_87 {dimension_numbers = #tpu.dot_dimension_numbers<[1], [0], [0], [1], [0, 0, 1, 1], [], []>} : vector<8x32xbf16>, vector<32x128xbf16>, vector<8x128xf32> -> vector<8x128xf32>
    %cst_88 = arith.constant dense<0.000000e+00> : vector<8x128xf32>
    %317 = tpu.matmul %315, %18, %cst_88 {dimension_numbers = #tpu.dot_dimension_numbers<[1], [0], [0], [1], [0, 0, 1, 1], [], []>} : vector<8x32xbf16>, vector<32x128xbf16>, vector<8x128xf32> -> vector<8x128xf32>
    %318 = arith.addf %317, %294 : vector<8x128xf32>
    %319 = arith.addf %318, %22 : vector<8x128xf32>
    %320 = arith.negf %319 : vector<8x128xf32>
    %321 = math.exp %320 : vector<8x128xf32>
    %cst_89 = arith.constant 1.000000e+00 : f32
    %322 = vector.broadcast %cst_89 : f32 to vector<8x128xf32>
    %323 = arith.addf %322, %321 : vector<8x128xf32>
    %324 = arith.divf %322, %323 : vector<8x128xf32>
    %325 = vector.extract_strided_slice %324 {offsets = [0, 0], sizes = [8, 32], strides = [1, 1]} : vector<8x128xf32> to vector<8x32xf32>
    %326 = vector.extract_strided_slice %324 {offsets = [0, 32], sizes = [8, 32], strides = [1, 1]} : vector<8x128xf32> to vector<8x32xf32>
    %327 = vector.extract_strided_slice %324 {offsets = [0, 64], sizes = [8, 32], strides = [1, 1]} : vector<8x128xf32> to vector<8x32xf32>
    %cst_90 = arith.constant 2.000000e+00 : f32
    %328 = vector.broadcast %cst_90 : f32 to vector<8x32xf32>
    %329 = arith.mulf %328, %327 : vector<8x32xf32>
    %cst_91 = arith.constant 1.000000e+00 : f32
    %330 = vector.broadcast %cst_91 : f32 to vector<8x32xf32>
    %331 = arith.subf %329, %330 : vector<8x32xf32>
    %332 = vector.extract_strided_slice %324 {offsets = [0, 96], sizes = [8, 32], strides = [1, 1]} : vector<8x128xf32> to vector<8x32xf32>
    %333 = arith.mulf %326, %290 : vector<8x32xf32>
    %334 = arith.mulf %325, %331 : vector<8x32xf32>
    %335 = arith.addf %333, %334 : vector<8x32xf32>
    %336 = math.tanh %335 : vector<8x32xf32>
    %337 = arith.mulf %332, %336 : vector<8x32xf32>
    %338 = arith.truncf %337 : vector<8x32xf32> to vector<8x32xbf16>
    %cst_92 = arith.constant dense<0.000000e+00> : vector<8x128xf32>
    %339 = tpu.matmul %338, %19, %cst_92 {dimension_numbers = #tpu.dot_dimension_numbers<[1], [0], [0], [1], [0, 0, 1, 1], [], []>} : vector<8x32xbf16>, vector<32x128xbf16>, vector<8x128xf32> -> vector<8x128xf32>
    %c56 = arith.constant 56 : index
    %c0_93 = arith.constant 0 : index
    %340 = vector.load %arg12[%c56, %c0_93] : memref<160x128xf32, #tpu.memory_space<vmem>>, vector<8x128xf32>
    %341 = arith.addf %340, %316 : vector<8x128xf32>
    %342 = arith.negf %341 : vector<8x128xf32>
    %343 = math.exp %342 : vector<8x128xf32>
    %cst_94 = arith.constant 1.000000e+00 : f32
    %344 = vector.broadcast %cst_94 : f32 to vector<8x128xf32>
    %345 = arith.addf %344, %343 : vector<8x128xf32>
    %346 = arith.divf %344, %345 : vector<8x128xf32>
    %347 = vector.extract_strided_slice %346 {offsets = [0, 0], sizes = [8, 32], strides = [1, 1]} : vector<8x128xf32> to vector<8x32xf32>
    %348 = vector.extract_strided_slice %346 {offsets = [0, 32], sizes = [8, 32], strides = [1, 1]} : vector<8x128xf32> to vector<8x32xf32>
    %349 = vector.extract_strided_slice %346 {offsets = [0, 64], sizes = [8, 32], strides = [1, 1]} : vector<8x128xf32> to vector<8x32xf32>
    %cst_95 = arith.constant 2.000000e+00 : f32
    %350 = vector.broadcast %cst_95 : f32 to vector<8x32xf32>
    %351 = arith.mulf %350, %349 : vector<8x32xf32>
    %cst_96 = arith.constant 1.000000e+00 : f32
    %352 = vector.broadcast %cst_96 : f32 to vector<8x32xf32>
    %353 = arith.subf %351, %352 : vector<8x32xf32>
    %354 = vector.extract_strided_slice %346 {offsets = [0, 96], sizes = [8, 32], strides = [1, 1]} : vector<8x128xf32> to vector<8x32xf32>
    %355 = arith.mulf %348, %312 : vector<8x32xf32>
    %356 = arith.mulf %347, %353 : vector<8x32xf32>
    %357 = arith.addf %355, %356 : vector<8x32xf32>
    %358 = math.tanh %357 : vector<8x32xf32>
    %359 = arith.mulf %354, %358 : vector<8x32xf32>
    %360 = arith.truncf %359 : vector<8x32xf32> to vector<8x32xbf16>
    %cst_97 = arith.constant dense<0.000000e+00> : vector<8x128xf32>
    %361 = tpu.matmul %360, %17, %cst_97 {dimension_numbers = #tpu.dot_dimension_numbers<[1], [0], [0], [1], [0, 0, 1, 1], [], []>} : vector<8x32xbf16>, vector<32x128xbf16>, vector<8x128xf32> -> vector<8x128xf32>
    %cst_98 = arith.constant dense<0.000000e+00> : vector<8x128xf32>
    %362 = tpu.matmul %360, %18, %cst_98 {dimension_numbers = #tpu.dot_dimension_numbers<[1], [0], [0], [1], [0, 0, 1, 1], [], []>} : vector<8x32xbf16>, vector<32x128xbf16>, vector<8x128xf32> -> vector<8x128xf32>
    %363 = arith.addf %362, %339 : vector<8x128xf32>
    %364 = arith.addf %363, %22 : vector<8x128xf32>
    %365 = arith.negf %364 : vector<8x128xf32>
    %366 = math.exp %365 : vector<8x128xf32>
    %cst_99 = arith.constant 1.000000e+00 : f32
    %367 = vector.broadcast %cst_99 : f32 to vector<8x128xf32>
    %368 = arith.addf %367, %366 : vector<8x128xf32>
    %369 = arith.divf %367, %368 : vector<8x128xf32>
    %370 = vector.extract_strided_slice %369 {offsets = [0, 0], sizes = [8, 32], strides = [1, 1]} : vector<8x128xf32> to vector<8x32xf32>
    %371 = vector.extract_strided_slice %369 {offsets = [0, 32], sizes = [8, 32], strides = [1, 1]} : vector<8x128xf32> to vector<8x32xf32>
    %372 = vector.extract_strided_slice %369 {offsets = [0, 64], sizes = [8, 32], strides = [1, 1]} : vector<8x128xf32> to vector<8x32xf32>
    %cst_100 = arith.constant 2.000000e+00 : f32
    %373 = vector.broadcast %cst_100 : f32 to vector<8x32xf32>
    %374 = arith.mulf %373, %372 : vector<8x32xf32>
    %cst_101 = arith.constant 1.000000e+00 : f32
    %375 = vector.broadcast %cst_101 : f32 to vector<8x32xf32>
    %376 = arith.subf %374, %375 : vector<8x32xf32>
    %377 = vector.extract_strided_slice %369 {offsets = [0, 96], sizes = [8, 32], strides = [1, 1]} : vector<8x128xf32> to vector<8x32xf32>
    %378 = arith.mulf %371, %335 : vector<8x32xf32>
    %379 = arith.mulf %370, %376 : vector<8x32xf32>
    %380 = arith.addf %378, %379 : vector<8x32xf32>
    %381 = math.tanh %380 : vector<8x32xf32>
    %382 = arith.mulf %377, %381 : vector<8x32xf32>
    %383 = arith.truncf %382 : vector<8x32xf32> to vector<8x32xbf16>
    %cst_102 = arith.constant dense<0.000000e+00> : vector<8x128xf32>
    %384 = tpu.matmul %383, %19, %cst_102 {dimension_numbers = #tpu.dot_dimension_numbers<[1], [0], [0], [1], [0, 0, 1, 1], [], []>} : vector<8x32xbf16>, vector<32x128xbf16>, vector<8x128xf32> -> vector<8x128xf32>
    %c64 = arith.constant 64 : index
    %c0_103 = arith.constant 0 : index
    %385 = vector.load %arg12[%c64, %c0_103] : memref<160x128xf32, #tpu.memory_space<vmem>>, vector<8x128xf32>
    %386 = arith.addf %385, %361 : vector<8x128xf32>
    %387 = arith.negf %386 : vector<8x128xf32>
    %388 = math.exp %387 : vector<8x128xf32>
    %cst_104 = arith.constant 1.000000e+00 : f32
    %389 = vector.broadcast %cst_104 : f32 to vector<8x128xf32>
    %390 = arith.addf %389, %388 : vector<8x128xf32>
    %391 = arith.divf %389, %390 : vector<8x128xf32>
    %392 = vector.extract_strided_slice %391 {offsets = [0, 0], sizes = [8, 32], strides = [1, 1]} : vector<8x128xf32> to vector<8x32xf32>
    %393 = vector.extract_strided_slice %391 {offsets = [0, 32], sizes = [8, 32], strides = [1, 1]} : vector<8x128xf32> to vector<8x32xf32>
    %394 = vector.extract_strided_slice %391 {offsets = [0, 64], sizes = [8, 32], strides = [1, 1]} : vector<8x128xf32> to vector<8x32xf32>
    %cst_105 = arith.constant 2.000000e+00 : f32
    %395 = vector.broadcast %cst_105 : f32 to vector<8x32xf32>
    %396 = arith.mulf %395, %394 : vector<8x32xf32>
    %cst_106 = arith.constant 1.000000e+00 : f32
    %397 = vector.broadcast %cst_106 : f32 to vector<8x32xf32>
    %398 = arith.subf %396, %397 : vector<8x32xf32>
    %399 = vector.extract_strided_slice %391 {offsets = [0, 96], sizes = [8, 32], strides = [1, 1]} : vector<8x128xf32> to vector<8x32xf32>
    %400 = arith.mulf %393, %357 : vector<8x32xf32>
    %401 = arith.mulf %392, %398 : vector<8x32xf32>
    %402 = arith.addf %400, %401 : vector<8x32xf32>
    %403 = math.tanh %402 : vector<8x32xf32>
    %404 = arith.mulf %399, %403 : vector<8x32xf32>
    %405 = arith.truncf %404 : vector<8x32xf32> to vector<8x32xbf16>
    %cst_107 = arith.constant dense<0.000000e+00> : vector<8x128xf32>
    %406 = tpu.matmul %405, %17, %cst_107 {dimension_numbers = #tpu.dot_dimension_numbers<[1], [0], [0], [1], [0, 0, 1, 1], [], []>} : vector<8x32xbf16>, vector<32x128xbf16>, vector<8x128xf32> -> vector<8x128xf32>
    %cst_108 = arith.constant dense<0.000000e+00> : vector<8x128xf32>
    %407 = tpu.matmul %405, %18, %cst_108 {dimension_numbers = #tpu.dot_dimension_numbers<[1], [0], [0], [1], [0, 0, 1, 1], [], []>} : vector<8x32xbf16>, vector<32x128xbf16>, vector<8x128xf32> -> vector<8x128xf32>
    %408 = arith.addf %407, %384 : vector<8x128xf32>
    %409 = arith.addf %408, %22 : vector<8x128xf32>
    %410 = arith.negf %409 : vector<8x128xf32>
    %411 = math.exp %410 : vector<8x128xf32>
    %cst_109 = arith.constant 1.000000e+00 : f32
    %412 = vector.broadcast %cst_109 : f32 to vector<8x128xf32>
    %413 = arith.addf %412, %411 : vector<8x128xf32>
    %414 = arith.divf %412, %413 : vector<8x128xf32>
    %415 = vector.extract_strided_slice %414 {offsets = [0, 0], sizes = [8, 32], strides = [1, 1]} : vector<8x128xf32> to vector<8x32xf32>
    %416 = vector.extract_strided_slice %414 {offsets = [0, 32], sizes = [8, 32], strides = [1, 1]} : vector<8x128xf32> to vector<8x32xf32>
    %417 = vector.extract_strided_slice %414 {offsets = [0, 64], sizes = [8, 32], strides = [1, 1]} : vector<8x128xf32> to vector<8x32xf32>
    %cst_110 = arith.constant 2.000000e+00 : f32
    %418 = vector.broadcast %cst_110 : f32 to vector<8x32xf32>
    %419 = arith.mulf %418, %417 : vector<8x32xf32>
    %cst_111 = arith.constant 1.000000e+00 : f32
    %420 = vector.broadcast %cst_111 : f32 to vector<8x32xf32>
    %421 = arith.subf %419, %420 : vector<8x32xf32>
    %422 = vector.extract_strided_slice %414 {offsets = [0, 96], sizes = [8, 32], strides = [1, 1]} : vector<8x128xf32> to vector<8x32xf32>
    %423 = arith.mulf %416, %380 : vector<8x32xf32>
    %424 = arith.mulf %415, %421 : vector<8x32xf32>
    %425 = arith.addf %423, %424 : vector<8x32xf32>
    %426 = math.tanh %425 : vector<8x32xf32>
    %427 = arith.mulf %422, %426 : vector<8x32xf32>
    %428 = arith.truncf %427 : vector<8x32xf32> to vector<8x32xbf16>
    %cst_112 = arith.constant dense<0.000000e+00> : vector<8x128xf32>
    %429 = tpu.matmul %428, %19, %cst_112 {dimension_numbers = #tpu.dot_dimension_numbers<[1], [0], [0], [1], [0, 0, 1, 1], [], []>} : vector<8x32xbf16>, vector<32x128xbf16>, vector<8x128xf32> -> vector<8x128xf32>
    %c72 = arith.constant 72 : index
    %c0_113 = arith.constant 0 : index
    %430 = vector.load %arg12[%c72, %c0_113] : memref<160x128xf32, #tpu.memory_space<vmem>>, vector<8x128xf32>
    %431 = arith.addf %430, %406 : vector<8x128xf32>
    %432 = arith.negf %431 : vector<8x128xf32>
    %433 = math.exp %432 : vector<8x128xf32>
    %cst_114 = arith.constant 1.000000e+00 : f32
    %434 = vector.broadcast %cst_114 : f32 to vector<8x128xf32>
    %435 = arith.addf %434, %433 : vector<8x128xf32>
    %436 = arith.divf %434, %435 : vector<8x128xf32>
    %437 = vector.extract_strided_slice %436 {offsets = [0, 0], sizes = [8, 32], strides = [1, 1]} : vector<8x128xf32> to vector<8x32xf32>
    %438 = vector.extract_strided_slice %436 {offsets = [0, 32], sizes = [8, 32], strides = [1, 1]} : vector<8x128xf32> to vector<8x32xf32>
    %439 = vector.extract_strided_slice %436 {offsets = [0, 64], sizes = [8, 32], strides = [1, 1]} : vector<8x128xf32> to vector<8x32xf32>
    %cst_115 = arith.constant 2.000000e+00 : f32
    %440 = vector.broadcast %cst_115 : f32 to vector<8x32xf32>
    %441 = arith.mulf %440, %439 : vector<8x32xf32>
    %cst_116 = arith.constant 1.000000e+00 : f32
    %442 = vector.broadcast %cst_116 : f32 to vector<8x32xf32>
    %443 = arith.subf %441, %442 : vector<8x32xf32>
    %444 = vector.extract_strided_slice %436 {offsets = [0, 96], sizes = [8, 32], strides = [1, 1]} : vector<8x128xf32> to vector<8x32xf32>
    %445 = arith.mulf %438, %402 : vector<8x32xf32>
    %446 = arith.mulf %437, %443 : vector<8x32xf32>
    %447 = arith.addf %445, %446 : vector<8x32xf32>
    %448 = math.tanh %447 : vector<8x32xf32>
    %449 = arith.mulf %444, %448 : vector<8x32xf32>
    %450 = arith.truncf %449 : vector<8x32xf32> to vector<8x32xbf16>
    %cst_117 = arith.constant dense<0.000000e+00> : vector<8x128xf32>
    %451 = tpu.matmul %450, %17, %cst_117 {dimension_numbers = #tpu.dot_dimension_numbers<[1], [0], [0], [1], [0, 0, 1, 1], [], []>} : vector<8x32xbf16>, vector<32x128xbf16>, vector<8x128xf32> -> vector<8x128xf32>
    %cst_118 = arith.constant dense<0.000000e+00> : vector<8x128xf32>
    %452 = tpu.matmul %450, %18, %cst_118 {dimension_numbers = #tpu.dot_dimension_numbers<[1], [0], [0], [1], [0, 0, 1, 1], [], []>} : vector<8x32xbf16>, vector<32x128xbf16>, vector<8x128xf32> -> vector<8x128xf32>
    %453 = arith.addf %452, %429 : vector<8x128xf32>
    %454 = arith.addf %453, %22 : vector<8x128xf32>
    %455 = arith.negf %454 : vector<8x128xf32>
    %456 = math.exp %455 : vector<8x128xf32>
    %cst_119 = arith.constant 1.000000e+00 : f32
    %457 = vector.broadcast %cst_119 : f32 to vector<8x128xf32>
    %458 = arith.addf %457, %456 : vector<8x128xf32>
    %459 = arith.divf %457, %458 : vector<8x128xf32>
    %460 = vector.extract_strided_slice %459 {offsets = [0, 0], sizes = [8, 32], strides = [1, 1]} : vector<8x128xf32> to vector<8x32xf32>
    %461 = vector.extract_strided_slice %459 {offsets = [0, 32], sizes = [8, 32], strides = [1, 1]} : vector<8x128xf32> to vector<8x32xf32>
    %462 = vector.extract_strided_slice %459 {offsets = [0, 64], sizes = [8, 32], strides = [1, 1]} : vector<8x128xf32> to vector<8x32xf32>
    %cst_120 = arith.constant 2.000000e+00 : f32
    %463 = vector.broadcast %cst_120 : f32 to vector<8x32xf32>
    %464 = arith.mulf %463, %462 : vector<8x32xf32>
    %cst_121 = arith.constant 1.000000e+00 : f32
    %465 = vector.broadcast %cst_121 : f32 to vector<8x32xf32>
    %466 = arith.subf %464, %465 : vector<8x32xf32>
    %467 = vector.extract_strided_slice %459 {offsets = [0, 96], sizes = [8, 32], strides = [1, 1]} : vector<8x128xf32> to vector<8x32xf32>
    %468 = arith.mulf %461, %425 : vector<8x32xf32>
    %469 = arith.mulf %460, %466 : vector<8x32xf32>
    %470 = arith.addf %468, %469 : vector<8x32xf32>
    %471 = math.tanh %470 : vector<8x32xf32>
    %472 = arith.mulf %467, %471 : vector<8x32xf32>
    %473 = arith.truncf %472 : vector<8x32xf32> to vector<8x32xbf16>
    %cst_122 = arith.constant dense<0.000000e+00> : vector<8x128xf32>
    %474 = tpu.matmul %473, %19, %cst_122 {dimension_numbers = #tpu.dot_dimension_numbers<[1], [0], [0], [1], [0, 0, 1, 1], [], []>} : vector<8x32xbf16>, vector<32x128xbf16>, vector<8x128xf32> -> vector<8x128xf32>
    %c80 = arith.constant 80 : index
    %c0_123 = arith.constant 0 : index
    %475 = vector.load %arg12[%c80, %c0_123] : memref<160x128xf32, #tpu.memory_space<vmem>>, vector<8x128xf32>
    %476 = arith.addf %475, %451 : vector<8x128xf32>
    %477 = arith.negf %476 : vector<8x128xf32>
    %478 = math.exp %477 : vector<8x128xf32>
    %cst_124 = arith.constant 1.000000e+00 : f32
    %479 = vector.broadcast %cst_124 : f32 to vector<8x128xf32>
    %480 = arith.addf %479, %478 : vector<8x128xf32>
    %481 = arith.divf %479, %480 : vector<8x128xf32>
    %482 = vector.extract_strided_slice %481 {offsets = [0, 0], sizes = [8, 32], strides = [1, 1]} : vector<8x128xf32> to vector<8x32xf32>
    %483 = vector.extract_strided_slice %481 {offsets = [0, 32], sizes = [8, 32], strides = [1, 1]} : vector<8x128xf32> to vector<8x32xf32>
    %484 = vector.extract_strided_slice %481 {offsets = [0, 64], sizes = [8, 32], strides = [1, 1]} : vector<8x128xf32> to vector<8x32xf32>
    %cst_125 = arith.constant 2.000000e+00 : f32
    %485 = vector.broadcast %cst_125 : f32 to vector<8x32xf32>
    %486 = arith.mulf %485, %484 : vector<8x32xf32>
    %cst_126 = arith.constant 1.000000e+00 : f32
    %487 = vector.broadcast %cst_126 : f32 to vector<8x32xf32>
    %488 = arith.subf %486, %487 : vector<8x32xf32>
    %489 = vector.extract_strided_slice %481 {offsets = [0, 96], sizes = [8, 32], strides = [1, 1]} : vector<8x128xf32> to vector<8x32xf32>
    %490 = arith.mulf %483, %447 : vector<8x32xf32>
    %491 = arith.mulf %482, %488 : vector<8x32xf32>
    %492 = arith.addf %490, %491 : vector<8x32xf32>
    %493 = math.tanh %492 : vector<8x32xf32>
    %494 = arith.mulf %489, %493 : vector<8x32xf32>
    %495 = arith.truncf %494 : vector<8x32xf32> to vector<8x32xbf16>
    %cst_127 = arith.constant dense<0.000000e+00> : vector<8x128xf32>
    %496 = tpu.matmul %495, %17, %cst_127 {dimension_numbers = #tpu.dot_dimension_numbers<[1], [0], [0], [1], [0, 0, 1, 1], [], []>} : vector<8x32xbf16>, vector<32x128xbf16>, vector<8x128xf32> -> vector<8x128xf32>
    %cst_128 = arith.constant dense<0.000000e+00> : vector<8x128xf32>
    %497 = tpu.matmul %495, %18, %cst_128 {dimension_numbers = #tpu.dot_dimension_numbers<[1], [0], [0], [1], [0, 0, 1, 1], [], []>} : vector<8x32xbf16>, vector<32x128xbf16>, vector<8x128xf32> -> vector<8x128xf32>
    %498 = arith.addf %497, %474 : vector<8x128xf32>
    %499 = arith.addf %498, %22 : vector<8x128xf32>
    %500 = arith.negf %499 : vector<8x128xf32>
    %501 = math.exp %500 : vector<8x128xf32>
    %cst_129 = arith.constant 1.000000e+00 : f32
    %502 = vector.broadcast %cst_129 : f32 to vector<8x128xf32>
    %503 = arith.addf %502, %501 : vector<8x128xf32>
    %504 = arith.divf %502, %503 : vector<8x128xf32>
    %505 = vector.extract_strided_slice %504 {offsets = [0, 0], sizes = [8, 32], strides = [1, 1]} : vector<8x128xf32> to vector<8x32xf32>
    %506 = vector.extract_strided_slice %504 {offsets = [0, 32], sizes = [8, 32], strides = [1, 1]} : vector<8x128xf32> to vector<8x32xf32>
    %507 = vector.extract_strided_slice %504 {offsets = [0, 64], sizes = [8, 32], strides = [1, 1]} : vector<8x128xf32> to vector<8x32xf32>
    %cst_130 = arith.constant 2.000000e+00 : f32
    %508 = vector.broadcast %cst_130 : f32 to vector<8x32xf32>
    %509 = arith.mulf %508, %507 : vector<8x32xf32>
    %cst_131 = arith.constant 1.000000e+00 : f32
    %510 = vector.broadcast %cst_131 : f32 to vector<8x32xf32>
    %511 = arith.subf %509, %510 : vector<8x32xf32>
    %512 = vector.extract_strided_slice %504 {offsets = [0, 96], sizes = [8, 32], strides = [1, 1]} : vector<8x128xf32> to vector<8x32xf32>
    %513 = arith.mulf %506, %470 : vector<8x32xf32>
    %514 = arith.mulf %505, %511 : vector<8x32xf32>
    %515 = arith.addf %513, %514 : vector<8x32xf32>
    %516 = math.tanh %515 : vector<8x32xf32>
    %517 = arith.mulf %512, %516 : vector<8x32xf32>
    %518 = arith.truncf %517 : vector<8x32xf32> to vector<8x32xbf16>
    %cst_132 = arith.constant dense<0.000000e+00> : vector<8x128xf32>
    %519 = tpu.matmul %518, %19, %cst_132 {dimension_numbers = #tpu.dot_dimension_numbers<[1], [0], [0], [1], [0, 0, 1, 1], [], []>} : vector<8x32xbf16>, vector<32x128xbf16>, vector<8x128xf32> -> vector<8x128xf32>
    %c88 = arith.constant 88 : index
    %c0_133 = arith.constant 0 : index
    %520 = vector.load %arg12[%c88, %c0_133] : memref<160x128xf32, #tpu.memory_space<vmem>>, vector<8x128xf32>
    %521 = arith.addf %520, %496 : vector<8x128xf32>
    %522 = arith.negf %521 : vector<8x128xf32>
    %523 = math.exp %522 : vector<8x128xf32>
    %cst_134 = arith.constant 1.000000e+00 : f32
    %524 = vector.broadcast %cst_134 : f32 to vector<8x128xf32>
    %525 = arith.addf %524, %523 : vector<8x128xf32>
    %526 = arith.divf %524, %525 : vector<8x128xf32>
    %527 = vector.extract_strided_slice %526 {offsets = [0, 0], sizes = [8, 32], strides = [1, 1]} : vector<8x128xf32> to vector<8x32xf32>
    %528 = vector.extract_strided_slice %526 {offsets = [0, 32], sizes = [8, 32], strides = [1, 1]} : vector<8x128xf32> to vector<8x32xf32>
    %529 = vector.extract_strided_slice %526 {offsets = [0, 64], sizes = [8, 32], strides = [1, 1]} : vector<8x128xf32> to vector<8x32xf32>
    %cst_135 = arith.constant 2.000000e+00 : f32
    %530 = vector.broadcast %cst_135 : f32 to vector<8x32xf32>
    %531 = arith.mulf %530, %529 : vector<8x32xf32>
    %cst_136 = arith.constant 1.000000e+00 : f32
    %532 = vector.broadcast %cst_136 : f32 to vector<8x32xf32>
    %533 = arith.subf %531, %532 : vector<8x32xf32>
    %534 = vector.extract_strided_slice %526 {offsets = [0, 96], sizes = [8, 32], strides = [1, 1]} : vector<8x128xf32> to vector<8x32xf32>
    %535 = arith.mulf %528, %492 : vector<8x32xf32>
    %536 = arith.mulf %527, %533 : vector<8x32xf32>
    %537 = arith.addf %535, %536 : vector<8x32xf32>
    %538 = math.tanh %537 : vector<8x32xf32>
    %539 = arith.mulf %534, %538 : vector<8x32xf32>
    %540 = arith.truncf %539 : vector<8x32xf32> to vector<8x32xbf16>
    %cst_137 = arith.constant dense<0.000000e+00> : vector<8x128xf32>
    %541 = tpu.matmul %540, %17, %cst_137 {dimension_numbers = #tpu.dot_dimension_numbers<[1], [0], [0], [1], [0, 0, 1, 1], [], []>} : vector<8x32xbf16>, vector<32x128xbf16>, vector<8x128xf32> -> vector<8x128xf32>
    %cst_138 = arith.constant dense<0.000000e+00> : vector<8x128xf32>
    %542 = tpu.matmul %540, %18, %cst_138 {dimension_numbers = #tpu.dot_dimension_numbers<[1], [0], [0], [1], [0, 0, 1, 1], [], []>} : vector<8x32xbf16>, vector<32x128xbf16>, vector<8x128xf32> -> vector<8x128xf32>
    %543 = arith.addf %542, %519 : vector<8x128xf32>
    %544 = arith.addf %543, %22 : vector<8x128xf32>
    %545 = arith.negf %544 : vector<8x128xf32>
    %546 = math.exp %545 : vector<8x128xf32>
    %cst_139 = arith.constant 1.000000e+00 : f32
    %547 = vector.broadcast %cst_139 : f32 to vector<8x128xf32>
    %548 = arith.addf %547, %546 : vector<8x128xf32>
    %549 = arith.divf %547, %548 : vector<8x128xf32>
    %550 = vector.extract_strided_slice %549 {offsets = [0, 0], sizes = [8, 32], strides = [1, 1]} : vector<8x128xf32> to vector<8x32xf32>
    %551 = vector.extract_strided_slice %549 {offsets = [0, 32], sizes = [8, 32], strides = [1, 1]} : vector<8x128xf32> to vector<8x32xf32>
    %552 = vector.extract_strided_slice %549 {offsets = [0, 64], sizes = [8, 32], strides = [1, 1]} : vector<8x128xf32> to vector<8x32xf32>
    %cst_140 = arith.constant 2.000000e+00 : f32
    %553 = vector.broadcast %cst_140 : f32 to vector<8x32xf32>
    %554 = arith.mulf %553, %552 : vector<8x32xf32>
    %cst_141 = arith.constant 1.000000e+00 : f32
    %555 = vector.broadcast %cst_141 : f32 to vector<8x32xf32>
    %556 = arith.subf %554, %555 : vector<8x32xf32>
    %557 = vector.extract_strided_slice %549 {offsets = [0, 96], sizes = [8, 32], strides = [1, 1]} : vector<8x128xf32> to vector<8x32xf32>
    %558 = arith.mulf %551, %515 : vector<8x32xf32>
    %559 = arith.mulf %550, %556 : vector<8x32xf32>
    %560 = arith.addf %558, %559 : vector<8x32xf32>
    %561 = math.tanh %560 : vector<8x32xf32>
    %562 = arith.mulf %557, %561 : vector<8x32xf32>
    %563 = arith.truncf %562 : vector<8x32xf32> to vector<8x32xbf16>
    %cst_142 = arith.constant dense<0.000000e+00> : vector<8x128xf32>
    %564 = tpu.matmul %563, %19, %cst_142 {dimension_numbers = #tpu.dot_dimension_numbers<[1], [0], [0], [1], [0, 0, 1, 1], [], []>} : vector<8x32xbf16>, vector<32x128xbf16>, vector<8x128xf32> -> vector<8x128xf32>
    %c96 = arith.constant 96 : index
    %c0_143 = arith.constant 0 : index
    %565 = vector.load %arg12[%c96, %c0_143] : memref<160x128xf32, #tpu.memory_space<vmem>>, vector<8x128xf32>
    %566 = arith.addf %565, %541 : vector<8x128xf32>
    %567 = arith.negf %566 : vector<8x128xf32>
    %568 = math.exp %567 : vector<8x128xf32>
    %cst_144 = arith.constant 1.000000e+00 : f32
    %569 = vector.broadcast %cst_144 : f32 to vector<8x128xf32>
    %570 = arith.addf %569, %568 : vector<8x128xf32>
    %571 = arith.divf %569, %570 : vector<8x128xf32>
    %572 = vector.extract_strided_slice %571 {offsets = [0, 0], sizes = [8, 32], strides = [1, 1]} : vector<8x128xf32> to vector<8x32xf32>
    %573 = vector.extract_strided_slice %571 {offsets = [0, 32], sizes = [8, 32], strides = [1, 1]} : vector<8x128xf32> to vector<8x32xf32>
    %574 = vector.extract_strided_slice %571 {offsets = [0, 64], sizes = [8, 32], strides = [1, 1]} : vector<8x128xf32> to vector<8x32xf32>
    %cst_145 = arith.constant 2.000000e+00 : f32
    %575 = vector.broadcast %cst_145 : f32 to vector<8x32xf32>
    %576 = arith.mulf %575, %574 : vector<8x32xf32>
    %cst_146 = arith.constant 1.000000e+00 : f32
    %577 = vector.broadcast %cst_146 : f32 to vector<8x32xf32>
    %578 = arith.subf %576, %577 : vector<8x32xf32>
    %579 = vector.extract_strided_slice %571 {offsets = [0, 96], sizes = [8, 32], strides = [1, 1]} : vector<8x128xf32> to vector<8x32xf32>
    %580 = arith.mulf %573, %537 : vector<8x32xf32>
    %581 = arith.mulf %572, %578 : vector<8x32xf32>
    %582 = arith.addf %580, %581 : vector<8x32xf32>
    %583 = math.tanh %582 : vector<8x32xf32>
    %584 = arith.mulf %579, %583 : vector<8x32xf32>
    %585 = arith.truncf %584 : vector<8x32xf32> to vector<8x32xbf16>
    %cst_147 = arith.constant dense<0.000000e+00> : vector<8x128xf32>
    %586 = tpu.matmul %585, %17, %cst_147 {dimension_numbers = #tpu.dot_dimension_numbers<[1], [0], [0], [1], [0, 0, 1, 1], [], []>} : vector<8x32xbf16>, vector<32x128xbf16>, vector<8x128xf32> -> vector<8x128xf32>
    %cst_148 = arith.constant dense<0.000000e+00> : vector<8x128xf32>
    %587 = tpu.matmul %585, %18, %cst_148 {dimension_numbers = #tpu.dot_dimension_numbers<[1], [0], [0], [1], [0, 0, 1, 1], [], []>} : vector<8x32xbf16>, vector<32x128xbf16>, vector<8x128xf32> -> vector<8x128xf32>
    %588 = arith.addf %587, %564 : vector<8x128xf32>
    %589 = arith.addf %588, %22 : vector<8x128xf32>
    %590 = arith.negf %589 : vector<8x128xf32>
    %591 = math.exp %590 : vector<8x128xf32>
    %cst_149 = arith.constant 1.000000e+00 : f32
    %592 = vector.broadcast %cst_149 : f32 to vector<8x128xf32>
    %593 = arith.addf %592, %591 : vector<8x128xf32>
    %594 = arith.divf %592, %593 : vector<8x128xf32>
    %595 = vector.extract_strided_slice %594 {offsets = [0, 0], sizes = [8, 32], strides = [1, 1]} : vector<8x128xf32> to vector<8x32xf32>
    %596 = vector.extract_strided_slice %594 {offsets = [0, 32], sizes = [8, 32], strides = [1, 1]} : vector<8x128xf32> to vector<8x32xf32>
    %597 = vector.extract_strided_slice %594 {offsets = [0, 64], sizes = [8, 32], strides = [1, 1]} : vector<8x128xf32> to vector<8x32xf32>
    %cst_150 = arith.constant 2.000000e+00 : f32
    %598 = vector.broadcast %cst_150 : f32 to vector<8x32xf32>
    %599 = arith.mulf %598, %597 : vector<8x32xf32>
    %cst_151 = arith.constant 1.000000e+00 : f32
    %600 = vector.broadcast %cst_151 : f32 to vector<8x32xf32>
    %601 = arith.subf %599, %600 : vector<8x32xf32>
    %602 = vector.extract_strided_slice %594 {offsets = [0, 96], sizes = [8, 32], strides = [1, 1]} : vector<8x128xf32> to vector<8x32xf32>
    %603 = arith.mulf %596, %560 : vector<8x32xf32>
    %604 = arith.mulf %595, %601 : vector<8x32xf32>
    %605 = arith.addf %603, %604 : vector<8x32xf32>
    %606 = math.tanh %605 : vector<8x32xf32>
    %607 = arith.mulf %602, %606 : vector<8x32xf32>
    %608 = arith.truncf %607 : vector<8x32xf32> to vector<8x32xbf16>
    %cst_152 = arith.constant dense<0.000000e+00> : vector<8x128xf32>
    %609 = tpu.matmul %608, %19, %cst_152 {dimension_numbers = #tpu.dot_dimension_numbers<[1], [0], [0], [1], [0, 0, 1, 1], [], []>} : vector<8x32xbf16>, vector<32x128xbf16>, vector<8x128xf32> -> vector<8x128xf32>
    %c104 = arith.constant 104 : index
    %c0_153 = arith.constant 0 : index
    %610 = vector.load %arg12[%c104, %c0_153] : memref<160x128xf32, #tpu.memory_space<vmem>>, vector<8x128xf32>
    %611 = arith.addf %610, %586 : vector<8x128xf32>
    %612 = arith.negf %611 : vector<8x128xf32>
    %613 = math.exp %612 : vector<8x128xf32>
    %cst_154 = arith.constant 1.000000e+00 : f32
    %614 = vector.broadcast %cst_154 : f32 to vector<8x128xf32>
    %615 = arith.addf %614, %613 : vector<8x128xf32>
    %616 = arith.divf %614, %615 : vector<8x128xf32>
    %617 = vector.extract_strided_slice %616 {offsets = [0, 0], sizes = [8, 32], strides = [1, 1]} : vector<8x128xf32> to vector<8x32xf32>
    %618 = vector.extract_strided_slice %616 {offsets = [0, 32], sizes = [8, 32], strides = [1, 1]} : vector<8x128xf32> to vector<8x32xf32>
    %619 = vector.extract_strided_slice %616 {offsets = [0, 64], sizes = [8, 32], strides = [1, 1]} : vector<8x128xf32> to vector<8x32xf32>
    %cst_155 = arith.constant 2.000000e+00 : f32
    %620 = vector.broadcast %cst_155 : f32 to vector<8x32xf32>
    %621 = arith.mulf %620, %619 : vector<8x32xf32>
    %cst_156 = arith.constant 1.000000e+00 : f32
    %622 = vector.broadcast %cst_156 : f32 to vector<8x32xf32>
    %623 = arith.subf %621, %622 : vector<8x32xf32>
    %624 = vector.extract_strided_slice %616 {offsets = [0, 96], sizes = [8, 32], strides = [1, 1]} : vector<8x128xf32> to vector<8x32xf32>
    %625 = arith.mulf %618, %582 : vector<8x32xf32>
    %626 = arith.mulf %617, %623 : vector<8x32xf32>
    %627 = arith.addf %625, %626 : vector<8x32xf32>
    %628 = math.tanh %627 : vector<8x32xf32>
    %629 = arith.mulf %624, %628 : vector<8x32xf32>
    %630 = arith.truncf %629 : vector<8x32xf32> to vector<8x32xbf16>
    %cst_157 = arith.constant dense<0.000000e+00> : vector<8x128xf32>
    %631 = tpu.matmul %630, %17, %cst_157 {dimension_numbers = #tpu.dot_dimension_numbers<[1], [0], [0], [1], [0, 0, 1, 1], [], []>} : vector<8x32xbf16>, vector<32x128xbf16>, vector<8x128xf32> -> vector<8x128xf32>
    %cst_158 = arith.constant dense<0.000000e+00> : vector<8x128xf32>
    %632 = tpu.matmul %630, %18, %cst_158 {dimension_numbers = #tpu.dot_dimension_numbers<[1], [0], [0], [1], [0, 0, 1, 1], [], []>} : vector<8x32xbf16>, vector<32x128xbf16>, vector<8x128xf32> -> vector<8x128xf32>
    %633 = arith.addf %632, %609 : vector<8x128xf32>
    %634 = arith.addf %633, %22 : vector<8x128xf32>
    %635 = arith.negf %634 : vector<8x128xf32>
    %636 = math.exp %635 : vector<8x128xf32>
    %cst_159 = arith.constant 1.000000e+00 : f32
    %637 = vector.broadcast %cst_159 : f32 to vector<8x128xf32>
    %638 = arith.addf %637, %636 : vector<8x128xf32>
    %639 = arith.divf %637, %638 : vector<8x128xf32>
    %640 = vector.extract_strided_slice %639 {offsets = [0, 0], sizes = [8, 32], strides = [1, 1]} : vector<8x128xf32> to vector<8x32xf32>
    %641 = vector.extract_strided_slice %639 {offsets = [0, 32], sizes = [8, 32], strides = [1, 1]} : vector<8x128xf32> to vector<8x32xf32>
    %642 = vector.extract_strided_slice %639 {offsets = [0, 64], sizes = [8, 32], strides = [1, 1]} : vector<8x128xf32> to vector<8x32xf32>
    %cst_160 = arith.constant 2.000000e+00 : f32
    %643 = vector.broadcast %cst_160 : f32 to vector<8x32xf32>
    %644 = arith.mulf %643, %642 : vector<8x32xf32>
    %cst_161 = arith.constant 1.000000e+00 : f32
    %645 = vector.broadcast %cst_161 : f32 to vector<8x32xf32>
    %646 = arith.subf %644, %645 : vector<8x32xf32>
    %647 = vector.extract_strided_slice %639 {offsets = [0, 96], sizes = [8, 32], strides = [1, 1]} : vector<8x128xf32> to vector<8x32xf32>
    %648 = arith.mulf %641, %605 : vector<8x32xf32>
    %649 = arith.mulf %640, %646 : vector<8x32xf32>
    %650 = arith.addf %648, %649 : vector<8x32xf32>
    %651 = math.tanh %650 : vector<8x32xf32>
    %652 = arith.mulf %647, %651 : vector<8x32xf32>
    %653 = arith.truncf %652 : vector<8x32xf32> to vector<8x32xbf16>
    %cst_162 = arith.constant dense<0.000000e+00> : vector<8x128xf32>
    %654 = tpu.matmul %653, %19, %cst_162 {dimension_numbers = #tpu.dot_dimension_numbers<[1], [0], [0], [1], [0, 0, 1, 1], [], []>} : vector<8x32xbf16>, vector<32x128xbf16>, vector<8x128xf32> -> vector<8x128xf32>
    %c112 = arith.constant 112 : index
    %c0_163 = arith.constant 0 : index
    %655 = vector.load %arg12[%c112, %c0_163] : memref<160x128xf32, #tpu.memory_space<vmem>>, vector<8x128xf32>
    %656 = arith.addf %655, %631 : vector<8x128xf32>
    %657 = arith.negf %656 : vector<8x128xf32>
    %658 = math.exp %657 : vector<8x128xf32>
    %cst_164 = arith.constant 1.000000e+00 : f32
    %659 = vector.broadcast %cst_164 : f32 to vector<8x128xf32>
    %660 = arith.addf %659, %658 : vector<8x128xf32>
    %661 = arith.divf %659, %660 : vector<8x128xf32>
    %662 = vector.extract_strided_slice %661 {offsets = [0, 0], sizes = [8, 32], strides = [1, 1]} : vector<8x128xf32> to vector<8x32xf32>
    %663 = vector.extract_strided_slice %661 {offsets = [0, 32], sizes = [8, 32], strides = [1, 1]} : vector<8x128xf32> to vector<8x32xf32>
    %664 = vector.extract_strided_slice %661 {offsets = [0, 64], sizes = [8, 32], strides = [1, 1]} : vector<8x128xf32> to vector<8x32xf32>
    %cst_165 = arith.constant 2.000000e+00 : f32
    %665 = vector.broadcast %cst_165 : f32 to vector<8x32xf32>
    %666 = arith.mulf %665, %664 : vector<8x32xf32>
    %cst_166 = arith.constant 1.000000e+00 : f32
    %667 = vector.broadcast %cst_166 : f32 to vector<8x32xf32>
    %668 = arith.subf %666, %667 : vector<8x32xf32>
    %669 = vector.extract_strided_slice %661 {offsets = [0, 96], sizes = [8, 32], strides = [1, 1]} : vector<8x128xf32> to vector<8x32xf32>
    %670 = arith.mulf %663, %627 : vector<8x32xf32>
    %671 = arith.mulf %662, %668 : vector<8x32xf32>
    %672 = arith.addf %670, %671 : vector<8x32xf32>
    %673 = math.tanh %672 : vector<8x32xf32>
    %674 = arith.mulf %669, %673 : vector<8x32xf32>
    %675 = arith.truncf %674 : vector<8x32xf32> to vector<8x32xbf16>
    %cst_167 = arith.constant dense<0.000000e+00> : vector<8x128xf32>
    %676 = tpu.matmul %675, %17, %cst_167 {dimension_numbers = #tpu.dot_dimension_numbers<[1], [0], [0], [1], [0, 0, 1, 1], [], []>} : vector<8x32xbf16>, vector<32x128xbf16>, vector<8x128xf32> -> vector<8x128xf32>
    %cst_168 = arith.constant dense<0.000000e+00> : vector<8x128xf32>
    %677 = tpu.matmul %675, %18, %cst_168 {dimension_numbers = #tpu.dot_dimension_numbers<[1], [0], [0], [1], [0, 0, 1, 1], [], []>} : vector<8x32xbf16>, vector<32x128xbf16>, vector<8x128xf32> -> vector<8x128xf32>
    %678 = arith.addf %677, %654 : vector<8x128xf32>
    %679 = arith.addf %678, %22 : vector<8x128xf32>
    %680 = arith.negf %679 : vector<8x128xf32>
    %681 = math.exp %680 : vector<8x128xf32>
    %cst_169 = arith.constant 1.000000e+00 : f32
    %682 = vector.broadcast %cst_169 : f32 to vector<8x128xf32>
    %683 = arith.addf %682, %681 : vector<8x128xf32>
    %684 = arith.divf %682, %683 : vector<8x128xf32>
    %685 = vector.extract_strided_slice %684 {offsets = [0, 0], sizes = [8, 32], strides = [1, 1]} : vector<8x128xf32> to vector<8x32xf32>
    %686 = vector.extract_strided_slice %684 {offsets = [0, 32], sizes = [8, 32], strides = [1, 1]} : vector<8x128xf32> to vector<8x32xf32>
    %687 = vector.extract_strided_slice %684 {offsets = [0, 64], sizes = [8, 32], strides = [1, 1]} : vector<8x128xf32> to vector<8x32xf32>
    %cst_170 = arith.constant 2.000000e+00 : f32
    %688 = vector.broadcast %cst_170 : f32 to vector<8x32xf32>
    %689 = arith.mulf %688, %687 : vector<8x32xf32>
    %cst_171 = arith.constant 1.000000e+00 : f32
    %690 = vector.broadcast %cst_171 : f32 to vector<8x32xf32>
    %691 = arith.subf %689, %690 : vector<8x32xf32>
    %692 = vector.extract_strided_slice %684 {offsets = [0, 96], sizes = [8, 32], strides = [1, 1]} : vector<8x128xf32> to vector<8x32xf32>
    %693 = arith.mulf %686, %650 : vector<8x32xf32>
    %694 = arith.mulf %685, %691 : vector<8x32xf32>
    %695 = arith.addf %693, %694 : vector<8x32xf32>
    %696 = math.tanh %695 : vector<8x32xf32>
    %697 = arith.mulf %692, %696 : vector<8x32xf32>
    %698 = arith.truncf %697 : vector<8x32xf32> to vector<8x32xbf16>
    %cst_172 = arith.constant dense<0.000000e+00> : vector<8x128xf32>
    %699 = tpu.matmul %698, %19, %cst_172 {dimension_numbers = #tpu.dot_dimension_numbers<[1], [0], [0], [1], [0, 0, 1, 1], [], []>} : vector<8x32xbf16>, vector<32x128xbf16>, vector<8x128xf32> -> vector<8x128xf32>
    %c120 = arith.constant 120 : index
    %c0_173 = arith.constant 0 : index
    %700 = vector.load %arg12[%c120, %c0_173] : memref<160x128xf32, #tpu.memory_space<vmem>>, vector<8x128xf32>
    %701 = arith.addf %700, %676 : vector<8x128xf32>
    %702 = arith.negf %701 : vector<8x128xf32>
    %703 = math.exp %702 : vector<8x128xf32>
    %cst_174 = arith.constant 1.000000e+00 : f32
    %704 = vector.broadcast %cst_174 : f32 to vector<8x128xf32>
    %705 = arith.addf %704, %703 : vector<8x128xf32>
    %706 = arith.divf %704, %705 : vector<8x128xf32>
    %707 = vector.extract_strided_slice %706 {offsets = [0, 0], sizes = [8, 32], strides = [1, 1]} : vector<8x128xf32> to vector<8x32xf32>
    %708 = vector.extract_strided_slice %706 {offsets = [0, 32], sizes = [8, 32], strides = [1, 1]} : vector<8x128xf32> to vector<8x32xf32>
    %709 = vector.extract_strided_slice %706 {offsets = [0, 64], sizes = [8, 32], strides = [1, 1]} : vector<8x128xf32> to vector<8x32xf32>
    %cst_175 = arith.constant 2.000000e+00 : f32
    %710 = vector.broadcast %cst_175 : f32 to vector<8x32xf32>
    %711 = arith.mulf %710, %709 : vector<8x32xf32>
    %cst_176 = arith.constant 1.000000e+00 : f32
    %712 = vector.broadcast %cst_176 : f32 to vector<8x32xf32>
    %713 = arith.subf %711, %712 : vector<8x32xf32>
    %714 = vector.extract_strided_slice %706 {offsets = [0, 96], sizes = [8, 32], strides = [1, 1]} : vector<8x128xf32> to vector<8x32xf32>
    %715 = arith.mulf %708, %672 : vector<8x32xf32>
    %716 = arith.mulf %707, %713 : vector<8x32xf32>
    %717 = arith.addf %715, %716 : vector<8x32xf32>
    %718 = math.tanh %717 : vector<8x32xf32>
    %719 = arith.mulf %714, %718 : vector<8x32xf32>
    %720 = arith.truncf %719 : vector<8x32xf32> to vector<8x32xbf16>
    %cst_177 = arith.constant dense<0.000000e+00> : vector<8x128xf32>
    %721 = tpu.matmul %720, %17, %cst_177 {dimension_numbers = #tpu.dot_dimension_numbers<[1], [0], [0], [1], [0, 0, 1, 1], [], []>} : vector<8x32xbf16>, vector<32x128xbf16>, vector<8x128xf32> -> vector<8x128xf32>
    %cst_178 = arith.constant dense<0.000000e+00> : vector<8x128xf32>
    %722 = tpu.matmul %720, %18, %cst_178 {dimension_numbers = #tpu.dot_dimension_numbers<[1], [0], [0], [1], [0, 0, 1, 1], [], []>} : vector<8x32xbf16>, vector<32x128xbf16>, vector<8x128xf32> -> vector<8x128xf32>
    %723 = arith.addf %722, %699 : vector<8x128xf32>
    %724 = arith.addf %723, %22 : vector<8x128xf32>
    %725 = arith.negf %724 : vector<8x128xf32>
    %726 = math.exp %725 : vector<8x128xf32>
    %cst_179 = arith.constant 1.000000e+00 : f32
    %727 = vector.broadcast %cst_179 : f32 to vector<8x128xf32>
    %728 = arith.addf %727, %726 : vector<8x128xf32>
    %729 = arith.divf %727, %728 : vector<8x128xf32>
    %730 = vector.extract_strided_slice %729 {offsets = [0, 0], sizes = [8, 32], strides = [1, 1]} : vector<8x128xf32> to vector<8x32xf32>
    %731 = vector.extract_strided_slice %729 {offsets = [0, 32], sizes = [8, 32], strides = [1, 1]} : vector<8x128xf32> to vector<8x32xf32>
    %732 = vector.extract_strided_slice %729 {offsets = [0, 64], sizes = [8, 32], strides = [1, 1]} : vector<8x128xf32> to vector<8x32xf32>
    %cst_180 = arith.constant 2.000000e+00 : f32
    %733 = vector.broadcast %cst_180 : f32 to vector<8x32xf32>
    %734 = arith.mulf %733, %732 : vector<8x32xf32>
    %cst_181 = arith.constant 1.000000e+00 : f32
    %735 = vector.broadcast %cst_181 : f32 to vector<8x32xf32>
    %736 = arith.subf %734, %735 : vector<8x32xf32>
    %737 = vector.extract_strided_slice %729 {offsets = [0, 96], sizes = [8, 32], strides = [1, 1]} : vector<8x128xf32> to vector<8x32xf32>
    %738 = arith.mulf %731, %695 : vector<8x32xf32>
    %739 = arith.mulf %730, %736 : vector<8x32xf32>
    %740 = arith.addf %738, %739 : vector<8x32xf32>
    %741 = math.tanh %740 : vector<8x32xf32>
    %742 = arith.mulf %737, %741 : vector<8x32xf32>
    %743 = arith.truncf %742 : vector<8x32xf32> to vector<8x32xbf16>
    %cst_182 = arith.constant dense<0.000000e+00> : vector<8x128xf32>
    %744 = tpu.matmul %743, %19, %cst_182 {dimension_numbers = #tpu.dot_dimension_numbers<[1], [0], [0], [1], [0, 0, 1, 1], [], []>} : vector<8x32xbf16>, vector<32x128xbf16>, vector<8x128xf32> -> vector<8x128xf32>
    %c128 = arith.constant 128 : index
    %c0_183 = arith.constant 0 : index
    %745 = vector.load %arg12[%c128, %c0_183] : memref<160x128xf32, #tpu.memory_space<vmem>>, vector<8x128xf32>
    %746 = arith.addf %745, %721 : vector<8x128xf32>
    %747 = arith.negf %746 : vector<8x128xf32>
    %748 = math.exp %747 : vector<8x128xf32>
    %cst_184 = arith.constant 1.000000e+00 : f32
    %749 = vector.broadcast %cst_184 : f32 to vector<8x128xf32>
    %750 = arith.addf %749, %748 : vector<8x128xf32>
    %751 = arith.divf %749, %750 : vector<8x128xf32>
    %752 = vector.extract_strided_slice %751 {offsets = [0, 0], sizes = [8, 32], strides = [1, 1]} : vector<8x128xf32> to vector<8x32xf32>
    %753 = vector.extract_strided_slice %751 {offsets = [0, 32], sizes = [8, 32], strides = [1, 1]} : vector<8x128xf32> to vector<8x32xf32>
    %754 = vector.extract_strided_slice %751 {offsets = [0, 64], sizes = [8, 32], strides = [1, 1]} : vector<8x128xf32> to vector<8x32xf32>
    %cst_185 = arith.constant 2.000000e+00 : f32
    %755 = vector.broadcast %cst_185 : f32 to vector<8x32xf32>
    %756 = arith.mulf %755, %754 : vector<8x32xf32>
    %cst_186 = arith.constant 1.000000e+00 : f32
    %757 = vector.broadcast %cst_186 : f32 to vector<8x32xf32>
    %758 = arith.subf %756, %757 : vector<8x32xf32>
    %759 = vector.extract_strided_slice %751 {offsets = [0, 96], sizes = [8, 32], strides = [1, 1]} : vector<8x128xf32> to vector<8x32xf32>
    %760 = arith.mulf %753, %717 : vector<8x32xf32>
    %761 = arith.mulf %752, %758 : vector<8x32xf32>
    %762 = arith.addf %760, %761 : vector<8x32xf32>
    %763 = math.tanh %762 : vector<8x32xf32>
    %764 = arith.mulf %759, %763 : vector<8x32xf32>
    %765 = arith.truncf %764 : vector<8x32xf32> to vector<8x32xbf16>
    %cst_187 = arith.constant dense<0.000000e+00> : vector<8x128xf32>
    %766 = tpu.matmul %765, %17, %cst_187 {dimension_numbers = #tpu.dot_dimension_numbers<[1], [0], [0], [1], [0, 0, 1, 1], [], []>} : vector<8x32xbf16>, vector<32x128xbf16>, vector<8x128xf32> -> vector<8x128xf32>
    %cst_188 = arith.constant dense<0.000000e+00> : vector<8x128xf32>
    %767 = tpu.matmul %765, %18, %cst_188 {dimension_numbers = #tpu.dot_dimension_numbers<[1], [0], [0], [1], [0, 0, 1, 1], [], []>} : vector<8x32xbf16>, vector<32x128xbf16>, vector<8x128xf32> -> vector<8x128xf32>
    %768 = arith.addf %767, %744 : vector<8x128xf32>
    %769 = arith.addf %768, %22 : vector<8x128xf32>
    %770 = arith.negf %769 : vector<8x128xf32>
    %771 = math.exp %770 : vector<8x128xf32>
    %cst_189 = arith.constant 1.000000e+00 : f32
    %772 = vector.broadcast %cst_189 : f32 to vector<8x128xf32>
    %773 = arith.addf %772, %771 : vector<8x128xf32>
    %774 = arith.divf %772, %773 : vector<8x128xf32>
    %775 = vector.extract_strided_slice %774 {offsets = [0, 0], sizes = [8, 32], strides = [1, 1]} : vector<8x128xf32> to vector<8x32xf32>
    %776 = vector.extract_strided_slice %774 {offsets = [0, 32], sizes = [8, 32], strides = [1, 1]} : vector<8x128xf32> to vector<8x32xf32>
    %777 = vector.extract_strided_slice %774 {offsets = [0, 64], sizes = [8, 32], strides = [1, 1]} : vector<8x128xf32> to vector<8x32xf32>
    %cst_190 = arith.constant 2.000000e+00 : f32
    %778 = vector.broadcast %cst_190 : f32 to vector<8x32xf32>
    %779 = arith.mulf %778, %777 : vector<8x32xf32>
    %cst_191 = arith.constant 1.000000e+00 : f32
    %780 = vector.broadcast %cst_191 : f32 to vector<8x32xf32>
    %781 = arith.subf %779, %780 : vector<8x32xf32>
    %782 = vector.extract_strided_slice %774 {offsets = [0, 96], sizes = [8, 32], strides = [1, 1]} : vector<8x128xf32> to vector<8x32xf32>
    %783 = arith.mulf %776, %740 : vector<8x32xf32>
    %784 = arith.mulf %775, %781 : vector<8x32xf32>
    %785 = arith.addf %783, %784 : vector<8x32xf32>
    %786 = math.tanh %785 : vector<8x32xf32>
    %787 = arith.mulf %782, %786 : vector<8x32xf32>
    %788 = arith.truncf %787 : vector<8x32xf32> to vector<8x32xbf16>
    %cst_192 = arith.constant dense<0.000000e+00> : vector<8x128xf32>
    %789 = tpu.matmul %788, %19, %cst_192 {dimension_numbers = #tpu.dot_dimension_numbers<[1], [0], [0], [1], [0, 0, 1, 1], [], []>} : vector<8x32xbf16>, vector<32x128xbf16>, vector<8x128xf32> -> vector<8x128xf32>
    %c136 = arith.constant 136 : index
    %c0_193 = arith.constant 0 : index
    %790 = vector.load %arg12[%c136, %c0_193] : memref<160x128xf32, #tpu.memory_space<vmem>>, vector<8x128xf32>
    %791 = arith.addf %790, %766 : vector<8x128xf32>
    %792 = arith.negf %791 : vector<8x128xf32>
    %793 = math.exp %792 : vector<8x128xf32>
    %cst_194 = arith.constant 1.000000e+00 : f32
    %794 = vector.broadcast %cst_194 : f32 to vector<8x128xf32>
    %795 = arith.addf %794, %793 : vector<8x128xf32>
    %796 = arith.divf %794, %795 : vector<8x128xf32>
    %797 = vector.extract_strided_slice %796 {offsets = [0, 0], sizes = [8, 32], strides = [1, 1]} : vector<8x128xf32> to vector<8x32xf32>
    %798 = vector.extract_strided_slice %796 {offsets = [0, 32], sizes = [8, 32], strides = [1, 1]} : vector<8x128xf32> to vector<8x32xf32>
    %799 = vector.extract_strided_slice %796 {offsets = [0, 64], sizes = [8, 32], strides = [1, 1]} : vector<8x128xf32> to vector<8x32xf32>
    %cst_195 = arith.constant 2.000000e+00 : f32
    %800 = vector.broadcast %cst_195 : f32 to vector<8x32xf32>
    %801 = arith.mulf %800, %799 : vector<8x32xf32>
    %cst_196 = arith.constant 1.000000e+00 : f32
    %802 = vector.broadcast %cst_196 : f32 to vector<8x32xf32>
    %803 = arith.subf %801, %802 : vector<8x32xf32>
    %804 = vector.extract_strided_slice %796 {offsets = [0, 96], sizes = [8, 32], strides = [1, 1]} : vector<8x128xf32> to vector<8x32xf32>
    %805 = arith.mulf %798, %762 : vector<8x32xf32>
    %806 = arith.mulf %797, %803 : vector<8x32xf32>
    %807 = arith.addf %805, %806 : vector<8x32xf32>
    %808 = math.tanh %807 : vector<8x32xf32>
    %809 = arith.mulf %804, %808 : vector<8x32xf32>
    %810 = arith.truncf %809 : vector<8x32xf32> to vector<8x32xbf16>
    %cst_197 = arith.constant dense<0.000000e+00> : vector<8x128xf32>
    %811 = tpu.matmul %810, %17, %cst_197 {dimension_numbers = #tpu.dot_dimension_numbers<[1], [0], [0], [1], [0, 0, 1, 1], [], []>} : vector<8x32xbf16>, vector<32x128xbf16>, vector<8x128xf32> -> vector<8x128xf32>
    %cst_198 = arith.constant dense<0.000000e+00> : vector<8x128xf32>
    %812 = tpu.matmul %810, %18, %cst_198 {dimension_numbers = #tpu.dot_dimension_numbers<[1], [0], [0], [1], [0, 0, 1, 1], [], []>} : vector<8x32xbf16>, vector<32x128xbf16>, vector<8x128xf32> -> vector<8x128xf32>
    %813 = arith.addf %812, %789 : vector<8x128xf32>
    %814 = arith.addf %813, %22 : vector<8x128xf32>
    %815 = arith.negf %814 : vector<8x128xf32>
    %816 = math.exp %815 : vector<8x128xf32>
    %cst_199 = arith.constant 1.000000e+00 : f32
    %817 = vector.broadcast %cst_199 : f32 to vector<8x128xf32>
    %818 = arith.addf %817, %816 : vector<8x128xf32>
    %819 = arith.divf %817, %818 : vector<8x128xf32>
    %820 = vector.extract_strided_slice %819 {offsets = [0, 0], sizes = [8, 32], strides = [1, 1]} : vector<8x128xf32> to vector<8x32xf32>
    %821 = vector.extract_strided_slice %819 {offsets = [0, 32], sizes = [8, 32], strides = [1, 1]} : vector<8x128xf32> to vector<8x32xf32>
    %822 = vector.extract_strided_slice %819 {offsets = [0, 64], sizes = [8, 32], strides = [1, 1]} : vector<8x128xf32> to vector<8x32xf32>
    %cst_200 = arith.constant 2.000000e+00 : f32
    %823 = vector.broadcast %cst_200 : f32 to vector<8x32xf32>
    %824 = arith.mulf %823, %822 : vector<8x32xf32>
    %cst_201 = arith.constant 1.000000e+00 : f32
    %825 = vector.broadcast %cst_201 : f32 to vector<8x32xf32>
    %826 = arith.subf %824, %825 : vector<8x32xf32>
    %827 = vector.extract_strided_slice %819 {offsets = [0, 96], sizes = [8, 32], strides = [1, 1]} : vector<8x128xf32> to vector<8x32xf32>
    %828 = arith.mulf %821, %785 : vector<8x32xf32>
    %829 = arith.mulf %820, %826 : vector<8x32xf32>
    %830 = arith.addf %828, %829 : vector<8x32xf32>
    %831 = math.tanh %830 : vector<8x32xf32>
    %832 = arith.mulf %827, %831 : vector<8x32xf32>
    %833 = arith.truncf %832 : vector<8x32xf32> to vector<8x32xbf16>
    %cst_202 = arith.constant dense<0.000000e+00> : vector<8x128xf32>
    %834 = tpu.matmul %833, %19, %cst_202 {dimension_numbers = #tpu.dot_dimension_numbers<[1], [0], [0], [1], [0, 0, 1, 1], [], []>} : vector<8x32xbf16>, vector<32x128xbf16>, vector<8x128xf32> -> vector<8x128xf32>
    %c144 = arith.constant 144 : index
    %c0_203 = arith.constant 0 : index
    %835 = vector.load %arg12[%c144, %c0_203] : memref<160x128xf32, #tpu.memory_space<vmem>>, vector<8x128xf32>
    %836 = arith.addf %835, %811 : vector<8x128xf32>
    %837 = arith.negf %836 : vector<8x128xf32>
    %838 = math.exp %837 : vector<8x128xf32>
    %cst_204 = arith.constant 1.000000e+00 : f32
    %839 = vector.broadcast %cst_204 : f32 to vector<8x128xf32>
    %840 = arith.addf %839, %838 : vector<8x128xf32>
    %841 = arith.divf %839, %840 : vector<8x128xf32>
    %842 = vector.extract_strided_slice %841 {offsets = [0, 0], sizes = [8, 32], strides = [1, 1]} : vector<8x128xf32> to vector<8x32xf32>
    %843 = vector.extract_strided_slice %841 {offsets = [0, 32], sizes = [8, 32], strides = [1, 1]} : vector<8x128xf32> to vector<8x32xf32>
    %844 = vector.extract_strided_slice %841 {offsets = [0, 64], sizes = [8, 32], strides = [1, 1]} : vector<8x128xf32> to vector<8x32xf32>
    %cst_205 = arith.constant 2.000000e+00 : f32
    %845 = vector.broadcast %cst_205 : f32 to vector<8x32xf32>
    %846 = arith.mulf %845, %844 : vector<8x32xf32>
    %cst_206 = arith.constant 1.000000e+00 : f32
    %847 = vector.broadcast %cst_206 : f32 to vector<8x32xf32>
    %848 = arith.subf %846, %847 : vector<8x32xf32>
    %849 = vector.extract_strided_slice %841 {offsets = [0, 96], sizes = [8, 32], strides = [1, 1]} : vector<8x128xf32> to vector<8x32xf32>
    %850 = arith.mulf %843, %807 : vector<8x32xf32>
    %851 = arith.mulf %842, %848 : vector<8x32xf32>
    %852 = arith.addf %850, %851 : vector<8x32xf32>
    %853 = math.tanh %852 : vector<8x32xf32>
    %854 = arith.mulf %849, %853 : vector<8x32xf32>
    %855 = arith.truncf %854 : vector<8x32xf32> to vector<8x32xbf16>
    %cst_207 = arith.constant dense<0.000000e+00> : vector<8x128xf32>
    %856 = tpu.matmul %855, %17, %cst_207 {dimension_numbers = #tpu.dot_dimension_numbers<[1], [0], [0], [1], [0, 0, 1, 1], [], []>} : vector<8x32xbf16>, vector<32x128xbf16>, vector<8x128xf32> -> vector<8x128xf32>
    %cst_208 = arith.constant dense<0.000000e+00> : vector<8x128xf32>
    %857 = tpu.matmul %855, %18, %cst_208 {dimension_numbers = #tpu.dot_dimension_numbers<[1], [0], [0], [1], [0, 0, 1, 1], [], []>} : vector<8x32xbf16>, vector<32x128xbf16>, vector<8x128xf32> -> vector<8x128xf32>
    %858 = arith.addf %857, %834 : vector<8x128xf32>
    %859 = arith.addf %858, %22 : vector<8x128xf32>
    %860 = arith.negf %859 : vector<8x128xf32>
    %861 = math.exp %860 : vector<8x128xf32>
    %cst_209 = arith.constant 1.000000e+00 : f32
    %862 = vector.broadcast %cst_209 : f32 to vector<8x128xf32>
    %863 = arith.addf %862, %861 : vector<8x128xf32>
    %864 = arith.divf %862, %863 : vector<8x128xf32>
    %865 = vector.extract_strided_slice %864 {offsets = [0, 0], sizes = [8, 32], strides = [1, 1]} : vector<8x128xf32> to vector<8x32xf32>
    %866 = vector.extract_strided_slice %864 {offsets = [0, 32], sizes = [8, 32], strides = [1, 1]} : vector<8x128xf32> to vector<8x32xf32>
    %867 = vector.extract_strided_slice %864 {offsets = [0, 64], sizes = [8, 32], strides = [1, 1]} : vector<8x128xf32> to vector<8x32xf32>
    %cst_210 = arith.constant 2.000000e+00 : f32
    %868 = vector.broadcast %cst_210 : f32 to vector<8x32xf32>
    %869 = arith.mulf %868, %867 : vector<8x32xf32>
    %cst_211 = arith.constant 1.000000e+00 : f32
    %870 = vector.broadcast %cst_211 : f32 to vector<8x32xf32>
    %871 = arith.subf %869, %870 : vector<8x32xf32>
    %872 = vector.extract_strided_slice %864 {offsets = [0, 96], sizes = [8, 32], strides = [1, 1]} : vector<8x128xf32> to vector<8x32xf32>
    %873 = arith.mulf %866, %830 : vector<8x32xf32>
    %874 = arith.mulf %865, %871 : vector<8x32xf32>
    %875 = arith.addf %873, %874 : vector<8x32xf32>
    %876 = math.tanh %875 : vector<8x32xf32>
    %877 = arith.mulf %872, %876 : vector<8x32xf32>
    %878 = arith.truncf %877 : vector<8x32xf32> to vector<8x32xbf16>
    %cst_212 = arith.constant dense<0.000000e+00> : vector<8x128xf32>
    %879 = tpu.matmul %878, %19, %cst_212 {dimension_numbers = #tpu.dot_dimension_numbers<[1], [0], [0], [1], [0, 0, 1, 1], [], []>} : vector<8x32xbf16>, vector<32x128xbf16>, vector<8x128xf32> -> vector<8x128xf32>
    %c152 = arith.constant 152 : index
    %c0_213 = arith.constant 0 : index
    %880 = vector.load %arg12[%c152, %c0_213] : memref<160x128xf32, #tpu.memory_space<vmem>>, vector<8x128xf32>
    %881 = arith.addf %880, %856 : vector<8x128xf32>
    %882 = arith.negf %881 : vector<8x128xf32>
    %883 = math.exp %882 : vector<8x128xf32>
    %cst_214 = arith.constant 1.000000e+00 : f32
    %884 = vector.broadcast %cst_214 : f32 to vector<8x128xf32>
    %885 = arith.addf %884, %883 : vector<8x128xf32>
    %886 = arith.divf %884, %885 : vector<8x128xf32>
    %887 = vector.extract_strided_slice %886 {offsets = [0, 0], sizes = [8, 32], strides = [1, 1]} : vector<8x128xf32> to vector<8x32xf32>
    %888 = vector.extract_strided_slice %886 {offsets = [0, 32], sizes = [8, 32], strides = [1, 1]} : vector<8x128xf32> to vector<8x32xf32>
    %889 = vector.extract_strided_slice %886 {offsets = [0, 64], sizes = [8, 32], strides = [1, 1]} : vector<8x128xf32> to vector<8x32xf32>
    %cst_215 = arith.constant 2.000000e+00 : f32
    %890 = vector.broadcast %cst_215 : f32 to vector<8x32xf32>
    %891 = arith.mulf %890, %889 : vector<8x32xf32>
    %cst_216 = arith.constant 1.000000e+00 : f32
    %892 = vector.broadcast %cst_216 : f32 to vector<8x32xf32>
    %893 = arith.subf %891, %892 : vector<8x32xf32>
    %894 = vector.extract_strided_slice %886 {offsets = [0, 96], sizes = [8, 32], strides = [1, 1]} : vector<8x128xf32> to vector<8x32xf32>
    %895 = arith.mulf %888, %852 : vector<8x32xf32>
    %896 = arith.mulf %887, %893 : vector<8x32xf32>
    %897 = arith.addf %895, %896 : vector<8x32xf32>
    %898 = math.tanh %897 : vector<8x32xf32>
    %899 = arith.mulf %894, %898 : vector<8x32xf32>
    %900 = arith.truncf %899 : vector<8x32xf32> to vector<8x32xbf16>
    %cst_217 = arith.constant dense<0.000000e+00> : vector<8x128xf32>
    %901 = tpu.matmul %900, %18, %cst_217 {dimension_numbers = #tpu.dot_dimension_numbers<[1], [0], [0], [1], [0, 0, 1, 1], [], []>} : vector<8x32xbf16>, vector<32x128xbf16>, vector<8x128xf32> -> vector<8x128xf32>
    %902 = arith.addf %901, %879 : vector<8x128xf32>
    %903 = arith.addf %902, %22 : vector<8x128xf32>
    %904 = arith.negf %903 : vector<8x128xf32>
    %905 = math.exp %904 : vector<8x128xf32>
    %cst_218 = arith.constant 1.000000e+00 : f32
    %906 = vector.broadcast %cst_218 : f32 to vector<8x128xf32>
    %907 = arith.addf %906, %905 : vector<8x128xf32>
    %908 = arith.divf %906, %907 : vector<8x128xf32>
    %909 = vector.extract_strided_slice %908 {offsets = [0, 0], sizes = [8, 32], strides = [1, 1]} : vector<8x128xf32> to vector<8x32xf32>
    %910 = vector.extract_strided_slice %908 {offsets = [0, 32], sizes = [8, 32], strides = [1, 1]} : vector<8x128xf32> to vector<8x32xf32>
    %911 = vector.extract_strided_slice %908 {offsets = [0, 64], sizes = [8, 32], strides = [1, 1]} : vector<8x128xf32> to vector<8x32xf32>
    %cst_219 = arith.constant 2.000000e+00 : f32
    %912 = vector.broadcast %cst_219 : f32 to vector<8x32xf32>
    %913 = arith.mulf %912, %911 : vector<8x32xf32>
    %cst_220 = arith.constant 1.000000e+00 : f32
    %914 = vector.broadcast %cst_220 : f32 to vector<8x32xf32>
    %915 = arith.subf %913, %914 : vector<8x32xf32>
    %916 = vector.extract_strided_slice %908 {offsets = [0, 96], sizes = [8, 32], strides = [1, 1]} : vector<8x128xf32> to vector<8x32xf32>
    %917 = arith.mulf %910, %875 : vector<8x32xf32>
    %918 = arith.mulf %909, %915 : vector<8x32xf32>
    %919 = arith.addf %917, %918 : vector<8x32xf32>
    %920 = math.tanh %919 : vector<8x32xf32>
    %921 = arith.mulf %916, %920 : vector<8x32xf32>
    %c0_221 = arith.constant 0 : index
    %c0_222 = arith.constant 0 : index
    %922 = vector.load %arg9[%c0_221, %c0_222] : memref<1x64xf32, #tpu.memory_space<vmem>>, vector<1x64xf32>
    %923 = vector.extract_strided_slice %922 {offsets = [0, 0], sizes = [1, 32], strides = [1, 1]} : vector<1x64xf32> to vector<1x32xf32>
    %924 = vector.broadcast %923 : vector<1x32xf32> to vector<8x32xf32>
    %925 = arith.mulf %899, %924 : vector<8x32xf32>
    %926 = vector.extract_strided_slice %922 {offsets = [0, 32], sizes = [1, 32], strides = [1, 1]} : vector<1x64xf32> to vector<1x32xf32>
    %927 = vector.broadcast %926 : vector<1x32xf32> to vector<8x32xf32>
    %928 = arith.mulf %921, %927 : vector<8x32xf32>
    %929 = arith.addf %925, %928 : vector<8x32xf32>
    %cst_223 = arith.constant dense<0.000000e+00> : vector<8xf32>
    %930 = vector.multi_reduction <add>, %929, %cst_223 [1] : vector<8x32xf32> to vector<8xf32>
    %931 = vector.shape_cast %930 : vector<8xf32> to vector<8x1xf32>
    %c0_224 = arith.constant 0 : index
    %c0_225 = arith.constant 0 : index
    %932 = vector.load %arg10[%c0_224, %c0_225] : memref<1x1xf32, #tpu.memory_space<vmem>>, vector<1x1xf32>
    %933 = vector.broadcast %932 : vector<1x1xf32> to vector<8x1xf32>
    %934 = arith.addf %931, %933 : vector<8x1xf32>
    %c0_226 = arith.constant 0 : index
    %c0_227 = arith.constant 0 : index
    %935 = vector.load %arg11[%c0_226, %c0_227] : memref<8x1xf32, #tpu.memory_space<vmem>>, vector<8x1xf32>
    tpu.vector_store %arg11[%c0_226, %c0_227], %934 {strides = array<i32>} : memref<8x1xf32, #tpu.memory_space<vmem>>, vector<8x1xf32>,
    return
  }
}

</mosaic_0001>

<bundles_post_ra>
// kernel: lstm_model_forward.1
= control target key start
LH: loop header
LB: loop body
LE: loop exit
PB: predicated region body
PF: predicated region fallthrough
CT: control target
= control target key end

     0   :  { %v5285_v0 = vmov 0   ;;  %vm268_vm0 = vcmask 261120   ;;  %s5287_s14 = smov 32   ;;  %v5288_v44 = vmov 0.0   ;;  %vm5289_vm1 = vmmov 0   ;;  %s6420_s0 = inlined_call_operand.vmem [shape: f32[160,1], index: 0, kind: input, shape index: {}]   ;;  %s6421_s3 = inlined_call_operand.vmem [shape: bf16[32,128], index: 3, kind: input, shape index: {}]   ;;  %s6422_s1 = inlined_call_operand.vmem [shape: f32[1,32], index: 1, kind: input, shape index: {}]   ;;  %s6423_s2 = inlined_call_operand.vmem [shape: f32[1,32], index: 2, kind: input, shape index: {}]   ;;  %s6424_s4 = inlined_call_operand.vmem [shape: f32[1,128], index: 4, kind: input, shape index: {}]   ;;  %s6425_s5 = inlined_call_operand.vmem [shape: bf16[32,128], index: 5, kind: input, shape index: {}]   ;;  %s6426_s6 = inlined_call_operand.vmem [shape: bf16[32,128], index: 6, kind: input, shape index: {}]   ;;  %s6427_s8 = inlined_call_operand.vmem [shape: f32[1,128], index: 8, kind: input, shape index: {}]   ;;  %s6428_s7 = inlined_call_operand.vmem [shape: bf16[32,128], index: 7, kind: input, shape index: {}]   ;;  %s6429_s9 = inlined_call_operand.vmem [shape: f32[1,64], index: 9, kind: input, shape index: {}]   ;;  %s6430_s10 = inlined_call_operand.<no memory space> [shape: f32[1,1], index: 10, kind: input, shape index: {}]   ;;  %s6431_s11 = inlined_call_operand.vmem [shape: f32[8,1], index: 11, kind: output, shape index: {}]  }
   0x1   :  { %5018 = vset.pattern.permute.xlu1 %v5285_v0  ;;  %5017 = vset.pattern.permute.xlu0 %v5285_v0  ;;  %v43_v1 = vld [vmem:[%s6420_s0 + $0x10] sm:$0xff]  ;;  %v41_v2 = vld [vmem:[%s6420_s0] sm:$0xff]  ;;  %v44_v3 = vld [vmem:[%s6420_s0 + $0x18] sm:$0xff]  ;;  %vm4169_vm2 = vcmask 7168  }
   0x2   :  { %74 = vperm.xlu1 %5018, %v43_v1   ;;  %64 = vperm.xlu0 %5017, %v41_v2   ;;  %v42_v4 = vld [vmem:[%s6420_s0 + $0x8] sm:$0xff]  ;;  %v5019_v5 = vld [vmem:[%s6421_s3] sm:$0xff]  }
   0x3   :  { %4523 = vmatprep.subr.bf16.mxu0 %v5019_v5  ;;  %v5020_v6 = vld [vmem:[%s6421_s3 + $0x8] sm:$0xff]   ;;  %v5372_v7 = vld [vmem:[%s6422_s1] ss:$0 sm:$0xff]  ;;  %s5286_s3 = smov 64   ;;  %4547 = vmatprep.subr.bf16.mxu1 %v5288_v44 }
   0x4   :  { %4524 = vmatpush3.bf16.msra.mxu0 %v5019_v5  ;;  %v5379_v12 = vld [vmem:[%s6423_s2] ss:$0 sm:$0xff]  ;;  %4551 = vmatprep.mubr.msk.bf16.mxu1 %vm5289_vm1, %v5288_v44  ;;  %v5417_v46 = vld [vmem:[%s6425_s5 + $0x8] sm:$0xff]  }
   0x5   :  { %4525 = vmatprep.subr.bf16.mxu0 %v5020_v6  ;;  %v5392_v27 = vld [vmem:[%s6424_s4] ss:$0 sm:$0xff]  ;;  %v5434_v53 = vld [vmem:[%s6426_s6 + $0x8] sm:$0xff]  }
   0x6   :  { %79 = vperm.xlu1 %5018, %v44_v3   ;;  %69 = vperm.xlu0 %5017, %v42_v4   ;;  %v5408_v45 = vld [vmem:[%s6425_s5] sm:$0xff]  }
   0x7   :  { %4548 = vmatpush3.bf16.msra.mxu1 %v5408_v45  ;;  %v5427_v51 = vld [vmem:[%s6426_s6] sm:$0xff]  }
   0x8   :  { %4526 = vmatpush3.bf16.msra.mxu0 %v5020_v6  ;;  %4549 = vmatprep.subr.bf16.mxu1 %v5288_v44  ;;  %v5448_v61 = vld [vmem:[%s6427_s8] ss:$0 sm:$0xff] }
   0x9   :  { %4587 = vmatprep.subr.bf16.mxu0 %v5288_v44 }
   0xb   :  { %4550 = vmatpush3.bf16.msra.mxu1 %v5417_v46 }
   0xc   :  { %4555 = vmatprep.subr.bf16.mxu1 %v5288_v44 }
  0x81   :  { %v75_v8 = vpop.permute.xlu1 %74  ;;  %v65_v9 = vpop.permute.xlu0 %64 }
  0x82   :  { %v170_v10 = vmul.f32 %v5372_v7, %v75_v8  ;;  %v168_v11 = vmul.f32 %v5372_v7, %v65_v9 }
  0x84   :  { %v197_v15 = vadd.f32 %v5379_v12, %v170_v10  ;;  %v195_v16 = vadd.f32 %v5379_v12, %v168_v11 }
  0x85   :  { %v80_v13 = vpop.permute.xlu1 %79  ;;  %v70_v14 = vpop.permute.xlu0 %69 }
  0x86   :  { %v171_v17 = vmul.f32 %v5372_v7, %v80_v13  ;;  %v169_v18 = vmul.f32 %v5372_v7, %v70_v14  ;;  %v217_v21 = vmax.f32 %v197_v15, 0.0  ;;  %v215_v23 = vmax.f32 %v195_v16, 0.0 }
  0x88   :  { %v198_v19 = vadd.f32 %v5379_v12, %v171_v17  ;;  %v196_v20 = vadd.f32 %v5379_v12, %v169_v18 }
  0x8a   :  { %v218_v22 = vmax.f32 %v198_v19, 0.0  ;;  %v216_v24 = vmax.f32 %v196_v20, 0.0 }
  0x8c   :  { %v236_v25 = vpack.c.bf16 %v218_v22, %v217_v21  ;;  %v235_v26 = vpack.c.bf16 %v216_v24, %v215_v23 }
  0x8e   :  { %4527 = vmatprep.mubr.msk.bf16.mxu0 %vm268_vm0, %v235_v26 }
  0x8f   :  { %4528 = vmatmul.mubr.msk.bf16.vlgmr.msra.gmra.mrb[0].mxu0 %vm268_vm0, %v236_v25 }
 0x162   :  { %v5394_v28 = vpop.f32.mrb[0].mxu0 }
 0x163   :  { %v333_v29 = vpop.f32.mrb[1].mxu0 }
 0x164   :  { %v334_v30 = vadd.f32 %v5392_v27, %v333_v29  ;;  %v5397_v31 = vpop.f32.mrb[2].mxu0 }
 0x165   :  { %v336_v32 = vpop.f32.mrb[3].mxu0 }
 0x166   :  { %v4191_v33 = vmul.f32 -1.442695, %v334_v30  ;;  %v337_v54 = vadd.f32 %v5392_v27, %v336_v32  ;;  %v5467_v30 = vld [vmem:[%s6428_s7] sm:$0xff]   ;;  %v5473_v32 = vld [vmem:[%s6428_s7 + $0x8] sm:$0xff]  }
 0x167   :  { %4588 = vmatpush3.bf16.msra.mxu0 %v5467_v30 }
 0x168   :  { %5027 = vpow2.f32 %v4191_v33  ;;  %4589 = vmatprep.subr.bf16.mxu0 %v5288_v44 }
 0x16b   :  { %4590 = vmatpush3.bf16.msra.mxu0 %v5473_v32 }
 0x16c   :  { %4603 = vmatprep.subr.bf16.mxu0 %v5288_v44 }
 0x172   :  { %v5028_v34 = vpop.eup %5027 }
 0x173   :  { %v456_v35 = vadd.f32 1.0, %v5028_v34 }
 0x175   :  { %5029 = vrcp.f32 %v456_v35 }
 0x17f   :  { %v5030_v36 = vpop.eup %5029 }
 0x180   :  { %v459_v37 = vmul.f32 2.0, %v5030_v36  ;;  %v461_v41 = vmul.f32 0.0, %v5030_v36 }
 0x182   :  { %v4192_v38 = vadd.f32 -1.0, %v459_v37 }
 0x184   :  { %463 = vrot.lane.b32.xlu0 %v4192_v38, %s5286_s3 }
 0x1f6   :  { %v464_v39 = vpop.permute.xlu0 %463 }
 0x1f7   :  { %v466_v40 = vmul.f32 %v5030_v36, %v464_v39 }
 0x1f9   :  { %468 = vrot.lane.b32.xlu1 %v466_v40, %s5287_s14 }
 0x26b   :  { %v469_v42 = vpop.permute.xlu1 %468 }
 0x26c   :  { %v5401_v43 = vadd.f32 %v469_v42, %v461_v41 }
 0x26e   :  { %5031 = vtanh.f32 %v5401_v43 }
 0x278   :  { %v5032_v47 = vpop.eup %5031 }
 0x279   :  { %474 = vrot.lane.b32.xlu0 %v5032_v47, %s5286_s3 }
 0x2eb   :  { %v475_v48 = vpop.permute.xlu0 %474 }
 0x2ec   :  { %v477_v49 = vmul.f32 %v5030_v36, %v475_v48  ;;  %v342_v48 = vadd.f32 %v5394_v28, %v5392_v27 }
 0x2ee   :  { %v478_v50 = vpack.c.bf16 %v477_v49, %v477_v49 }
 0x2f0   :  { %480 = vrot.lane.b32.xlu1 %v478_v50, %s5287_s14 }
 0x362   :  { %v481_v52 = vpop.permute.xlu1 %480 }
 0x363   :  { %4552 = vmatmul.mubr.msk.bf16.vlgmr.msra.gmra.mrb[0].mxu1 %vm268_vm0, %v481_v52 }
 0x364   :  { %4556 = vmatpush3.bf16.msra.mxu1 %v5427_v51  ;;  %4559 = vmatprep.mubr.msk.bf16.mxu1 %vm5289_vm1, %v5288_v44 }
 0x365   :  { %4557 = vmatprep.subr.bf16.mxu1 %v5288_v44 }
 0x368   :  { %4558 = vmatpush3.bf16.msra.mxu1 %v5434_v53 }
 0x369   :  { %4563 = vmatprep.subr.bf16.mxu1 %v5288_v44 }
 0x36b   :  { %4560 = vmatmul.mubr.msk.bf16.vlgmr.msra.gmra.mrb[4].mxu1 %vm268_vm0, %v481_v52 }
 0x36c   :  { %4567 = vmatprep.mubr.msk.bf16.mxu1 %vm5289_vm1, %v5288_v44  ;;  %4564 = vmatpush3.bf16.msra.mxu1 %v5467_v30 }
 0x36d   :  { %4565 = vmatprep.subr.bf16.mxu1 %v5288_v44 }
 0x370   :  { %4566 = vmatpush3.bf16.msra.mxu1 %v5473_v32 }
 0x371   :  { %4571 = vmatprep.subr.bf16.mxu1 %v5288_v44 }
 0x436   :  { %v531_v55 = vpop.f32.mrb[0].mxu1 }
 0x437   :  { %v674_v56 = vadd.f32 %v531_v55, %v337_v54  ;;  %v4553_v57 = vpop.f32.mrb[1].mxu1 }
 0x438   :  { %v534_v58 = vpop.f32.mrb[2].mxu1 }
 0x439   :  { %v4204_v59 = vmul.f32 -1.442695, %v674_v56  ;;  %v4554_v60 = vpop.f32.mrb[3].mxu1 }
 0x43b   :  { %5033 = vpow2.f32 %v4204_v59 }
 0x43e   :  { %v583_v62 = vpop.f32.mrb[4].mxu1 }
 0x43f   :  { %v584_v63 = vadd.f32 %v5448_v61, %v583_v62  ;;  %v4561_v0 = vpop.f32.mrb[5].mxu1 }
 0x440   :  { %v586_v1 = vpop.f32.mrb[6].mxu1 }
 0x441   :  { %v4199_v2 = vmul.f32 -1.442695, %v584_v63  ;;  %v4562_v3 = vpop.f32.mrb[7].mxu1 }
 0x443   :  { %5035 = vpow2.f32 %v4199_v2 }
 0x445   :  { %v5034_v4 = vpop.eup %5033 }
 0x446   :  { %v678_v5 = vadd.f32 1.0, %v5034_v4 }
 0x448   :  { %5037 = vrcp.f32 %v678_v5 }
 0x44d   :  { %v5036_v6 = vpop.eup %5035 }
 0x44e   :  { %v592_v8 = vadd.f32 1.0, %v5036_v6 }
 0x450   :  { %5039 = vrcp.f32 %v592_v8 }
 0x452   :  { %v5038_v9 = vpop.eup %5037 }
 0x453   :  { %v681_v10 = vmul.f32 2.0, %v5038_v9  ;;  %v683_v20 = vmul.f32 %v5038_v9, %v5401_v43 }
 0x455   :  { %v4205_v11 = vadd.f32 -1.0, %v681_v10 }
 0x457   :  { %685 = vrot.lane.b32.xlu1 %v4205_v11, %s5286_s3 }
 0x45a   :  { %v5040_v13 = vpop.eup %5039 }
 0x45b   :  { %v595_v14 = vmul.f32 2.0, %v5040_v13  ;;  %v597_v23 = vmul.f32 0.0, %v5040_v13 }
 0x45d   :  { %v4200_v15 = vadd.f32 -1.0, %v595_v14 }
 0x45f   :  { %599 = vrot.lane.b32.xlu0 %v4200_v15, %s5286_s3 }
 0x4c9   :  { %v686_v16 = vpop.permute.xlu1 %685 }
 0x4ca   :  { %v688_v17 = vmul.f32 %v5038_v9, %v686_v16 }
 0x4cc   :  { %690 = vrot.lane.b32.xlu1 %v688_v17, %s5287_s14 }
 0x4d1   :  { %v600_v18 = vpop.permute.xlu0 %599 }
 0x4d2   :  { %v602_v19 = vmul.f32 %v5040_v13, %v600_v18 }
 0x4d4   :  { %604 = vrot.lane.b32.xlu0 %v602_v19, %s5287_s14 }
 0x53e   :  { %v691_v21 = vpop.permute.xlu1 %690 }
 0x53f   :  { %v5456_v22 = vadd.f32 %v691_v21, %v683_v20 }
 0x541   :  { %5041 = vtanh.f32 %v5456_v22 }
 0x546   :  { %v605_v24 = vpop.permute.xlu0 %604 }
 0x547   :  { %v5459_v25 = vadd.f32 %v605_v24, %v597_v23  ;;  %v46_v24 = vld [vmem:[%s6420_s0 + $0x28] sm:$0xff] }
 0x549   :  { %5043 = vtanh.f32 %v5459_v25 }
 0x54b   :  { %v5042_v26 = vpop.eup %5041 }
 0x54c   :  { %696 = vrot.lane.b32.xlu1 %v5042_v26, %s5286_s3 }
 0x553   :  { %v5044_v29 = vpop.eup %5043 }
 0x554   :  { %610 = vrot.lane.b32.xlu0 %v5044_v29, %s5286_s3  ;;  %v45_v29 = vld [vmem:[%s6420_s0 + $0x20] sm:$0xff] }
 0x5be   :  { %v697_v33 = vpop.permute.xlu1 %696 }
 0x5bf   :  { %v699_v34 = vmul.f32 %v5038_v9, %v697_v33  ;;  %v52_v33 = vld [vmem:[%s6420_s0 + $0x58] sm:$0xff] }
 0x5c1   :  { %v700_v35 = vpack.c.bf16 %v699_v34, %v699_v34  ;;  %v47_v34 = vld [vmem:[%s6420_s0 + $0x30] sm:$0xff] }
 0x5c3   :  { %702 = vrot.lane.b32.xlu1 %v700_v35, %s5287_s14  ;;  %v54_v35 = vld [vmem:[%s6420_s0 + $0x68] sm:$0xff] }
 0x5c6   :  { %v611_v36 = vpop.permute.xlu0 %610 }
 0x5c7   :  { %v613_v37 = vmul.f32 %v5040_v13, %v611_v36  ;;  %v49_v36 = vld [vmem:[%s6420_s0 + $0x40] sm:$0xff] }
 0x5c9   :  { %v614_v38 = vpack.c.bf16 %v613_v37, %v613_v37  ;;  %v56_v37 = vld [vmem:[%s6420_s0 + $0x78] sm:$0xff] }
 0x5cb   :  { %616 = vrot.lane.b32.xlu0 %v614_v38, %s5287_s14  ;;  %v51_v38 = vld [vmem:[%s6420_s0 + $0x50] sm:$0xff] }
 0x635   :  { %v703_v40 = vpop.permute.xlu1 %702 }
 0x63d   :  { %v617_v39 = vpop.permute.xlu0 %616 }
 0x63e   :  { %4568 = vmatmul.mubr.msk.bf16.vlgmr.msra.gmra.mrb[8].mxu1 %vm268_vm0, %v617_v39  ;;  %v58_v39 = vld [vmem:[%s6420_s0 + $0x88] sm:$0xff] }
 0x63f   :  { %4572 = vmatpush3.bf16.msra.mxu1 %v5408_v45  ;;  %4575 = vmatprep.mubr.msk.bf16.mxu1 %vm5289_vm1, %v5288_v44 }
 0x640   :  { %4573 = vmatprep.subr.bf16.mxu1 %v5288_v44 }
 0x643   :  { %4574 = vmatpush3.bf16.msra.mxu1 %v5417_v46 }
 0x644   :  { %4579 = vmatprep.subr.bf16.mxu1 %v5288_v44 }
 0x646   :  { %4576 = vmatmul.mubr.msk.bf16.vlgmr.msra.gmra.mrb[12].mxu1 %vm268_vm0, %v703_v40 }
 0x647   :  { %4580 = vmatpush3.bf16.msra.mxu1 %v5427_v51  ;;  %4583 = vmatprep.mubr.msk.bf16.mxu1 %vm5289_vm1, %v5288_v44 }
 0x648   :  { %4581 = vmatprep.subr.bf16.mxu1 %v5288_v44 }
 0x64b   :  { %4582 = vmatpush3.bf16.msra.mxu1 %v5434_v53 }
 0x64c   :  { %4595 = vmatprep.subr.bf16.mxu1 %v5288_v44 }
 0x64e   :  { %4584 = vmatmul.mubr.msk.bf16.vlgmr.msra.gmra.mrb[16].mxu1 %vm268_vm0, %v703_v40  ;;  %v53_v40 = vld [vmem:[%s6420_s0 + $0x60] sm:$0xff] }
 0x64f   :  { %4596 = vmatpush3.bf16.msra.mxu1 %v5408_v45  ;;  %4599 = vmatprep.mubr.msk.bf16.mxu1 %vm5289_vm1, %v5288_v44 }
 0x650   :  { %4597 = vmatprep.subr.bf16.mxu1 %v5288_v44 }
 0x653   :  { %4598 = vmatpush3.bf16.msra.mxu1 %v5417_v46 }
 0x654   :  { %4611 = vmatprep.subr.bf16.mxu1 %v5288_v44 }
 0x711   :  { %v667_v41 = vpop.f32.mrb[8].mxu1 }
 0x712   :  { %v4569_v42 = vpop.f32.mrb[9].mxu1 }
 0x713   :  { %v670_v43 = vpop.f32.mrb[10].mxu1  ;;  %v55_v42 = vld [vmem:[%s6420_s0 + $0x70] sm:$0xff] }
 0x714   :  { %v4570_v47 = vpop.f32.mrb[11].mxu1  ;;  %v57_v43 = vld [vmem:[%s6420_s0 + $0x80] sm:$0xff] }
 0x715   :  { %v59_v47 = vld [vmem:[%s6420_s0 + $0x90] sm:$0xff] }
 0x719   :  { %v741_v49 = vpop.f32.mrb[12].mxu1 }
 0x71a   :  { %v861_v50 = vadd.f32 %v741_v49, %v342_v48  ;;  %v4577_v52 = vpop.f32.mrb[13].mxu1 }
 0x71b   :  { %v744_v54 = vpop.f32.mrb[14].mxu1 }
 0x71c   :  { %v4211_v55 = vmul.f32 -1.442695, %v861_v50  ;;  %v4578_v56 = vpop.f32.mrb[15].mxu1 }
 0x71e   :  { %5045 = vpow2.f32 %v4211_v55 }
 0x721   :  { %v781_v57 = vpop.f32.mrb[16].mxu1 }
 0x722   :  { %v782_v58 = vadd.f32 %v781_v57, %v667_v41  ;;  %v4585_v59 = vpop.f32.mrb[17].mxu1  ;;  %v60_v41 = vld [vmem:[%s6420_s0 + $0x98] sm:$0xff] }
 0x723   :  { %v784_v60 = vpop.f32.mrb[18].mxu1 }
 0x724   :  { %v787_v62 = vadd.f32 %v5448_v61, %v782_v58  ;;  %v4586_v63 = vpop.f32.mrb[19].mxu1 }
 0x726   :  { %v4208_v0 = vmul.f32 -1.442695, %v787_v62 }
 0x728   :  { %v5046_v1 = vpop.eup %5045  ;;  %5047 = vpow2.f32 %v4208_v0 }
 0x729   :  { %v865_v2 = vadd.f32 1.0, %v5046_v1 }
 0x72b   :  { %5049 = vrcp.f32 %v865_v2 }
 0x732   :  { %v5048_v28 = vpop.eup %5047 }
 0x733   :  { %v791_v3 = vadd.f32 1.0, %v5048_v28 }
 0x735   :  { %v5050_v4 = vpop.eup %5049  ;;  %5051 = vrcp.f32 %v791_v3 }
 0x736   :  { %v868_v5 = vmul.f32 2.0, %v5050_v4  ;;  %v870_v16 = vmul.f32 %v5050_v4, %v5456_v22  ;;  %v48_v22 = vld [vmem:[%s6420_s0 + $0x38] sm:$0xff] }
 0x738   :  { %v4212_v6 = vadd.f32 -1.0, %v868_v5 }
 0x73a   :  { %872 = vrot.lane.b32.xlu1 %v4212_v6, %s5286_s3 }
 0x73f   :  { %v5052_v8 = vpop.eup %5051 }
 0x740   :  { %v794_v9 = vmul.f32 2.0, %v5052_v8  ;;  %v796_v19 = vmul.f32 %v5052_v8, %v5459_v25  ;;  %v50_v25 = vld [vmem:[%s6420_s0 + $0x48] sm:$0xff] }
 0x742   :  { %v4209_v10 = vadd.f32 -1.0, %v794_v9 }
 0x744   :  { %798 = vrot.lane.b32.xlu0 %v4209_v10, %s5286_s3 }
 0x7ac   :  { %v873_v11 = vpop.permute.xlu1 %872 }
 0x7ad   :  { %v875_v13 = vmul.f32 %v5050_v4, %v873_v11 }
 0x7af   :  { %877 = vrot.lane.b32.xlu1 %v875_v13, %s5287_s14 }
 0x7b6   :  { %v799_v14 = vpop.permute.xlu0 %798 }
 0x7b7   :  { %v801_v15 = vmul.f32 %v5052_v8, %v799_v14 }
 0x7b9   :  { %803 = vrot.lane.b32.xlu0 %v801_v15, %s5287_s14 }
 0x821   :  { %v878_v17 = vpop.permute.xlu1 %877 }
 0x822   :  { %v5513_v18 = vadd.f32 %v878_v17, %v870_v16 }
 0x824   :  { %5053 = vtanh.f32 %v5513_v18 }
 0x82b   :  { %v804_v20 = vpop.permute.xlu0 %803 }
 0x82c   :  { %v5517_v21 = vadd.f32 %v804_v20, %v796_v19 }
 0x82e   :  { %v5054_v23 = vpop.eup %5053  ;;  %5055 = vtanh.f32 %v5517_v21 }
 0x82f   :  { %883 = vrot.lane.b32.xlu1 %v5054_v23, %s5286_s3 }
 0x833   :  { %89 = vperm.xlu1 %5018, %v46_v24  }
 0x837   :  { %99 = vperm.xlu1 %5018, %v48_v22  }
 0x838   :  { %v5056_v26 = vpop.eup %5055 }
 0x839   :  { %809 = vrot.lane.b32.xlu0 %v5056_v26, %s5286_s3 }
 0x83b   :  { %109 = vperm.xlu1 %5018, %v50_v25  }
 0x83d   :  { %84 = vperm.xlu0 %5017, %v45_v29  }
 0x83f   :  { %119 = vperm.xlu1 %5018, %v52_v33  }
 0x841   :  { %94 = vperm.xlu0 %5017, %v47_v34  }
 0x843   :  { %129 = vperm.xlu1 %5018, %v54_v35  }
 0x845   :  { %104 = vperm.xlu0 %5017, %v49_v36  }
 0x847   :  { %139 = vperm.xlu1 %5018, %v56_v37  }
 0x849   :  { %114 = vperm.xlu0 %5017, %v51_v38  }
 0x84b   :  { %149 = vperm.xlu1 %5018, %v58_v39  }
 0x84d   :  { %124 = vperm.xlu0 %5017, %v53_v40  }
 0x84f   :  { %159 = vperm.xlu1 %5018, %v60_v41  }
 0x851   :  { %134 = vperm.xlu0 %5017, %v55_v42  }
 0x855   :  { %144 = vperm.xlu0 %5017, %v57_v43  }
 0x859   :  { %154 = vperm.xlu0 %5017, %v59_v47  }
 0x8a1   :  { %v884_v48 = vpop.permute.xlu1 %883 }
 0x8a2   :  { %v886_v49 = vmul.f32 %v5050_v4, %v884_v48 }
 0x8a4   :  { %v887_v50 = vpack.c.bf16 %v886_v49, %v886_v49 }
 0x8a6   :  { %889 = vrot.lane.b32.xlu1 %v887_v50, %s5287_s14 }
 0x8ab   :  { %v810_v52 = vpop.permute.xlu0 %809 }
 0x8ac   :  { %v812_v54 = vmul.f32 %v5052_v8, %v810_v52 }
 0x8ae   :  { %v813_v55 = vpack.c.bf16 %v812_v54, %v812_v54 }
 0x8b0   :  { %815 = vrot.lane.b32.xlu0 %v813_v55, %s5287_s14 }
 0x8b2   :  { %v90_v56 = vpop.permute.xlu1 %89 }
 0x8b3   :  { %v173_v58 = vmul.f32 %v5372_v7, %v90_v56 }
 0x8b5   :  { %v200_v62 = vadd.f32 %v5379_v12, %v173_v58 }
 0x8b6   :  { %v100_v57 = vpop.permute.xlu1 %99 }
 0x8b7   :  { %v175_v63 = vmul.f32 %v5372_v7, %v100_v57  ;;  %v220_v4 = vmax.f32 %v200_v62, 0.0 }
 0x8b9   :  { %v202_v5 = vadd.f32 %v5379_v12, %v175_v63 }
 0x8ba   :  { %v110_v59 = vpop.permute.xlu1 %109 }
 0x8bb   :  { %v177_v28 = vmul.f32 %v5372_v7, %v110_v59  ;;  %v222_v15 = vmax.f32 %v202_v5, 0.0 }
 0x8bc   :  { %v85_v60 = vpop.permute.xlu0 %84 }
 0x8bd   :  { %v172_v0 = vmul.f32 %v5372_v7, %v85_v60  ;;  %v204_v13 = vadd.f32 %v5379_v12, %v177_v28 }
 0x8be   :  { %v120_v1 = vpop.permute.xlu1 %119 }
 0x8bf   :  { %v199_v2 = vadd.f32 %v5379_v12, %v172_v0  ;;  %v179_v16 = vmul.f32 %v5372_v7, %v120_v1  ;;  %v224_v22 = vmax.f32 %v204_v13, 0.0 }
 0x8c0   :  { %v95_v3 = vpop.permute.xlu0 %94 }
 0x8c1   :  { %v219_v6 = vmax.f32 %v199_v2, 0.0  ;;  %v174_v8 = vmul.f32 %v5372_v7, %v95_v3  ;;  %v206_v25 = vadd.f32 %v5379_v12, %v179_v16 }
 0x8c2   :  { %v130_v9 = vpop.permute.xlu1 %129 }
 0x8c3   :  { %v237_v10 = vpack.c.bf16 %v220_v4, %v219_v6  ;;  %v201_v11 = vadd.f32 %v5379_v12, %v174_v8  ;;  %v181_v29 = vmul.f32 %v5372_v7, %v130_v9  ;;  %v226_v40 = vmax.f32 %v206_v25, 0.0 }
 0x8c4   :  { %v105_v14 = vpop.permute.xlu0 %104 }
 0x8c5   :  { %v221_v17 = vmax.f32 %v201_v11, 0.0  ;;  %v176_v19 = vmul.f32 %v5372_v7, %v105_v14  ;;  %4531 = vmatprep.mubr.msk.bf16.mxu0 %vm268_vm0, %v237_v10  ;;  %v208_v41 = vadd.f32 %v5379_v12, %v181_v29 }
 0x8c6   :  { %v140_v20 = vpop.permute.xlu1 %139 }
 0x8c7   :  { %v238_v23 = vpack.c.bf16 %v222_v15, %v221_v17  ;;  %v203_v24 = vadd.f32 %v5379_v12, %v176_v19  ;;  %v183_v37 = vmul.f32 %v5372_v7, %v140_v20  ;;  %v228_v52 = vmax.f32 %v208_v41, 0.0 }
 0x8c8   :  { %v115_v26 = vpop.permute.xlu0 %114 }
 0x8c9   :  { %v223_v33 = vmax.f32 %v203_v24, 0.0  ;;  %v178_v34 = vmul.f32 %v5372_v7, %v115_v26  ;;  %4532 = vmatmul.mubr.msk.bf16.gmra.mrb[4].mxu0 %vm268_vm0, %v238_v23  ;;  %v210_v49 = vadd.f32 %v5379_v12, %v183_v37 }
 0x8ca   :  { %v150_v38 = vpop.permute.xlu1 %149 }
 0x8cb   :  { %v239_v35 = vpack.c.bf16 %v224_v22, %v223_v33  ;;  %v205_v36 = vadd.f32 %v5379_v12, %v178_v34  ;;  %v185_v54 = vmul.f32 %v5372_v7, %v150_v38  ;;  %v230_v60 = vmax.f32 %v210_v49, 0.0 }
 0x8cc   :  { %v125_v39 = vpop.permute.xlu0 %124 }
 0x8cd   :  { %v225_v42 = vmax.f32 %v205_v36, 0.0  ;;  %v180_v43 = vmul.f32 %v5372_v7, %v125_v39  ;;  %4535 = vmatprep.mubr.msk.bf16.mxu0 %vm268_vm0, %v239_v35  ;;  %v212_v63 = vadd.f32 %v5379_v12, %v185_v54  ;;  %v345_v39 = vadd.f32 %v5397_v31, %v5392_v27 }
 0x8ce   :  { %v160_v57 = vpop.permute.xlu1 %159 }
 0x8cf   :  { %v240_v47 = vpack.c.bf16 %v226_v40, %v225_v42  ;;  %v207_v48 = vadd.f32 %v5379_v12, %v180_v43  ;;  %v187_v0 = vmul.f32 %v5372_v7, %v160_v57  ;;  %v232_v5 = vmax.f32 %v212_v63, 0.0 }
 0x8d0   :  { %v135_v50 = vpop.permute.xlu0 %134 }
 0x8d1   :  { %v227_v55 = vmax.f32 %v207_v48, 0.0  ;;  %v182_v56 = vmul.f32 %v5372_v7, %v135_v50  ;;  %4536 = vmatmul.mubr.msk.bf16.gmra.mrb[8].mxu0 %vm268_vm0, %v240_v47  ;;  %v214_v6 = vadd.f32 %v5379_v12, %v187_v0 }
 0x8d3   :  { %v241_v58 = vpack.c.bf16 %v228_v52, %v227_v55  ;;  %v209_v59 = vadd.f32 %v5379_v12, %v182_v56  ;;  %v234_v13 = vmax.f32 %v214_v6, 0.0 }
 0x8d4   :  { %v145_v62 = vpop.permute.xlu0 %144 }
 0x8d5   :  { %v229_v1 = vmax.f32 %v209_v59, 0.0  ;;  %v184_v2 = vmul.f32 %v5372_v7, %v145_v62  ;;  %4539 = vmatprep.mubr.msk.bf16.mxu0 %vm268_vm0, %v241_v58 }
 0x8d7   :  { %v242_v28 = vpack.c.bf16 %v230_v60, %v229_v1  ;;  %v211_v3 = vadd.f32 %v5379_v12, %v184_v2 }
 0x8d8   :  { %v155_v4 = vpop.permute.xlu0 %154 }
 0x8d9   :  { %v231_v8 = vmax.f32 %v211_v3, 0.0  ;;  %v186_v9 = vmul.f32 %v5372_v7, %v155_v4  ;;  %4540 = vmatmul.mubr.msk.bf16.gmra.mrb[12].mxu0 %vm268_vm0, %v242_v28 }
 0x8db   :  { %v243_v10 = vpack.c.bf16 %v232_v5, %v231_v8  ;;  %v213_v11 = vadd.f32 %v5379_v12, %v186_v9 }
 0x8dd   :  { %v233_v14 = vmax.f32 %v213_v11, 0.0  ;;  %4543 = vmatprep.mubr.msk.bf16.mxu0 %vm268_vm0, %v243_v10 }
 0x8df   :  { %v244_v15 = vpack.c.bf16 %v234_v13, %v233_v14 }
 0x8e1   :  { %4544 = vmatmul.mubr.msk.bf16.gmra.mrb[16].mxu0 %vm268_vm0, %v244_v15 }
 0x8e2   :  { %4591 = vmatprep.mubr.msk.bf16.mxu0 %vm5289_vm1, %v5288_v44 }
 0x918   :  { %v890_v16 = vpop.permute.xlu1 %889 }
 0x919   :  { %4600 = vmatmul.mubr.msk.bf16.vlgmr.msra.gmra.mrb[20].mxu1 %vm268_vm0, %v890_v16 }
 0x91a   :  { %4612 = vmatpush3.bf16.msra.mxu1 %v5467_v30  ;;  %4615 = vmatprep.mubr.msk.bf16.mxu1 %vm5289_vm1, %v5288_v44 }
 0x91b   :  { %4613 = vmatprep.subr.bf16.mxu1 %v5288_v44 }
 0x91e   :  { %4614 = vmatpush3.bf16.msra.mxu1 %v5473_v32 }
 0x91f   :  { %4627 = vmatprep.subr.bf16.mxu1 %v5288_v44 }
 0x922   :  { %v816_v7 = vpop.permute.xlu0 %815 }
 0x923   :  { %4592 = vmatmul.mubr.msk.bf16.vlgmr.msra.gmra.mrb[20].mxu0 %vm268_vm0, %v816_v7 }
 0x924   :  { %4604 = vmatpush3.bf16.msra.mxu0 %v5427_v51  ;;  %4607 = vmatprep.mubr.msk.bf16.mxu0 %vm5289_vm1, %v5288_v44 }
 0x925   :  { %4605 = vmatprep.subr.bf16.mxu0 %v5288_v44 }
 0x928   :  { %4606 = vmatpush3.bf16.msra.mxu0 %v5434_v53 }
 0x929   :  { %4619 = vmatprep.subr.bf16.mxu0 %v5288_v44 }
 0x92b   :  { %4608 = vmatmul.mubr.msk.bf16.vlgmr.msra.gmra.mrb[24].mxu0 %vm268_vm0, %v890_v16 }
 0x92c   :  { %4620 = vmatpush3.bf16.msra.mxu0 %v5408_v45  ;;  %4623 = vmatprep.mubr.msk.bf16.mxu0 %vm5289_vm1, %v5288_v44 }
 0x92d   :  { %4621 = vmatprep.subr.bf16.mxu0 %v5288_v44 }
 0x930   :  { %4622 = vmatpush3.bf16.msra.mxu0 %v5417_v46 }
 0x931   :  { %4635 = vmatprep.subr.bf16.mxu0 %v5288_v44 }
 0x99c   :  { %v5635_v12 = vpop.f32.mrb[4].mxu0 }
 0x99d   :  { %v5637_v17 = vpop.f32.mrb[5].mxu0 }
 0x99e   :  { %v5639_v19 = vpop.f32.mrb[6].mxu0 }
 0x99f   :  { %v5641_v20 = vpop.f32.mrb[7].mxu0 }
 0x9a4   :  { %v5643_v23 = vpop.f32.mrb[8].mxu0 }
 0x9a5   :  { %v5645_v24 = vpop.f32.mrb[9].mxu0 }
 0x9a6   :  { %v5647_v22 = vpop.f32.mrb[10].mxu0 }
 0x9a7   :  { %v5649_v26 = vpop.f32.mrb[11].mxu0 }
 0x9ac   :  { %v5651_v25 = vpop.f32.mrb[12].mxu0 }
 0x9ad   :  { %v5653_v29 = vpop.f32.mrb[13].mxu0 }
 0x9ae   :  { %v5655_v33 = vpop.f32.mrb[14].mxu0 }
 0x9af   :  { %v5657_v34 = vpop.f32.mrb[15].mxu0 }
 0x9b4   :  { %v5659_v35 = vpop.f32.mrb[16].mxu0 }
 0x9b5   :  { %v5661_v36 = vpop.f32.mrb[17].mxu0 }
 0x9b6   :  { %v5663_v37 = vpop.f32.mrb[18].mxu0 }
 0x9b7   :  { %v5665_v38 = vpop.f32.mrb[19].mxu0 }
 0x9ec   :  { %v928_v40 = vpop.f32.mrb[20].mxu1 }
 0x9ed   :  { %v1048_v41 = vadd.f32 %v928_v40, %v345_v39  ;;  %v4601_v42 = vpop.f32.mrb[21].mxu1 }
 0x9ee   :  { %v931_v43 = vpop.f32.mrb[22].mxu1 }
 0x9ef   :  { %v4218_v47 = vmul.f32 -1.442695, %v1048_v41  ;;  %v4602_v48 = vpop.f32.mrb[23].mxu1 }
 0x9f1   :  { %5057 = vpow2.f32 %v4218_v47 }
 0x9f6   :  { %v854_v49 = vpop.f32.mrb[20].mxu0 }
 0x9f7   :  { %v4593_v50 = vpop.f32.mrb[21].mxu0 }
 0x9f8   :  { %v857_v52 = vpop.f32.mrb[22].mxu0 }
 0x9f9   :  { %v4594_v54 = vpop.f32.mrb[23].mxu0  ;;  %v350_v52 = vadd.f32 %v5392_v27, %v5637_v17 }
 0x9fb   :  { %v5058_v55 = vpop.eup %5057 }
 0x9fc   :  { %v1052_v56 = vadd.f32 1.0, %v5058_v55 }
 0x9fe   :  { %5059 = vrcp.f32 %v1052_v56  ;;  %v968_v57 = vpop.f32.mrb[24].mxu0 }
 0x9ff   :  { %v969_v58 = vadd.f32 %v968_v57, %v854_v49  ;;  %v4609_v59 = vpop.f32.mrb[25].mxu0 }
 0xa00   :  { %v971_v60 = vpop.f32.mrb[26].mxu0 }
 0xa01   :  { %v974_v31 = vadd.f32 %v5448_v61, %v969_v58  ;;  %v4610_v62 = vpop.f32.mrb[27].mxu0 }
 0xa03   :  { %v4215_v63 = vmul.f32 -1.442695, %v974_v31 }
 0xa05   :  { %5061 = vpow2.f32 %v4215_v63 }
 0xa08   :  { %v5060_v0 = vpop.eup %5059 }
 0xa09   :  { %v1055_v1 = vmul.f32 2.0, %v5060_v0  ;;  %v1057_v13 = vmul.f32 %v5060_v0, %v5513_v18 }
 0xa0b   :  { %v4219_v2 = vadd.f32 -1.0, %v1055_v1 }
 0xa0d   :  { %1059 = vrot.lane.b32.xlu1 %v4219_v2, %s5286_s3 }
 0xa0f   :  { %v5062_v28 = vpop.eup %5061 }
 0xa10   :  { %v978_v3 = vadd.f32 1.0, %v5062_v28 }
 0xa12   :  { %5063 = vrcp.f32 %v978_v3 }
 0xa1c   :  { %v5064_v4 = vpop.eup %5063 }
 0xa1d   :  { %v981_v5 = vmul.f32 2.0, %v5064_v4  ;;  %v983_v7 = vmul.f32 %v5064_v4, %v5517_v21 }
 0xa1f   :  { %v4216_v6 = vadd.f32 -1.0, %v981_v5 }
 0xa21   :  { %985 = vrot.lane.b32.xlu0 %v4216_v6, %s5286_s3 }
 0xa7f   :  { %v1060_v8 = vpop.permute.xlu1 %1059 }
 0xa80   :  { %v1062_v9 = vmul.f32 %v5060_v0, %v1060_v8 }
 0xa82   :  { %1064 = vrot.lane.b32.xlu1 %v1062_v9, %s5287_s14 }
 0xa93   :  { %v986_v10 = vpop.permute.xlu0 %985 }
 0xa94   :  { %v988_v11 = vmul.f32 %v5064_v4, %v986_v10 }
 0xa96   :  { %990 = vrot.lane.b32.xlu0 %v988_v11, %s5287_s14 }
 0xaf4   :  { %v1065_v14 = vpop.permute.xlu1 %1064 }
 0xaf5   :  { %v5675_v15 = vadd.f32 %v1065_v14, %v1057_v13 }
 0xaf7   :  { %5065 = vtanh.f32 %v5675_v15 }
 0xb01   :  { %v5066_v16 = vpop.eup %5065 }
 0xb02   :  { %1070 = vrot.lane.b32.xlu1 %v5066_v16, %s5286_s3 }
 0xb08   :  { %v991_v39 = vpop.permute.xlu0 %990 }
 0xb09   :  { %v5680_v40 = vadd.f32 %v991_v39, %v983_v7 }
 0xb0b   :  { %5067 = vtanh.f32 %v5680_v40 }
 0xb15   :  { %v5068_v41 = vpop.eup %5067 }
 0xb16   :  { %996 = vrot.lane.b32.xlu0 %v5068_v41, %s5286_s3 }
 0xb74   :  { %v1071_v42 = vpop.permute.xlu1 %1070 }
 0xb75   :  { %v1073_v18 = vmul.f32 %v5060_v0, %v1071_v42 }
 0xb77   :  { %v1074_v43 = vpack.c.bf16 %v1073_v18, %v1073_v18 }
 0xb79   :  { %1076 = vrot.lane.b32.xlu1 %v1074_v43, %s5287_s14 }
 0xb88   :  { %v997_v47 = vpop.permute.xlu0 %996 }
 0xb89   :  { %v999_v48 = vmul.f32 %v5064_v4, %v997_v47 }
 0xb8b   :  { %v1000_v49 = vpack.c.bf16 %v999_v48, %v999_v48 }
 0xb8d   :  { %1002 = vrot.lane.b32.xlu0 %v1000_v49, %s5287_s14 }
 0xbeb   :  { %v1077_v50 = vpop.permute.xlu1 %1076 }
 0xbec   :  { %4624 = vmatmul.mubr.msk.bf16.vlgmr.msra.gmra.mrb[28].mxu0 %vm268_vm0, %v1077_v50 }
 0xbed   :  { %4636 = vmatpush3.bf16.msra.mxu0 %v5467_v30  ;;  %4639 = vmatprep.mubr.msk.bf16.mxu0 %vm5289_vm1, %v5288_v44 }
 0xbee   :  { %4637 = vmatprep.subr.bf16.mxu0 %v5288_v44 }
 0xbf1   :  { %4638 = vmatpush3.bf16.msra.mxu0 %v5473_v32 }
 0xbf2   :  { %4651 = vmatprep.subr.bf16.mxu0 %v5288_v44 }
 0xbff   :  { %v1003_v21 = vpop.permute.xlu0 %1002 }
 0xc00   :  { %4616 = vmatmul.mubr.msk.bf16.vlgmr.msra.gmra.mrb[24].mxu1 %vm268_vm0, %v1003_v21 }
 0xc01   :  { %4628 = vmatpush3.bf16.msra.mxu1 %v5427_v51  ;;  %4631 = vmatprep.mubr.msk.bf16.mxu1 %vm5289_vm1, %v5288_v44 }
 0xc02   :  { %4629 = vmatprep.subr.bf16.mxu1 %v5288_v44 }
 0xc05   :  { %4630 = vmatpush3.bf16.msra.mxu1 %v5434_v53 }
 0xc06   :  { %4643 = vmatprep.subr.bf16.mxu1 %v5288_v44 }
 0xc08   :  { %4632 = vmatmul.mubr.msk.bf16.vlgmr.msra.gmra.mrb[28].mxu1 %vm268_vm0, %v1077_v50 }
 0xc09   :  { %4644 = vmatpush3.bf16.msra.mxu1 %v5408_v45  ;;  %4647 = vmatprep.mubr.msk.bf16.mxu1 %vm5289_vm1, %v5288_v44 }
 0xc0a   :  { %4645 = vmatprep.subr.bf16.mxu1 %v5288_v44 }
 0xc0d   :  { %4646 = vmatpush3.bf16.msra.mxu1 %v5417_v46 }
 0xc0e   :  { %4659 = vmatprep.subr.bf16.mxu1 %v5288_v44 }
 0xcbf   :  { %v1115_v54 = vpop.f32.mrb[28].mxu0 }
 0xcc0   :  { %v1235_v55 = vadd.f32 %v1115_v54, %v350_v52  ;;  %v4625_v56 = vpop.f32.mrb[29].mxu0 }
 0xcc1   :  { %v1118_v57 = vpop.f32.mrb[30].mxu0 }
 0xcc2   :  { %v4225_v58 = vmul.f32 -1.442695, %v1235_v55  ;;  %v4626_v59 = vpop.f32.mrb[31].mxu0 }
 0xcc4   :  { %5069 = vpow2.f32 %v4225_v58 }
 0xcce   :  { %v5070_v60 = vpop.eup %5069 }
 0xccf   :  { %v1239_v31 = vadd.f32 1.0, %v5070_v60 }
 0xcd1   :  { %5071 = vrcp.f32 %v1239_v31 }
 0xcd3   :  { %v1041_v62 = vpop.f32.mrb[24].mxu1 }
 0xcd4   :  { %v4617_v63 = vpop.f32.mrb[25].mxu1 }
 0xcd5   :  { %v1044_v0 = vpop.f32.mrb[26].mxu1 }
 0xcd6   :  { %v4618_v1 = vpop.f32.mrb[27].mxu1 }
 0xcdb   :  { %v5072_v2 = vpop.eup %5071  ;;  %v1155_v28 = vpop.f32.mrb[28].mxu1 }
 0xcdc   :  { %v1156_v3 = vadd.f32 %v1155_v28, %v1041_v62  ;;  %v4633_v4 = vpop.f32.mrb[29].mxu1  ;;  %v1242_v5 = vmul.f32 2.0, %v5072_v2  ;;  %v1244_v18 = vmul.f32 %v5072_v2, %v5675_v15 }
 0xcdd   :  { %v1158_v27 = vpop.f32.mrb[30].mxu1 }
 0xcde   :  { %v1161_v17 = vadd.f32 %v5448_v61, %v1156_v3  ;;  %v4634_v6 = vpop.f32.mrb[31].mxu1  ;;  %v4226_v8 = vadd.f32 -1.0, %v1242_v5 }
 0xce0   :  { %v4222_v9 = vmul.f32 -1.442695, %v1161_v17  ;;  %1246 = vrot.lane.b32.xlu1 %v4226_v8, %s5286_s3 }
 0xce2   :  { %5073 = vpow2.f32 %v4222_v9 }
 0xcec   :  { %v5074_v10 = vpop.eup %5073 }
 0xced   :  { %v1165_v11 = vadd.f32 1.0, %v5074_v10 }
 0xcef   :  { %5075 = vrcp.f32 %v1165_v11 }
 0xcf9   :  { %v5076_v13 = vpop.eup %5075 }
 0xcfa   :  { %v1168_v14 = vmul.f32 2.0, %v5076_v13  ;;  %v1170_v49 = vmul.f32 %v5076_v13, %v5680_v40 }
 0xcfc   :  { %v4223_v16 = vadd.f32 -1.0, %v1168_v14 }
 0xcfe   :  { %1172 = vrot.lane.b32.xlu0 %v4223_v16, %s5286_s3 }
 0xd52   :  { %v1247_v7 = vpop.permute.xlu1 %1246 }
 0xd53   :  { %v1249_v39 = vmul.f32 %v5072_v2, %v1247_v7 }
 0xd55   :  { %1251 = vrot.lane.b32.xlu1 %v1249_v39, %s5287_s14 }
 0xd70   :  { %v1173_v41 = vpop.permute.xlu0 %1172 }
 0xd71   :  { %v1175_v42 = vmul.f32 %v5076_v13, %v1173_v41 }
 0xd73   :  { %1177 = vrot.lane.b32.xlu0 %v1175_v42, %s5287_s14 }
 0xdc7   :  { %v1252_v43 = vpop.permute.xlu1 %1251 }
 0xdc8   :  { %v5715_v47 = vadd.f32 %v1252_v43, %v1244_v18 }
 0xdca   :  { %5077 = vtanh.f32 %v5715_v47 }
 0xdd4   :  { %v5078_v48 = vpop.eup %5077 }
 0xdd5   :  { %1257 = vrot.lane.b32.xlu1 %v5078_v48, %s5286_s3 }
 0xde5   :  { %v1178_v50 = vpop.permute.xlu0 %1177 }
 0xde6   :  { %v5720_v21 = vadd.f32 %v1178_v50, %v1170_v49 }
 0xde8   :  { %5079 = vtanh.f32 %v5720_v21 }
 0xdf2   :  { %v5080_v52 = vpop.eup %5079 }
 0xdf3   :  { %1183 = vrot.lane.b32.xlu0 %v5080_v52, %s5286_s3 }
 0xe47   :  { %v1258_v54 = vpop.permute.xlu1 %1257 }
 0xe48   :  { %v1260_v15 = vmul.f32 %v5072_v2, %v1258_v54 }
 0xe4a   :  { %v1261_v55 = vpack.c.bf16 %v1260_v15, %v1260_v15 }
 0xe4c   :  { %1263 = vrot.lane.b32.xlu1 %v1261_v55, %s5287_s14 }
 0xe65   :  { %v1184_v56 = vpop.permute.xlu0 %1183 }
 0xe66   :  { %v1186_v57 = vmul.f32 %v5076_v13, %v1184_v56 }
 0xe68   :  { %v1187_v58 = vpack.c.bf16 %v1186_v57, %v1186_v57 }
 0xe6a   :  { %1189 = vrot.lane.b32.xlu0 %v1187_v58, %s5287_s14 }
 0xebe   :  { %v1264_v59 = vpop.permute.xlu1 %1263 }
 0xebf   :  { %4648 = vmatmul.mubr.msk.bf16.vlgmr.msra.gmra.mrb[32].mxu1 %vm268_vm0, %v1264_v59 }
 0xec0   :  { %4660 = vmatpush3.bf16.msra.mxu1 %v5467_v30  ;;  %4663 = vmatprep.mubr.msk.bf16.mxu1 %vm5289_vm1, %v5288_v44 }
 0xec1   :  { %4661 = vmatprep.subr.bf16.mxu1 %v5288_v44 }
 0xec4   :  { %4662 = vmatpush3.bf16.msra.mxu1 %v5473_v32 }
 0xec5   :  { %4675 = vmatprep.subr.bf16.mxu1 %v5288_v44 }
 0xedc   :  { %v1190_v40 = vpop.permute.xlu0 %1189 }
 0xedd   :  { %4640 = vmatmul.mubr.msk.bf16.vlgmr.msra.gmra.mrb[32].mxu0 %vm268_vm0, %v1190_v40 }
 0xede   :  { %4652 = vmatpush3.bf16.msra.mxu0 %v5427_v51  ;;  %4655 = vmatprep.mubr.msk.bf16.mxu0 %vm5289_vm1, %v5288_v44  ;;  %v5750_v51 = vld [vmem:[%s6424_s4] ss:$0 sm:$0xff] }
 0xedf   :  { %4653 = vmatprep.subr.bf16.mxu0 %v5288_v44 }
 0xee2   :  { %4654 = vmatpush3.bf16.msra.mxu0 %v5434_v53  ;;  %v353_v53 = vadd.f32 %v5750_v51, %v5641_v20 }
 0xee3   :  { %4667 = vmatprep.subr.bf16.mxu0 %v5288_v44 }
 0xee5   :  { %4656 = vmatmul.mubr.msk.bf16.vlgmr.msra.gmra.mrb[36].mxu0 %vm268_vm0, %v1264_v59 }
 0xee6   :  { %4668 = vmatpush3.bf16.msra.mxu0 %v5408_v45  ;;  %4671 = vmatprep.mubr.msk.bf16.mxu0 %vm5289_vm1, %v5288_v44 }
 0xee7   :  { %4669 = vmatprep.subr.bf16.mxu0 %v5288_v44 }
 0xeea   :  { %4670 = vmatpush3.bf16.msra.mxu0 %v5417_v46 }
 0xeeb   :  { %4683 = vmatprep.subr.bf16.mxu0 %v5288_v44 }
 0xf92   :  { %v1302_v60 = vpop.f32.mrb[32].mxu1 }
 0xf93   :  { %v1422_v31 = vadd.f32 %v1302_v60, %v353_v53  ;;  %v4649_v45 = vpop.f32.mrb[33].mxu1 }
 0xf94   :  { %v1305_v62 = vpop.f32.mrb[34].mxu1  ;;  %v5808_v45 = vld [vmem:[%s6425_s5 + $0x8] sm:$0xff]  }
 0xf95   :  { %v4232_v63 = vmul.f32 -1.442695, %v1422_v31  ;;  %v4650_v0 = vpop.f32.mrb[35].mxu1  ;;  %v5782_v31 = vld [vmem:[%s6426_s6] sm:$0xff]   ;;  %v358_v62 = vadd.f32 %v5750_v51, %v5635_v12 }
 0xf97   :  { %5081 = vpow2.f32 %v4232_v63 }
 0xfa1   :  { %v5082_v1 = vpop.eup %5081 }
 0xfa2   :  { %v1426_v2 = vadd.f32 1.0, %v5082_v1 }
 0xfa4   :  { %5083 = vrcp.f32 %v1426_v2 }
 0xfae   :  { %v5084_v46 = vpop.eup %5083 }
 0xfaf   :  { %v1429_v28 = vmul.f32 2.0, %v5084_v46 }
 0xfb0   :  { %v1228_v3 = vpop.f32.mrb[32].mxu0 }
 0xfb1   :  { %v4641_v4 = vpop.f32.mrb[33].mxu0  ;;  %v4233_v5 = vadd.f32 -1.0, %v1429_v28 }
 0xfb2   :  { %v1231_v27 = vpop.f32.mrb[34].mxu0 }
 0xfb3   :  { %v4642_v17 = vpop.f32.mrb[35].mxu0  ;;  %1433 = vrot.lane.b32.xlu1 %v4233_v5, %s5286_s3 }
 0xfb8   :  { %v1342_v20 = vpop.f32.mrb[36].mxu0 }
 0xfb9   :  { %v1343_v6 = vadd.f32 %v1342_v20, %v1228_v3  ;;  %v4657_v8 = vpop.f32.mrb[37].mxu0 }
 0xfba   :  { %v1345_v9 = vpop.f32.mrb[38].mxu0 }
 0xfbb   :  { %v1348_v10 = vadd.f32 %v5448_v61, %v1343_v6  ;;  %v4658_v11 = vpop.f32.mrb[39].mxu0  ;;  %v1431_v61 = vmul.f32 %v5084_v46, %v5715_v47 }
 0xfbd   :  { %v4229_v13 = vmul.f32 -1.442695, %v1348_v10 }
 0xfbf   :  { %5085 = vpow2.f32 %v4229_v13 }
 0xfc9   :  { %v5086_v14 = vpop.eup %5085 }
 0xfca   :  { %v1352_v16 = vadd.f32 1.0, %v5086_v14  ;;  %v5818_v14 = vld [vmem:[%s6427_s8] ss:$0 sm:$0xff] }
 0xfcc   :  { %5087 = vrcp.f32 %v1352_v16 }
 0xfd6   :  { %v5088_v7 = vpop.eup %5087 }
 0xfd7   :  { %v1355_v39 = vmul.f32 2.0, %v5088_v7  ;;  %v1357_v54 = vmul.f32 %v5088_v7, %v5720_v21 }
 0xfd9   :  { %v4230_v41 = vadd.f32 -1.0, %v1355_v39 }
 0xfdb   :  { %1359 = vrot.lane.b32.xlu0 %v4230_v41, %s5286_s3 }
0x1025   :  { %v1434_v42 = vpop.permute.xlu1 %1433 }
0x1026   :  { %v1436_v18 = vmul.f32 %v5084_v46, %v1434_v42 }
0x1028   :  { %1438 = vrot.lane.b32.xlu1 %v1436_v18, %s5287_s14 }
0x104d   :  { %v1360_v43 = vpop.permute.xlu0 %1359 }
0x104e   :  { %v1362_v48 = vmul.f32 %v5088_v7, %v1360_v43 }
0x1050   :  { %1364 = vrot.lane.b32.xlu0 %v1362_v48, %s5287_s14 }
0x109a   :  { %v1439_v49 = vpop.permute.xlu1 %1438 }
0x109b   :  { %v5760_v50 = vadd.f32 %v1439_v49, %v1431_v61 }
0x109d   :  { %5089 = vtanh.f32 %v5760_v50 }
0x10a7   :  { %v5090_v52 = vpop.eup %5089 }
0x10a8   :  { %1444 = vrot.lane.b32.xlu1 %v5090_v52, %s5286_s3 }
0x10c2   :  { %v1365_v15 = vpop.permute.xlu0 %1364 }
0x10c3   :  { %v5765_v55 = vadd.f32 %v1365_v15, %v1357_v54 }
0x10c5   :  { %5091 = vtanh.f32 %v5765_v55 }
0x10cf   :  { %v5092_v56 = vpop.eup %5091 }
0x10d0   :  { %1370 = vrot.lane.b32.xlu0 %v5092_v56, %s5286_s3 }
0x111a   :  { %v1445_v57 = vpop.permute.xlu1 %1444 }
0x111b   :  { %v1447_v47 = vmul.f32 %v5084_v46, %v1445_v57 }
0x111d   :  { %v1448_v58 = vpack.c.bf16 %v1447_v47, %v1447_v47 }
0x111f   :  { %1450 = vrot.lane.b32.xlu1 %v1448_v58, %s5287_s14 }
0x1142   :  { %v1371_v59 = vpop.permute.xlu0 %1370 }
0x1143   :  { %v1373_v40 = vmul.f32 %v5088_v7, %v1371_v59 }
0x1145   :  { %v1374_v53 = vpack.c.bf16 %v1373_v40, %v1373_v40 }
0x1147   :  { %1376 = vrot.lane.b32.xlu0 %v1374_v53, %s5287_s14 }
0x1191   :  { %v1451_v60 = vpop.permute.xlu1 %1450 }
0x1192   :  { %4672 = vmatmul.mubr.msk.bf16.vlgmr.msra.gmra.mrb[40].mxu0 %vm268_vm0, %v1451_v60 }
0x1193   :  { %4684 = vmatpush3.bf16.msra.mxu0 %v5467_v30  ;;  %4687 = vmatprep.mubr.msk.bf16.mxu0 %vm5289_vm1, %v5288_v44  ;;  %v5791_v30 = vld [vmem:[%s6426_s6 + $0x8] sm:$0xff]  }
0x1194   :  { %4685 = vmatprep.subr.bf16.mxu0 %v5288_v44 }
0x1197   :  { %4686 = vmatpush3.bf16.msra.mxu0 %v5473_v32  ;;  %v5799_v32 = vld [vmem:[%s6425_s5] sm:$0xff]  }
0x1198   :  { %4699 = vmatprep.subr.bf16.mxu0 %v5288_v44 }
0x11b9   :  { %v1377_v21 = vpop.permute.xlu0 %1376 }
0x11ba   :  { %4664 = vmatmul.mubr.msk.bf16.vlgmr.msra.gmra.mrb[36].mxu1 %vm268_vm0, %v1377_v21 }
0x11bb   :  { %4676 = vmatpush3.bf16.msra.mxu1 %v5782_v31  ;;  %4679 = vmatprep.mubr.msk.bf16.mxu1 %vm5289_vm1, %v5288_v44 }
0x11bc   :  { %4677 = vmatprep.subr.bf16.mxu1 %v5288_v44 }
0x11bf   :  { %4678 = vmatpush3.bf16.msra.mxu1 %v5791_v30 }
0x11c0   :  { %4691 = vmatprep.subr.bf16.mxu1 %v5288_v44 }
0x11c2   :  { %4680 = vmatmul.mubr.msk.bf16.vlgmr.msra.gmra.mrb[40].mxu1 %vm268_vm0, %v1451_v60 }
0x11c3   :  { %4692 = vmatpush3.bf16.msra.mxu1 %v5799_v32  ;;  %4695 = vmatprep.mubr.msk.bf16.mxu1 %vm5289_vm1, %v5288_v44 }
0x11c4   :  { %4693 = vmatprep.subr.bf16.mxu1 %v5288_v44 }
0x11c7   :  { %4694 = vmatpush3.bf16.msra.mxu1 %v5808_v45 }
0x11c8   :  { %4707 = vmatprep.subr.bf16.mxu1 %v5288_v44 }
0x1265   :  { %v1489_v63 = vpop.f32.mrb[40].mxu0 }
0x1266   :  { %v1609_v0 = vadd.f32 %v1489_v63, %v358_v62  ;;  %v4673_v1 = vpop.f32.mrb[41].mxu0 }
0x1267   :  { %v1492_v2 = vpop.f32.mrb[42].mxu0 }
0x1268   :  { %v4239_v46 = vmul.f32 -1.442695, %v1609_v0  ;;  %v4674_v28 = vpop.f32.mrb[43].mxu0  ;;  %v5849_v2 = vld [vmem:[%s6428_s7 + $0x8] sm:$0xff]  }
0x1269   :  { %v361_v28 = vadd.f32 %v5750_v51, %v5639_v19 }
0x126a   :  { %5093 = vpow2.f32 %v4239_v46 }
0x1274   :  { %v5094_v3 = vpop.eup %5093 }
0x1275   :  { %v1613_v4 = vadd.f32 1.0, %v5094_v3 }
0x1277   :  { %5095 = vrcp.f32 %v1613_v4 }
0x1281   :  { %v5096_v5 = vpop.eup %5095 }
0x1282   :  { %v1616_v27 = vmul.f32 2.0, %v5096_v5  ;;  %v1618_v15 = vmul.f32 %v5096_v5, %v5760_v50 }
0x1284   :  { %v4240_v17 = vadd.f32 -1.0, %v1616_v27 }
0x1286   :  { %1620 = vrot.lane.b32.xlu1 %v4240_v17, %s5286_s3 }
0x128d   :  { %v1415_v20 = vpop.f32.mrb[36].mxu1 }
0x128e   :  { %v4665_v6 = vpop.f32.mrb[37].mxu1 }
0x128f   :  { %v1418_v8 = vpop.f32.mrb[38].mxu1 }
0x1290   :  { %v4666_v9 = vpop.f32.mrb[39].mxu1 }
0x1295   :  { %v1529_v12 = vpop.f32.mrb[40].mxu1 }
0x1296   :  { %v1530_v10 = vadd.f32 %v1529_v12, %v1415_v20  ;;  %v4681_v11 = vpop.f32.mrb[41].mxu1 }
0x1297   :  { %v1532_v13 = vpop.f32.mrb[42].mxu1 }
0x1298   :  { %v1535_v16 = vadd.f32 %v5818_v14, %v1530_v10  ;;  %v4682_v7 = vpop.f32.mrb[43].mxu1 }
0x129a   :  { %v4236_v39 = vmul.f32 -1.442695, %v1535_v16 }
0x129c   :  { %5097 = vpow2.f32 %v4236_v39 }
0x12a6   :  { %v5098_v41 = vpop.eup %5097 }
0x12a7   :  { %v1539_v42 = vadd.f32 1.0, %v5098_v41 }
0x12a9   :  { %5099 = vrcp.f32 %v1539_v42 }
0x12b3   :  { %v5100_v18 = vpop.eup %5099 }
0x12b4   :  { %v1542_v43 = vmul.f32 2.0, %v5100_v18  ;;  %v1544_v58 = vmul.f32 %v5100_v18, %v5765_v55  ;;  %v5840_v55 = vld [vmem:[%s6428_s7] sm:$0xff]  }
0x12b6   :  { %v4237_v48 = vadd.f32 -1.0, %v1542_v43 }
0x12b8   :  { %1546 = vrot.lane.b32.xlu0 %v4237_v48, %s5286_s3 }
0x12f8   :  { %v1621_v61 = vpop.permute.xlu1 %1620 }
0x12f9   :  { %v1623_v49 = vmul.f32 %v5096_v5, %v1621_v61 }
0x12fb   :  { %1625 = vrot.lane.b32.xlu1 %v1623_v49, %s5287_s14 }
0x132a   :  { %v1547_v52 = vpop.permute.xlu0 %1546 }
0x132b   :  { %v1549_v54 = vmul.f32 %v5100_v18, %v1547_v52 }
0x132d   :  { %1551 = vrot.lane.b32.xlu0 %v1549_v54, %s5287_s14 }
0x136d   :  { %v1626_v56 = vpop.permute.xlu1 %1625 }
0x136e   :  { %v5825_v57 = vadd.f32 %v1626_v56, %v1618_v15 }
0x1370   :  { %5101 = vtanh.f32 %v5825_v57 }
0x137a   :  { %v5102_v47 = vpop.eup %5101 }
0x137b   :  { %1631 = vrot.lane.b32.xlu1 %v5102_v47, %s5286_s3 }
0x139f   :  { %v1552_v59 = vpop.permute.xlu0 %1551 }
0x13a0   :  { %v5830_v40 = vadd.f32 %v1552_v59, %v1544_v58 }
0x13a2   :  { %5103 = vtanh.f32 %v5830_v40 }
0x13ac   :  { %v5104_v53 = vpop.eup %5103 }
0x13ad   :  { %1557 = vrot.lane.b32.xlu0 %v5104_v53, %s5286_s3 }
0x13ed   :  { %v1632_v60 = vpop.permute.xlu1 %1631 }
0x13ee   :  { %v1634_v50 = vmul.f32 %v5096_v5, %v1632_v60 }
0x13f0   :  { %v1635_v21 = vpack.c.bf16 %v1634_v50, %v1634_v50 }
0x13f2   :  { %1637 = vrot.lane.b32.xlu1 %v1635_v21, %s5287_s14 }
0x141f   :  { %v1558_v62 = vpop.permute.xlu0 %1557 }
0x1420   :  { %v1560_v63 = vmul.f32 %v5100_v18, %v1558_v62 }
0x1422   :  { %v1561_v0 = vpack.c.bf16 %v1560_v63, %v1560_v63 }
0x1424   :  { %1563 = vrot.lane.b32.xlu0 %v1561_v0, %s5287_s14 }
0x1464   :  { %v1638_v1 = vpop.permute.xlu1 %1637 }
0x1465   :  { %4696 = vmatmul.mubr.msk.bf16.vlgmr.msra.gmra.mrb[44].mxu1 %vm268_vm0, %v1638_v1 }
0x1466   :  { %4708 = vmatpush3.bf16.msra.mxu1 %v5840_v55  ;;  %4711 = vmatprep.mubr.msk.bf16.mxu1 %vm5289_vm1, %v5288_v44 }
0x1467   :  { %4709 = vmatprep.subr.bf16.mxu1 %v5288_v44 }
0x146a   :  { %4710 = vmatpush3.bf16.msra.mxu1 %v5849_v2 }
0x146b   :  { %4723 = vmatprep.subr.bf16.mxu1 %v5288_v44 }
0x1496   :  { %v1564_v46 = vpop.permute.xlu0 %1563 }
0x1497   :  { %4688 = vmatmul.mubr.msk.bf16.vlgmr.msra.gmra.mrb[44].mxu0 %vm268_vm0, %v1564_v46 }
0x1498   :  { %4700 = vmatpush3.bf16.msra.mxu0 %v5782_v31  ;;  %4703 = vmatprep.mubr.msk.bf16.mxu0 %vm5289_vm1, %v5288_v44 }
0x1499   :  { %4701 = vmatprep.subr.bf16.mxu0 %v5288_v44 }
0x149c   :  { %4702 = vmatpush3.bf16.msra.mxu0 %v5791_v30 }
0x149d   :  { %4715 = vmatprep.subr.bf16.mxu0 %v5288_v44 }
0x149f   :  { %4704 = vmatmul.mubr.msk.bf16.vlgmr.msra.gmra.mrb[48].mxu0 %vm268_vm0, %v1638_v1 }
0x14a0   :  { %4716 = vmatpush3.bf16.msra.mxu0 %v5799_v32  ;;  %4719 = vmatprep.mubr.msk.bf16.mxu0 %vm5289_vm1, %v5288_v44 }
0x14a1   :  { %4717 = vmatprep.subr.bf16.mxu0 %v5288_v44 }
0x14a4   :  { %4718 = vmatpush3.bf16.msra.mxu0 %v5808_v45 }
0x14a5   :  { %4731 = vmatprep.subr.bf16.mxu0 %v5288_v44 }
0x1538   :  { %v1676_v3 = vpop.f32.mrb[44].mxu1 }
0x1539   :  { %v1796_v4 = vadd.f32 %v1676_v3, %v361_v28  ;;  %v4697_v5 = vpop.f32.mrb[45].mxu1 }
0x153a   :  { %v1679_v27 = vpop.f32.mrb[46].mxu1 }
0x153b   :  { %v4246_v17 = vmul.f32 -1.442695, %v1796_v4  ;;  %v4698_v20 = vpop.f32.mrb[47].mxu1 }
0x153d   :  { %5105 = vpow2.f32 %v4246_v17  ;;  %v366_v17 = vadd.f32 %v5750_v51, %v5645_v24 }
0x1547   :  { %v5106_v6 = vpop.eup %5105 }
0x1548   :  { %v1800_v8 = vadd.f32 1.0, %v5106_v6 }
0x154a   :  { %5107 = vrcp.f32 %v1800_v8 }
0x1554   :  { %v5108_v9 = vpop.eup %5107 }
0x1555   :  { %v1803_v12 = vmul.f32 2.0, %v5108_v9  ;;  %v1805_v53 = vmul.f32 %v5108_v9, %v5825_v57 }
0x1557   :  { %v4247_v10 = vadd.f32 -1.0, %v1803_v12 }
0x1559   :  { %1807 = vrot.lane.b32.xlu1 %v4247_v10, %s5286_s3 }
0x156a   :  { %v1602_v11 = vpop.f32.mrb[44].mxu0 }
0x156b   :  { %v4689_v13 = vpop.f32.mrb[45].mxu0 }
0x156c   :  { %v1605_v16 = vpop.f32.mrb[46].mxu0 }
0x156d   :  { %v4690_v7 = vpop.f32.mrb[47].mxu0 }
0x1572   :  { %v1716_v19 = vpop.f32.mrb[48].mxu0 }
0x1573   :  { %v1717_v39 = vadd.f32 %v1716_v19, %v1602_v11  ;;  %v4705_v41 = vpop.f32.mrb[49].mxu0 }
0x1574   :  { %v1719_v42 = vpop.f32.mrb[50].mxu0 }
0x1575   :  { %v1722_v18 = vadd.f32 %v5818_v14, %v1717_v39  ;;  %v4706_v43 = vpop.f32.mrb[51].mxu0 }
0x1577   :  { %v4243_v48 = vmul.f32 -1.442695, %v1722_v18 }
0x1579   :  { %5109 = vpow2.f32 %v4243_v48 }
0x1583   :  { %v5110_v61 = vpop.eup %5109 }
0x1584   :  { %v1726_v49 = vadd.f32 1.0, %v5110_v61 }
0x1586   :  { %5111 = vrcp.f32 %v1726_v49 }
0x1590   :  { %v5112_v52 = vpop.eup %5111 }
0x1591   :  { %v1729_v54 = vmul.f32 2.0, %v5112_v52  ;;  %v1731_v62 = vmul.f32 %v5112_v52, %v5830_v40 }
0x1593   :  { %v4244_v15 = vadd.f32 -1.0, %v1729_v54 }
0x1595   :  { %1733 = vrot.lane.b32.xlu0 %v4244_v15, %s5286_s3 }
0x15cb   :  { %v1808_v56 = vpop.permute.xlu1 %1807 }
0x15cc   :  { %v1810_v47 = vmul.f32 %v5108_v9, %v1808_v56 }
0x15ce   :  { %1812 = vrot.lane.b32.xlu1 %v1810_v47, %s5287_s14 }
0x1607   :  { %v1734_v58 = vpop.permute.xlu0 %1733 }
0x1608   :  { %v1736_v59 = vmul.f32 %v5112_v52, %v1734_v58 }
0x160a   :  { %1738 = vrot.lane.b32.xlu0 %v1736_v59, %s5287_s14 }
0x1640   :  { %v1813_v60 = vpop.permute.xlu1 %1812 }
0x1641   :  { %v5875_v50 = vadd.f32 %v1813_v60, %v1805_v53 }
0x1643   :  { %5113 = vtanh.f32 %v5875_v50 }
0x164d   :  { %v5114_v21 = vpop.eup %5113 }
0x164e   :  { %1818 = vrot.lane.b32.xlu1 %v5114_v21, %s5286_s3 }
0x167c   :  { %v1739_v63 = vpop.permute.xlu0 %1738 }
0x167d   :  { %v5880_v0 = vadd.f32 %v1739_v63, %v1731_v62 }
0x167f   :  { %5115 = vtanh.f32 %v5880_v0 }
0x1689   :  { %v5116_v1 = vpop.eup %5115 }
0x168a   :  { %1744 = vrot.lane.b32.xlu0 %v5116_v1, %s5286_s3 }
0x16c0   :  { %v1819_v46 = vpop.permute.xlu1 %1818 }
0x16c1   :  { %v1821_v57 = vmul.f32 %v5108_v9, %v1819_v46 }
0x16c3   :  { %v1822_v28 = vpack.c.bf16 %v1821_v57, %v1821_v57 }
0x16c5   :  { %1824 = vrot.lane.b32.xlu1 %v1822_v28, %s5287_s14 }
0x16fc   :  { %v1745_v3 = vpop.permute.xlu0 %1744 }
0x16fd   :  { %v1747_v4 = vmul.f32 %v5112_v52, %v1745_v3 }
0x16ff   :  { %v1748_v5 = vpack.c.bf16 %v1747_v4, %v1747_v4 }
0x1701   :  { %1750 = vrot.lane.b32.xlu0 %v1748_v5, %s5287_s14 }
0x1737   :  { %v1825_v27 = vpop.permute.xlu1 %1824 }
0x1738   :  { %4720 = vmatmul.mubr.msk.bf16.vlgmr.msra.gmra.mrb[52].mxu0 %vm268_vm0, %v1825_v27 }
0x1739   :  { %4732 = vmatpush3.bf16.msra.mxu0 %v5840_v55  ;;  %4735 = vmatprep.mubr.msk.bf16.mxu0 %vm5289_vm1, %v5288_v44 }
0x173a   :  { %4733 = vmatprep.subr.bf16.mxu0 %v5288_v44 }
0x173d   :  { %4734 = vmatpush3.bf16.msra.mxu0 %v5849_v2 }
0x173e   :  { %4747 = vmatprep.subr.bf16.mxu0 %v5288_v44 }
0x1773   :  { %v1751_v40 = vpop.permute.xlu0 %1750 }
0x1774   :  { %4712 = vmatmul.mubr.msk.bf16.vlgmr.msra.gmra.mrb[48].mxu1 %vm268_vm0, %v1751_v40 }
0x1775   :  { %4724 = vmatpush3.bf16.msra.mxu1 %v5782_v31  ;;  %4727 = vmatprep.mubr.msk.bf16.mxu1 %vm5289_vm1, %v5288_v44 }
0x1776   :  { %4725 = vmatprep.subr.bf16.mxu1 %v5288_v44 }
0x1779   :  { %4726 = vmatpush3.bf16.msra.mxu1 %v5791_v30 }
0x177a   :  { %4739 = vmatprep.subr.bf16.mxu1 %v5288_v44 }
0x177c   :  { %4728 = vmatmul.mubr.msk.bf16.vlgmr.msra.gmra.mrb[52].mxu1 %vm268_vm0, %v1825_v27 }
0x177d   :  { %4740 = vmatpush3.bf16.msra.mxu1 %v5799_v32  ;;  %4743 = vmatprep.mubr.msk.bf16.mxu1 %vm5289_vm1, %v5288_v44 }
0x177e   :  { %4741 = vmatprep.subr.bf16.mxu1 %v5288_v44 }
0x1781   :  { %4742 = vmatpush3.bf16.msra.mxu1 %v5808_v45 }
0x1782   :  { %4755 = vmatprep.subr.bf16.mxu1 %v5288_v44 }
0x180b   :  { %v1863_v20 = vpop.f32.mrb[52].mxu0 }
0x180c   :  { %v1983_v6 = vadd.f32 %v1863_v20, %v366_v17  ;;  %v4721_v8 = vpop.f32.mrb[53].mxu0 }
0x180d   :  { %v1866_v9 = vpop.f32.mrb[54].mxu0 }
0x180e   :  { %v4253_v12 = vmul.f32 -1.442695, %v1983_v6  ;;  %v4722_v10 = vpop.f32.mrb[55].mxu0  ;;  %v369_v9 = vadd.f32 %v5750_v51, %v5649_v26 }
0x1810   :  { %5117 = vpow2.f32 %v4253_v12 }
0x181a   :  { %v5118_v11 = vpop.eup %5117 }
0x181b   :  { %v1987_v13 = vadd.f32 1.0, %v5118_v11 }
0x181d   :  { %5119 = vrcp.f32 %v1987_v13 }
0x1827   :  { %v5120_v16 = vpop.eup %5119 }
0x1828   :  { %v1990_v7 = vmul.f32 2.0, %v5120_v16  ;;  %v1992_v63 = vmul.f32 %v5120_v16, %v5875_v50 }
0x182a   :  { %v4254_v19 = vadd.f32 -1.0, %v1990_v7 }
0x182c   :  { %1994 = vrot.lane.b32.xlu1 %v4254_v19, %s5286_s3 }
0x1847   :  { %v1789_v39 = vpop.f32.mrb[48].mxu1 }
0x1848   :  { %v4713_v41 = vpop.f32.mrb[49].mxu1 }
0x1849   :  { %v1792_v42 = vpop.f32.mrb[50].mxu1 }
0x184a   :  { %v4714_v18 = vpop.f32.mrb[51].mxu1 }
0x184f   :  { %v1903_v24 = vpop.f32.mrb[52].mxu1 }
0x1850   :  { %v1904_v43 = vadd.f32 %v1903_v24, %v1789_v39  ;;  %v4729_v48 = vpop.f32.mrb[53].mxu1 }
0x1851   :  { %v1906_v61 = vpop.f32.mrb[54].mxu1 }
0x1852   :  { %v1909_v49 = vadd.f32 %v5818_v14, %v1904_v43  ;;  %v4730_v52 = vpop.f32.mrb[55].mxu1 }
0x1854   :  { %v4250_v54 = vmul.f32 -1.442695, %v1909_v49 }
0x1856   :  { %5121 = vpow2.f32 %v4250_v54 }
0x1860   :  { %v5122_v15 = vpop.eup %5121 }
0x1861   :  { %v1913_v56 = vadd.f32 1.0, %v5122_v15 }
0x1863   :  { %5123 = vrcp.f32 %v1913_v56 }
0x186d   :  { %v5124_v47 = vpop.eup %5123 }
0x186e   :  { %v1916_v58 = vmul.f32 2.0, %v5124_v47  ;;  %v1918_v28 = vmul.f32 %v5124_v47, %v5880_v0 }
0x1870   :  { %v4251_v59 = vadd.f32 -1.0, %v1916_v58 }
0x1872   :  { %1920 = vrot.lane.b32.xlu0 %v4251_v59, %s5286_s3 }
0x189e   :  { %v1995_v53 = vpop.permute.xlu1 %1994 }
0x189f   :  { %v1997_v60 = vmul.f32 %v5120_v16, %v1995_v53 }
0x18a1   :  { %1999 = vrot.lane.b32.xlu1 %v1997_v60, %s5287_s14 }
0x18e4   :  { %v1921_v21 = vpop.permute.xlu0 %1920 }
0x18e5   :  { %v1923_v62 = vmul.f32 %v5124_v47, %v1921_v21 }
0x18e7   :  { %1925 = vrot.lane.b32.xlu0 %v1923_v62, %s5287_s14 }
0x1913   :  { %v2000_v1 = vpop.permute.xlu1 %1999 }
0x1914   :  { %v5915_v46 = vadd.f32 %v2000_v1, %v1992_v63 }
0x1916   :  { %5125 = vtanh.f32 %v5915_v46 }
0x1920   :  { %v5126_v57 = vpop.eup %5125 }
0x1921   :  { %2005 = vrot.lane.b32.xlu1 %v5126_v57, %s5286_s3 }
0x1959   :  { %v1926_v3 = vpop.permute.xlu0 %1925 }
0x195a   :  { %v5920_v4 = vadd.f32 %v1926_v3, %v1918_v28 }
0x195c   :  { %5127 = vtanh.f32 %v5920_v4 }
0x1966   :  { %v5128_v5 = vpop.eup %5127 }
0x1967   :  { %1931 = vrot.lane.b32.xlu0 %v5128_v5, %s5286_s3 }
0x1993   :  { %v2006_v27 = vpop.permute.xlu1 %2005 }
0x1994   :  { %v2008_v50 = vmul.f32 %v5120_v16, %v2006_v27 }
0x1996   :  { %v2009_v40 = vpack.c.bf16 %v2008_v50, %v2008_v50 }
0x1998   :  { %2011 = vrot.lane.b32.xlu1 %v2009_v40, %s5287_s14 }
0x19d9   :  { %v1932_v17 = vpop.permute.xlu0 %1931 }
0x19da   :  { %v1934_v20 = vmul.f32 %v5124_v47, %v1932_v17 }
0x19dc   :  { %v1935_v6 = vpack.c.bf16 %v1934_v20, %v1934_v20 }
0x19de   :  { %1937 = vrot.lane.b32.xlu0 %v1935_v6, %s5287_s14 }
0x1a0a   :  { %v2012_v8 = vpop.permute.xlu1 %2011 }
0x1a0b   :  { %4744 = vmatmul.mubr.msk.bf16.vlgmr.msra.gmra.mrb[56].mxu1 %vm268_vm0, %v2012_v8 }
0x1a0c   :  { %4756 = vmatpush3.bf16.msra.mxu1 %v5840_v55  ;;  %4759 = vmatprep.mubr.msk.bf16.mxu1 %vm5289_vm1, %v5288_v44 }
0x1a0d   :  { %4757 = vmatprep.subr.bf16.mxu1 %v5288_v44 }
0x1a10   :  { %4758 = vmatpush3.bf16.msra.mxu1 %v5849_v2 }
0x1a11   :  { %4771 = vmatprep.subr.bf16.mxu1 %v5288_v44 }
0x1a50   :  { %v1938_v0 = vpop.permute.xlu0 %1937 }
0x1a51   :  { %4736 = vmatmul.mubr.msk.bf16.vlgmr.msra.gmra.mrb[56].mxu0 %vm268_vm0, %v1938_v0 }
0x1a52   :  { %4748 = vmatpush3.bf16.msra.mxu0 %v5782_v31  ;;  %4751 = vmatprep.mubr.msk.bf16.mxu0 %vm5289_vm1, %v5288_v44 }
0x1a53   :  { %4749 = vmatprep.subr.bf16.mxu0 %v5288_v44 }
0x1a56   :  { %4750 = vmatpush3.bf16.msra.mxu0 %v5791_v30 }
0x1a57   :  { %4763 = vmatprep.subr.bf16.mxu0 %v5288_v44 }
0x1a59   :  { %4752 = vmatmul.mubr.msk.bf16.vlgmr.msra.gmra.mrb[60].mxu0 %vm268_vm0, %v2012_v8 }
0x1a5a   :  { %4764 = vmatpush3.bf16.msra.mxu0 %v5799_v32  ;;  %4767 = vmatprep.mubr.msk.bf16.mxu0 %vm5289_vm1, %v5288_v44 }
0x1a5b   :  { %4765 = vmatprep.subr.bf16.mxu0 %v5288_v44 }
0x1a5e   :  { %4766 = vmatpush3.bf16.msra.mxu0 %v5808_v45 }
0x1a5f   :  { %4779 = vmatprep.subr.bf16.mxu0 %v5288_v44 }
0x1ade   :  { %v2050_v12 = vpop.f32.mrb[56].mxu1 }
0x1adf   :  { %v2170_v10 = vadd.f32 %v2050_v12, %v369_v9  ;;  %v4745_v11 = vpop.f32.mrb[57].mxu1 }
0x1ae0   :  { %v2053_v13 = vpop.f32.mrb[58].mxu1  ;;  %v374_v11 = vadd.f32 %v5750_v51, %v5643_v23 }
0x1ae1   :  { %v4260_v16 = vmul.f32 -1.442695, %v2170_v10  ;;  %v4746_v7 = vpop.f32.mrb[59].mxu1 }
0x1ae3   :  { %5129 = vpow2.f32 %v4260_v16 }
0x1aed   :  { %v5130_v19 = vpop.eup %5129 }
0x1aee   :  { %v2174_v39 = vadd.f32 1.0, %v5130_v19 }
0x1af0   :  { %5131 = vrcp.f32 %v2174_v39 }
0x1afa   :  { %v5132_v41 = vpop.eup %5131 }
0x1afb   :  { %v2177_v42 = vmul.f32 2.0, %v5132_v41  ;;  %v2179_v28 = vmul.f32 %v5132_v41, %v5915_v46 }
0x1afd   :  { %v4261_v18 = vadd.f32 -1.0, %v2177_v42 }
0x1aff   :  { %2181 = vrot.lane.b32.xlu1 %v4261_v18, %s5286_s3 }
0x1b24   :  { %v1976_v24 = vpop.f32.mrb[56].mxu0 }
0x1b25   :  { %v4737_v43 = vpop.f32.mrb[57].mxu0 }
0x1b26   :  { %v1979_v48 = vpop.f32.mrb[58].mxu0 }
0x1b27   :  { %v4738_v61 = vpop.f32.mrb[59].mxu0 }
0x1b2c   :  { %v2090_v26 = vpop.f32.mrb[60].mxu0 }
0x1b2d   :  { %v2091_v49 = vadd.f32 %v2090_v26, %v1976_v24  ;;  %v4753_v52 = vpop.f32.mrb[61].mxu0 }
0x1b2e   :  { %v2093_v54 = vpop.f32.mrb[62].mxu0 }
0x1b2f   :  { %v2096_v15 = vadd.f32 %v5818_v14, %v2091_v49  ;;  %v4754_v56 = vpop.f32.mrb[63].mxu0 }
0x1b31   :  { %v4257_v47 = vmul.f32 -1.442695, %v2096_v15 }
0x1b33   :  { %5133 = vpow2.f32 %v4257_v47 }
0x1b3d   :  { %v5134_v58 = vpop.eup %5133 }
0x1b3e   :  { %v2100_v59 = vadd.f32 1.0, %v5134_v58 }
0x1b40   :  { %5135 = vrcp.f32 %v2100_v59 }
0x1b4a   :  { %v5136_v53 = vpop.eup %5135 }
0x1b4b   :  { %v2103_v60 = vmul.f32 2.0, %v5136_v53  ;;  %v2105_v50 = vmul.f32 %v5136_v53, %v5920_v4 }
0x1b4d   :  { %v4258_v21 = vadd.f32 -1.0, %v2103_v60 }
0x1b4f   :  { %2107 = vrot.lane.b32.xlu0 %v4258_v21, %s5286_s3 }
0x1b71   :  { %v2182_v62 = vpop.permute.xlu1 %2181 }
0x1b72   :  { %v2184_v63 = vmul.f32 %v5132_v41, %v2182_v62 }
0x1b74   :  { %2186 = vrot.lane.b32.xlu1 %v2184_v63, %s5287_s14 }
0x1bc1   :  { %v2108_v1 = vpop.permute.xlu0 %2107 }
0x1bc2   :  { %v2110_v57 = vmul.f32 %v5136_v53, %v2108_v1 }
0x1bc4   :  { %2112 = vrot.lane.b32.xlu0 %v2110_v57, %s5287_s14 }
0x1be6   :  { %v2187_v3 = vpop.permute.xlu1 %2186 }
0x1be7   :  { %v5955_v5 = vadd.f32 %v2187_v3, %v2179_v28 }
0x1be9   :  { %5137 = vtanh.f32 %v5955_v5 }
0x1bf3   :  { %v5138_v27 = vpop.eup %5137 }
0x1bf4   :  { %2192 = vrot.lane.b32.xlu1 %v5138_v27, %s5286_s3 }
0x1c36   :  { %v2113_v40 = vpop.permute.xlu0 %2112 }
0x1c37   :  { %v5960_v17 = vadd.f32 %v2113_v40, %v2105_v50 }
0x1c39   :  { %5139 = vtanh.f32 %v5960_v17 }
0x1c43   :  { %v5140_v20 = vpop.eup %5139 }
0x1c44   :  { %2118 = vrot.lane.b32.xlu0 %v5140_v20, %s5286_s3 }
0x1c66   :  { %v2193_v6 = vpop.permute.xlu1 %2192 }
0x1c67   :  { %v2195_v46 = vmul.f32 %v5132_v41, %v2193_v6 }
0x1c69   :  { %v2196_v8 = vpack.c.bf16 %v2195_v46, %v2195_v46 }
0x1c6b   :  { %2198 = vrot.lane.b32.xlu1 %v2196_v8, %s5287_s14 }
0x1cb6   :  { %v2119_v0 = vpop.permute.xlu0 %2118 }
0x1cb7   :  { %v2121_v9 = vmul.f32 %v5136_v53, %v2119_v0 }
0x1cb9   :  { %v2122_v12 = vpack.c.bf16 %v2121_v9, %v2121_v9 }
0x1cbb   :  { %2124 = vrot.lane.b32.xlu0 %v2122_v12, %s5287_s14 }
0x1cdd   :  { %v2199_v10 = vpop.permute.xlu1 %2198 }
0x1cde   :  { %4768 = vmatmul.mubr.msk.bf16.vlgmr.msra.gmra.mrb[64].mxu0 %vm268_vm0, %v2199_v10 }
0x1cdf   :  { %4780 = vmatpush3.bf16.msra.mxu0 %v5840_v55  ;;  %4783 = vmatprep.mubr.msk.bf16.mxu0 %vm5289_vm1, %v5288_v44 }
0x1ce0   :  { %4781 = vmatprep.subr.bf16.mxu0 %v5288_v44 }
0x1ce3   :  { %4782 = vmatpush3.bf16.msra.mxu0 %v5849_v2 }
0x1ce4   :  { %4795 = vmatprep.subr.bf16.mxu0 %v5288_v44 }
0x1d2d   :  { %v2125_v4 = vpop.permute.xlu0 %2124 }
0x1d2e   :  { %4760 = vmatmul.mubr.msk.bf16.vlgmr.msra.gmra.mrb[60].mxu1 %vm268_vm0, %v2125_v4 }
0x1d2f   :  { %4772 = vmatpush3.bf16.msra.mxu1 %v5782_v31  ;;  %4775 = vmatprep.mubr.msk.bf16.mxu1 %vm5289_vm1, %v5288_v44 }
0x1d30   :  { %4773 = vmatprep.subr.bf16.mxu1 %v5288_v44 }
0x1d33   :  { %4774 = vmatpush3.bf16.msra.mxu1 %v5791_v30 }
0x1d34   :  { %4787 = vmatprep.subr.bf16.mxu1 %v5288_v44 }
0x1d36   :  { %4776 = vmatmul.mubr.msk.bf16.vlgmr.msra.gmra.mrb[64].mxu1 %vm268_vm0, %v2199_v10 }
0x1d37   :  { %4788 = vmatpush3.bf16.msra.mxu1 %v5799_v32  ;;  %4791 = vmatprep.mubr.msk.bf16.mxu1 %vm5289_vm1, %v5288_v44 }
0x1d38   :  { %4789 = vmatprep.subr.bf16.mxu1 %v5288_v44 }
0x1d3b   :  { %4790 = vmatpush3.bf16.msra.mxu1 %v5808_v45 }
0x1d3c   :  { %4803 = vmatprep.subr.bf16.mxu1 %v5288_v44 }
0x1db1   :  { %v2237_v13 = vpop.f32.mrb[64].mxu0 }
0x1db2   :  { %v2357_v16 = vadd.f32 %v2237_v13, %v374_v11  ;;  %v4769_v7 = vpop.f32.mrb[65].mxu0 }
0x1db3   :  { %v2240_v19 = vpop.f32.mrb[66].mxu0 }
0x1db4   :  { %v4267_v39 = vmul.f32 -1.442695, %v2357_v16  ;;  %v4770_v41 = vpop.f32.mrb[67].mxu0  ;;  %v377_v16 = vadd.f32 %v5750_v51, %v5647_v22 }
0x1db6   :  { %5141 = vpow2.f32 %v4267_v39 }
0x1dc0   :  { %v5142_v42 = vpop.eup %5141 }
0x1dc1   :  { %v2361_v18 = vadd.f32 1.0, %v5142_v42 }
0x1dc3   :  { %5143 = vrcp.f32 %v2361_v18 }
0x1dcd   :  { %v5144_v24 = vpop.eup %5143 }
0x1dce   :  { %v2364_v43 = vmul.f32 2.0, %v5144_v24  ;;  %v2366_v27 = vmul.f32 %v5144_v24, %v5955_v5 }
0x1dd0   :  { %v4268_v48 = vadd.f32 -1.0, %v2364_v43 }
0x1dd2   :  { %2368 = vrot.lane.b32.xlu1 %v4268_v48, %s5286_s3 }
0x1e01   :  { %v2163_v61 = vpop.f32.mrb[60].mxu1 }
0x1e02   :  { %v4761_v26 = vpop.f32.mrb[61].mxu1 }
0x1e03   :  { %v2166_v49 = vpop.f32.mrb[62].mxu1 }
0x1e04   :  { %v4762_v52 = vpop.f32.mrb[63].mxu1 }
0x1e09   :  { %v2277_v23 = vpop.f32.mrb[64].mxu1 }
0x1e0a   :  { %v2278_v54 = vadd.f32 %v2277_v23, %v2163_v61  ;;  %v4777_v15 = vpop.f32.mrb[65].mxu1 }
0x1e0b   :  { %v2280_v56 = vpop.f32.mrb[66].mxu1 }
0x1e0c   :  { %v2283_v47 = vadd.f32 %v5818_v14, %v2278_v54  ;;  %v4778_v58 = vpop.f32.mrb[67].mxu1 }
0x1e0e   :  { %v4264_v59 = vmul.f32 -1.442695, %v2283_v47 }
0x1e10   :  { %5145 = vpow2.f32 %v4264_v59 }
0x1e1a   :  { %v5146_v53 = vpop.eup %5145 }
0x1e1b   :  { %v2287_v60 = vadd.f32 1.0, %v5146_v53 }
0x1e1d   :  { %5147 = vrcp.f32 %v2287_v60 }
0x1e27   :  { %v5148_v21 = vpop.eup %5147 }
0x1e28   :  { %v2290_v62 = vmul.f32 2.0, %v5148_v21  ;;  %v2292_v6 = vmul.f32 %v5148_v21, %v5960_v17 }
0x1e2a   :  { %v4265_v63 = vadd.f32 -1.0, %v2290_v62 }
0x1e2c   :  { %2294 = vrot.lane.b32.xlu0 %v4265_v63, %s5286_s3 }
0x1e44   :  { %v2369_v1 = vpop.permute.xlu1 %2368 }
0x1e45   :  { %v2371_v57 = vmul.f32 %v5144_v24, %v2369_v1 }
0x1e47   :  { %2373 = vrot.lane.b32.xlu1 %v2371_v57, %s5287_s14 }
0x1e9e   :  { %v2295_v28 = vpop.permute.xlu0 %2294 }
0x1e9f   :  { %v2297_v3 = vmul.f32 %v5148_v21, %v2295_v28 }
0x1ea1   :  { %2299 = vrot.lane.b32.xlu0 %v2297_v3, %s5287_s14 }
0x1eb9   :  { %v2374_v50 = vpop.permute.xlu1 %2373 }
0x1eba   :  { %v5995_v40 = vadd.f32 %v2374_v50, %v2366_v27 }
0x1ebc   :  { %5149 = vtanh.f32 %v5995_v40 }
0x1ec6   :  { %v5150_v20 = vpop.eup %5149 }
0x1ec7   :  { %2379 = vrot.lane.b32.xlu1 %v5150_v20, %s5286_s3 }
0x1f13   :  { %v2300_v46 = vpop.permute.xlu0 %2299 }
0x1f14   :  { %v6000_v8 = vadd.f32 %v2300_v46, %v2292_v6 }
0x1f16   :  { %5151 = vtanh.f32 %v6000_v8 }
0x1f20   :  { %v5152_v0 = vpop.eup %5151 }
0x1f21   :  { %2305 = vrot.lane.b32.xlu0 %v5152_v0, %s5286_s3 }
0x1f39   :  { %v2380_v9 = vpop.permute.xlu1 %2379 }
0x1f3a   :  { %v2382_v5 = vmul.f32 %v5144_v24, %v2380_v9 }
0x1f3c   :  { %v2383_v12 = vpack.c.bf16 %v2382_v5, %v2382_v5 }
0x1f3e   :  { %2385 = vrot.lane.b32.xlu1 %v2383_v12, %s5287_s14 }
0x1f93   :  { %v2306_v10 = vpop.permute.xlu0 %2305 }
0x1f94   :  { %v2308_v4 = vmul.f32 %v5148_v21, %v2306_v10 }
0x1f96   :  { %v2309_v11 = vpack.c.bf16 %v2308_v4, %v2308_v4 }
0x1f98   :  { %2311 = vrot.lane.b32.xlu0 %v2309_v11, %s5287_s14 }
0x1fb0   :  { %v2386_v13 = vpop.permute.xlu1 %2385 }
0x1fb1   :  { %4792 = vmatmul.mubr.msk.bf16.vlgmr.msra.gmra.mrb[68].mxu1 %vm268_vm0, %v2386_v13 }
0x1fb2   :  { %4804 = vmatpush3.bf16.msra.mxu1 %v5840_v55  ;;  %4807 = vmatprep.mubr.msk.bf16.mxu1 %vm5289_vm1, %v5288_v44 }
0x1fb3   :  { %4805 = vmatprep.subr.bf16.mxu1 %v5288_v44 }
0x1fb6   :  { %4806 = vmatpush3.bf16.msra.mxu1 %v5849_v2 }
0x1fb7   :  { %4819 = vmatprep.subr.bf16.mxu1 %v5288_v44 }
0x200a   :  { %v2312_v17 = vpop.permute.xlu0 %2311 }
0x200b   :  { %4784 = vmatmul.mubr.msk.bf16.vlgmr.msra.gmra.mrb[68].mxu0 %vm268_vm0, %v2312_v17 }
0x200c   :  { %4796 = vmatpush3.bf16.msra.mxu0 %v5782_v31  ;;  %4799 = vmatprep.mubr.msk.bf16.mxu0 %vm5289_vm1, %v5288_v44 }
0x200d   :  { %4797 = vmatprep.subr.bf16.mxu0 %v5288_v44 }
0x2010   :  { %4798 = vmatpush3.bf16.msra.mxu0 %v5791_v30 }
0x2011   :  { %4811 = vmatprep.subr.bf16.mxu0 %v5288_v44 }
0x2013   :  { %4800 = vmatmul.mubr.msk.bf16.vlgmr.msra.gmra.mrb[72].mxu0 %vm268_vm0, %v2386_v13 }
0x2014   :  { %4812 = vmatpush3.bf16.msra.mxu0 %v5799_v32  ;;  %4815 = vmatprep.mubr.msk.bf16.mxu0 %vm5289_vm1, %v5288_v44 }
0x2015   :  { %4813 = vmatprep.subr.bf16.mxu0 %v5288_v44 }
0x2018   :  { %4814 = vmatpush3.bf16.msra.mxu0 %v5808_v45 }
0x2019   :  { %4827 = vmatprep.subr.bf16.mxu0 %v5288_v44 }
0x2084   :  { %v2424_v7 = vpop.f32.mrb[68].mxu1 }
0x2085   :  { %v2544_v19 = vadd.f32 %v2424_v7, %v377_v16  ;;  %v4793_v39 = vpop.f32.mrb[69].mxu1 }
0x2086   :  { %v2427_v41 = vpop.f32.mrb[70].mxu1 }
0x2087   :  { %v4274_v42 = vmul.f32 -1.442695, %v2544_v19  ;;  %v4794_v18 = vpop.f32.mrb[71].mxu1 }
0x2089   :  { %5153 = vpow2.f32 %v4274_v42 }
0x2093   :  { %v5154_v24 = vpop.eup %5153 }
0x2094   :  { %v2548_v43 = vadd.f32 1.0, %v5154_v24 }
0x2096   :  { %5155 = vrcp.f32 %v2548_v43 }
0x20a0   :  { %v5156_v48 = vpop.eup %5155 }
0x20a1   :  { %v2551_v61 = vmul.f32 2.0, %v5156_v48  ;;  %v2553_v27 = vmul.f32 %v5156_v48, %v5995_v40 }
0x20a3   :  { %v4275_v26 = vadd.f32 -1.0, %v2551_v61 }
0x20a5   :  { %2555 = vrot.lane.b32.xlu1 %v4275_v26, %s5286_s3 }
0x20de   :  { %v2350_v49 = vpop.f32.mrb[68].mxu0 }
0x20df   :  { %v4785_v52 = vpop.f32.mrb[69].mxu0 }
0x20e0   :  { %v2353_v23 = vpop.f32.mrb[70].mxu0 }
0x20e1   :  { %v4786_v54 = vpop.f32.mrb[71].mxu0 }
0x20e6   :  { %v2464_v22 = vpop.f32.mrb[72].mxu0 }
0x20e7   :  { %v2465_v51 = vadd.f32 %v2464_v22, %v2350_v49  ;;  %v4801_v15 = vpop.f32.mrb[73].mxu0 }
0x20e8   :  { %v2467_v56 = vpop.f32.mrb[74].mxu0 }
0x20e9   :  { %v2470_v47 = vadd.f32 %v5818_v14, %v2465_v51  ;;  %v4802_v58 = vpop.f32.mrb[75].mxu0 }
0x20eb   :  { %v4271_v59 = vmul.f32 -1.442695, %v2470_v47 }
0x20ed   :  { %5157 = vpow2.f32 %v4271_v59 }
0x20f7   :  { %v5158_v53 = vpop.eup %5157 }
0x20f8   :  { %v2474_v60 = vadd.f32 1.0, %v5158_v53 }
0x20fa   :  { %5159 = vrcp.f32 %v2474_v60 }
0x2104   :  { %v5160_v21 = vpop.eup %5159 }
0x2105   :  { %v2477_v62 = vmul.f32 2.0, %v5160_v21  ;;  %v2479_v46 = vmul.f32 %v5160_v21, %v6000_v8 }
0x2107   :  { %v4272_v63 = vadd.f32 -1.0, %v2477_v62 }
0x2109   :  { %2481 = vrot.lane.b32.xlu0 %v4272_v63, %s5286_s3 }
0x2117   :  { %v2556_v1 = vpop.permute.xlu1 %2555 }
0x2118   :  { %v2558_v57 = vmul.f32 %v5156_v48, %v2556_v1 }
0x211a   :  { %2560 = vrot.lane.b32.xlu1 %v2558_v57, %s5287_s14 }
0x217b   :  { %v2482_v28 = vpop.permute.xlu0 %2481 }
0x217c   :  { %v2484_v3 = vmul.f32 %v5160_v21, %v2482_v28 }
0x217e   :  { %2486 = vrot.lane.b32.xlu0 %v2484_v3, %s5287_s14 }
0x218c   :  { %v2561_v50 = vpop.permute.xlu1 %2560 }
0x218d   :  { %v6035_v20 = vadd.f32 %v2561_v50, %v2553_v27 }
0x218f   :  { %5161 = vtanh.f32 %v6035_v20 }
0x2199   :  { %v5162_v6 = vpop.eup %5161 }
0x219a   :  { %2566 = vrot.lane.b32.xlu1 %v5162_v6, %s5286_s3 }
0x21f0   :  { %v2487_v0 = vpop.permute.xlu0 %2486 }
0x21f1   :  { %v6040_v9 = vadd.f32 %v2487_v0, %v2479_v46 }
0x21f3   :  { %5163 = vtanh.f32 %v6040_v9 }
0x21fd   :  { %v5164_v5 = vpop.eup %5163 }
0x21fe   :  { %2492 = vrot.lane.b32.xlu0 %v5164_v5, %s5286_s3 }
0x220c   :  { %v2567_v12 = vpop.permute.xlu1 %2566 }
0x220d   :  { %v2569_v40 = vmul.f32 %v5156_v48, %v2567_v12 }
0x220f   :  { %v2570_v10 = vpack.c.bf16 %v2569_v40, %v2569_v40 }
0x2211   :  { %2572 = vrot.lane.b32.xlu1 %v2570_v10, %s5287_s14 }
0x2270   :  { %v2493_v4 = vpop.permute.xlu0 %2492 }
0x2271   :  { %v2495_v11 = vmul.f32 %v5160_v21, %v2493_v4  ;;  %v6102_v4 = vld [vmem:[%s6426_s6] sm:$0xff]  }
0x2273   :  { %v2496_v13 = vpack.c.bf16 %v2495_v11, %v2495_v11  ;;  %v6128_v11 = vld [vmem:[%s6425_s5 + $0x8] sm:$0xff]  }
0x2275   :  { %2498 = vrot.lane.b32.xlu0 %v2496_v13, %s5287_s14 }
0x2283   :  { %v2573_v17 = vpop.permute.xlu1 %2572 }
0x2284   :  { %4816 = vmatmul.mubr.msk.bf16.vlgmr.msra.gmra.mrb[76].mxu0 %vm268_vm0, %v2573_v17 }
0x2285   :  { %4828 = vmatpush3.bf16.msra.mxu0 %v5840_v55  ;;  %4831 = vmatprep.mubr.msk.bf16.mxu0 %vm5289_vm1, %v5288_v44 }
0x2286   :  { %4829 = vmatprep.subr.bf16.mxu0 %v5288_v44 }
0x2289   :  { %4830 = vmatpush3.bf16.msra.mxu0 %v5849_v2 }
0x228a   :  { %4843 = vmatprep.subr.bf16.mxu0 %v5288_v44 }
0x22e7   :  { %v2499_v8 = vpop.permute.xlu0 %2498 }
0x22e8   :  { %4808 = vmatmul.mubr.msk.bf16.vlgmr.msra.gmra.mrb[72].mxu1 %vm268_vm0, %v2499_v8 }
0x22e9   :  { %4820 = vmatpush3.bf16.msra.mxu1 %v5782_v31  ;;  %4823 = vmatprep.mubr.msk.bf16.mxu1 %vm5289_vm1, %v5288_v44  ;;  %v6070_v31 = vld [vmem:[%s6424_s4] ss:$0 sm:$0xff] }
0x22ea   :  { %4821 = vmatprep.subr.bf16.mxu1 %v5288_v44  ;;  %v385_v13 = vadd.f32 %v6070_v31, %v5657_v34 }
0x22ed   :  { %4822 = vmatpush3.bf16.msra.mxu1 %v5791_v30  ;;  %v382_v30 = vadd.f32 %v6070_v31, %v5653_v29 }
0x22ee   :  { %4835 = vmatprep.subr.bf16.mxu1 %v5288_v44 }
0x22f0   :  { %4824 = vmatmul.mubr.msk.bf16.vlgmr.msra.gmra.mrb[76].mxu1 %vm268_vm0, %v2573_v17 }
0x22f1   :  { %4836 = vmatpush3.bf16.msra.mxu1 %v5799_v32  ;;  %4839 = vmatprep.mubr.msk.bf16.mxu1 %vm5289_vm1, %v5288_v44 }
0x22f2   :  { %4837 = vmatprep.subr.bf16.mxu1 %v5288_v44 }
0x22f5   :  { %4838 = vmatpush3.bf16.msra.mxu1 %v5808_v45 }
0x22f6   :  { %4851 = vmatprep.subr.bf16.mxu1 %v5288_v44 }
0x2357   :  { %v2611_v16 = vpop.f32.mrb[76].mxu0 }
0x2358   :  { %v2731_v7 = vadd.f32 %v2611_v16, %v382_v30  ;;  %v4817_v32 = vpop.f32.mrb[77].mxu0 }
0x2359   :  { %v2614_v19 = vpop.f32.mrb[78].mxu0 }
0x235a   :  { %v4281_v39 = vmul.f32 -1.442695, %v2731_v7  ;;  %v4818_v41 = vpop.f32.mrb[79].mxu0 }
0x235c   :  { %5165 = vpow2.f32 %v4281_v39 }
0x2366   :  { %v5166_v42 = vpop.eup %5165 }
0x2367   :  { %v2735_v18 = vadd.f32 1.0, %v5166_v42 }
0x2369   :  { %5167 = vrcp.f32 %v2735_v18 }
0x2373   :  { %v5168_v45 = vpop.eup %5167 }
0x2374   :  { %v2738_v24 = vmul.f32 2.0, %v5168_v45 }
0x2376   :  { %v4282_v43 = vadd.f32 -1.0, %v2738_v24 }
0x2378   :  { %2742 = vrot.lane.b32.xlu1 %v4282_v43, %s5286_s3 }
0x23bb   :  { %v2537_v48 = vpop.f32.mrb[72].mxu1 }
0x23bc   :  { %v4809_v61 = vpop.f32.mrb[73].mxu1 }
0x23bd   :  { %v2540_v26 = vpop.f32.mrb[74].mxu1 }
0x23be   :  { %v4810_v49 = vpop.f32.mrb[75].mxu1 }
0x23c3   :  { %v2651_v29 = vpop.f32.mrb[76].mxu1 }
0x23c4   :  { %v2652_v52 = vadd.f32 %v2651_v29, %v2537_v48  ;;  %v4825_v23 = vpop.f32.mrb[77].mxu1  ;;  %v6138_v29 = vld [vmem:[%s6427_s8] ss:$0 sm:$0xff] }
0x23c5   :  { %v2654_v54 = vpop.f32.mrb[78].mxu1 }
0x23c6   :  { %v2657_v22 = vadd.f32 %v5818_v14, %v2652_v52  ;;  %v4826_v51 = vpop.f32.mrb[79].mxu1  ;;  %v2740_v14 = vmul.f32 %v5168_v45, %v6035_v20 }
0x23c8   :  { %v4278_v15 = vmul.f32 -1.442695, %v2657_v22 }
0x23ca   :  { %5169 = vpow2.f32 %v4278_v15 }
0x23d4   :  { %v5170_v56 = vpop.eup %5169 }
0x23d5   :  { %v2661_v47 = vadd.f32 1.0, %v5170_v56 }
0x23d7   :  { %5171 = vrcp.f32 %v2661_v47 }
0x23e1   :  { %v5172_v58 = vpop.eup %5171 }
0x23e2   :  { %v2664_v59 = vmul.f32 2.0, %v5172_v58  ;;  %v2666_v3 = vmul.f32 %v5172_v58, %v6040_v9 }
0x23e4   :  { %v4279_v53 = vadd.f32 -1.0, %v2664_v59 }
0x23e6   :  { %2668 = vrot.lane.b32.xlu0 %v4279_v53, %s5286_s3 }
0x23ea   :  { %v2743_v60 = vpop.permute.xlu1 %2742 }
0x23eb   :  { %v2745_v21 = vmul.f32 %v5168_v45, %v2743_v60 }
0x23ed   :  { %2747 = vrot.lane.b32.xlu1 %v2745_v21, %s5287_s14 }
0x2458   :  { %v2669_v62 = vpop.permute.xlu0 %2668 }
0x2459   :  { %v2671_v63 = vmul.f32 %v5172_v58, %v2669_v62 }
0x245b   :  { %2673 = vrot.lane.b32.xlu0 %v2671_v63, %s5287_s14 }
0x245f   :  { %v2748_v1 = vpop.permute.xlu1 %2747 }
0x2460   :  { %v6080_v57 = vadd.f32 %v2748_v1, %v2740_v14 }
0x2462   :  { %5173 = vtanh.f32 %v6080_v57 }
0x246c   :  { %v5174_v28 = vpop.eup %5173 }
0x246d   :  { %2753 = vrot.lane.b32.xlu1 %v5174_v28, %s5286_s3 }
0x24cd   :  { %v2674_v27 = vpop.permute.xlu0 %2673 }
0x24ce   :  { %v6085_v50 = vadd.f32 %v2674_v27, %v2666_v3 }
0x24d0   :  { %5175 = vtanh.f32 %v6085_v50 }
0x24da   :  { %v5176_v6 = vpop.eup %5175 }
0x24db   :  { %2679 = vrot.lane.b32.xlu0 %v5176_v6, %s5286_s3 }
0x24df   :  { %v2754_v46 = vpop.permute.xlu1 %2753 }
0x24e0   :  { %v2756_v20 = vmul.f32 %v5168_v45, %v2754_v46 }
0x24e2   :  { %v2757_v0 = vpack.c.bf16 %v2756_v20, %v2756_v20 }
0x24e4   :  { %2759 = vrot.lane.b32.xlu1 %v2757_v0, %s5287_s14 }
0x254d   :  { %v2680_v5 = vpop.permute.xlu0 %2679 }
0x254e   :  { %v2682_v12 = vmul.f32 %v5172_v58, %v2680_v5 }
0x2550   :  { %v2683_v40 = vpack.c.bf16 %v2682_v12, %v2682_v12 }
0x2552   :  { %2685 = vrot.lane.b32.xlu0 %v2683_v40, %s5287_s14  ;;  %v6169_v40 = vld [vmem:[%s6428_s7 + $0x8] sm:$0xff]  }
0x2556   :  { %v2760_v10 = vpop.permute.xlu1 %2759 }
0x2557   :  { %4840 = vmatmul.mubr.msk.bf16.vlgmr.msra.gmra.mrb[80].mxu1 %vm268_vm0, %v2760_v10 }
0x2558   :  { %4852 = vmatpush3.bf16.msra.mxu1 %v5840_v55  ;;  %4855 = vmatprep.mubr.msk.bf16.mxu1 %vm5289_vm1, %v5288_v44  ;;  %v6111_v55 = vld [vmem:[%s6426_s6 + $0x8] sm:$0xff]  }
0x2559   :  { %4853 = vmatprep.subr.bf16.mxu1 %v5288_v44 }
0x255c   :  { %4854 = vmatpush3.bf16.msra.mxu1 %v5849_v2  ;;  %v6119_v2 = vld [vmem:[%s6425_s5] sm:$0xff]  }
0x255d   :  { %4867 = vmatprep.subr.bf16.mxu1 %v5288_v44 }
0x25c4   :  { %v2686_v9 = vpop.permute.xlu0 %2685 }
0x25c5   :  { %4832 = vmatmul.mubr.msk.bf16.vlgmr.msra.gmra.mrb[80].mxu0 %vm268_vm0, %v2686_v9  ;;  %v390_v9 = vadd.f32 %v6070_v31, %v5651_v25 }
0x25c6   :  { %4844 = vmatpush3.bf16.msra.mxu0 %v6102_v4  ;;  %4847 = vmatprep.mubr.msk.bf16.mxu0 %vm5289_vm1, %v5288_v44 }
0x25c7   :  { %4845 = vmatprep.subr.bf16.mxu0 %v5288_v44 }
0x25ca   :  { %4846 = vmatpush3.bf16.msra.mxu0 %v6111_v55 }
0x25cb   :  { %4859 = vmatprep.subr.bf16.mxu0 %v5288_v44 }
0x25cd   :  { %4848 = vmatmul.mubr.msk.bf16.vlgmr.msra.gmra.mrb[84].mxu0 %vm268_vm0, %v2760_v10 }
0x25ce   :  { %4860 = vmatpush3.bf16.msra.mxu0 %v6119_v2  ;;  %4863 = vmatprep.mubr.msk.bf16.mxu0 %vm5289_vm1, %v5288_v44 }
0x25cf   :  { %4861 = vmatprep.subr.bf16.mxu0 %v5288_v44 }
0x25d2   :  { %4862 = vmatpush3.bf16.msra.mxu0 %v6128_v11 }
0x25d3   :  { %4875 = vmatprep.subr.bf16.mxu0 %v5288_v44 }
0x262a   :  { %v2798_v17 = vpop.f32.mrb[80].mxu1 }
0x262b   :  { %v2918_v8 = vadd.f32 %v2798_v17, %v385_v13  ;;  %v4841_v30 = vpop.f32.mrb[81].mxu1 }
0x262c   :  { %v2801_v16 = vpop.f32.mrb[82].mxu1 }
0x262d   :  { %v4288_v7 = vmul.f32 -1.442695, %v2918_v8  ;;  %v4842_v32 = vpop.f32.mrb[83].mxu1 }
0x262f   :  { %5177 = vpow2.f32 %v4288_v7 }
0x2639   :  { %v5178_v19 = vpop.eup %5177 }
0x263a   :  { %v2922_v39 = vadd.f32 1.0, %v5178_v19 }
0x263c   :  { %5179 = vrcp.f32 %v2922_v39 }
0x2646   :  { %v5180_v41 = vpop.eup %5179 }
0x2647   :  { %v2925_v42 = vmul.f32 2.0, %v5180_v41  ;;  %v2927_v53 = vmul.f32 %v5180_v41, %v6080_v57 }
0x2649   :  { %v4289_v18 = vadd.f32 -1.0, %v2925_v42 }
0x264b   :  { %2929 = vrot.lane.b32.xlu1 %v4289_v18, %s5286_s3 }
0x2698   :  { %v2724_v45 = vpop.f32.mrb[80].mxu0 }
0x2699   :  { %v4833_v24 = vpop.f32.mrb[81].mxu0 }
0x269a   :  { %v2727_v43 = vpop.f32.mrb[82].mxu0 }
0x269b   :  { %v4834_v48 = vpop.f32.mrb[83].mxu0 }
0x26a0   :  { %v2838_v34 = vpop.f32.mrb[84].mxu0 }
0x26a1   :  { %v2839_v61 = vadd.f32 %v2838_v34, %v2724_v45  ;;  %v4849_v26 = vpop.f32.mrb[85].mxu0 }
0x26a2   :  { %v2841_v49 = vpop.f32.mrb[86].mxu0 }
0x26a3   :  { %v2844_v52 = vadd.f32 %v6138_v29, %v2839_v61  ;;  %v4850_v23 = vpop.f32.mrb[87].mxu0 }
0x26a5   :  { %v4285_v54 = vmul.f32 -1.442695, %v2844_v52 }
0x26a7   :  { %5181 = vpow2.f32 %v4285_v54 }
0x26b1   :  { %v5182_v22 = vpop.eup %5181 }
0x26b2   :  { %v2848_v51 = vadd.f32 1.0, %v5182_v22 }
0x26b4   :  { %5183 = vrcp.f32 %v2848_v51 }
0x26bd   :  { %v2930_v15 = vpop.permute.xlu1 %2929 }
0x26be   :  { %v5184_v56 = vpop.eup %5183  ;;  %v2932_v47 = vmul.f32 %v5180_v41, %v2930_v15 }
0x26bf   :  { %v2851_v58 = vmul.f32 2.0, %v5184_v56  ;;  %v2853_v1 = vmul.f32 %v5184_v56, %v6085_v50  ;;  %v6159_v50 = vld [vmem:[%s6428_s7] sm:$0xff]  }
0x26c0   :  { %2934 = vrot.lane.b32.xlu1 %v2932_v47, %s5287_s14 }
0x26c1   :  { %v4286_v59 = vadd.f32 -1.0, %v2851_v58 }
0x26c3   :  { %2855 = vrot.lane.b32.xlu0 %v4286_v59, %s5286_s3 }
0x2732   :  { %v2935_v60 = vpop.permute.xlu1 %2934 }
0x2733   :  { %v6144_v21 = vadd.f32 %v2935_v60, %v2927_v53 }
0x2735   :  { %5185 = vtanh.f32 %v6144_v21  ;;  %v2856_v62 = vpop.permute.xlu0 %2855 }
0x2736   :  { %v2858_v63 = vmul.f32 %v5184_v56, %v2856_v62 }
0x2738   :  { %2860 = vrot.lane.b32.xlu0 %v2858_v63, %s5287_s14 }
0x273f   :  { %v5186_v14 = vpop.eup %5185 }
0x2740   :  { %2940 = vrot.lane.b32.xlu1 %v5186_v14, %s5286_s3 }
0x27aa   :  { %v2861_v28 = vpop.permute.xlu0 %2860 }
0x27ab   :  { %v6150_v3 = vadd.f32 %v2861_v28, %v2853_v1 }
0x27ad   :  { %5187 = vtanh.f32 %v6150_v3 }
0x27b2   :  { %v2941_v57 = vpop.permute.xlu1 %2940 }
0x27b3   :  { %v2943_v27 = vmul.f32 %v5180_v41, %v2941_v57 }
0x27b5   :  { %v2944_v6 = vpack.c.bf16 %v2943_v27, %v2943_v27 }
0x27b7   :  { %v5188_v46 = vpop.eup %5187  ;;  %2946 = vrot.lane.b32.xlu1 %v2944_v6, %s5287_s14 }
0x27b8   :  { %2866 = vrot.lane.b32.xlu0 %v5188_v46, %s5286_s3 }
0x2829   :  { %v2947_v20 = vpop.permute.xlu1 %2946 }
0x282a   :  { %v2867_v0 = vpop.permute.xlu0 %2866  ;;  %4864 = vmatmul.mubr.msk.bf16.vlgmr.msra.gmra.mrb[88].mxu0 %vm268_vm0, %v2947_v20 }
0x282b   :  { %v2869_v5 = vmul.f32 %v5184_v56, %v2867_v0  ;;  %4876 = vmatpush3.bf16.msra.mxu0 %v6159_v50  ;;  %4879 = vmatprep.mubr.msk.bf16.mxu0 %vm5289_vm1, %v5288_v44 }
0x282c   :  { %4877 = vmatprep.subr.bf16.mxu0 %v5288_v44 }
0x282d   :  { %v2870_v12 = vpack.c.bf16 %v2869_v5, %v2869_v5 }
0x282f   :  { %2872 = vrot.lane.b32.xlu0 %v2870_v12, %s5287_s14  ;;  %4878 = vmatpush3.bf16.msra.mxu0 %v6169_v40  ;;  %v393_v12 = vadd.f32 %v6070_v31, %v5655_v33 }
0x2830   :  { %4891 = vmatprep.subr.bf16.mxu0 %v5288_v44 }
0x28a1   :  { %v2873_v10 = vpop.permute.xlu0 %2872 }
0x28a2   :  { %4856 = vmatmul.mubr.msk.bf16.vlgmr.msra.gmra.mrb[84].mxu1 %vm268_vm0, %v2873_v10 }
0x28a3   :  { %4868 = vmatpush3.bf16.msra.mxu1 %v6102_v4  ;;  %4871 = vmatprep.mubr.msk.bf16.mxu1 %vm5289_vm1, %v5288_v44 }
0x28a4   :  { %4869 = vmatprep.subr.bf16.mxu1 %v5288_v44 }
0x28a7   :  { %4870 = vmatpush3.bf16.msra.mxu1 %v6111_v55 }
0x28a8   :  { %4883 = vmatprep.subr.bf16.mxu1 %v5288_v44 }
0x28aa   :  { %4872 = vmatmul.mubr.msk.bf16.vlgmr.msra.gmra.mrb[88].mxu1 %vm268_vm0, %v2947_v20 }
0x28ab   :  { %4884 = vmatpush3.bf16.msra.mxu1 %v6119_v2  ;;  %4887 = vmatprep.mubr.msk.bf16.mxu1 %vm5289_vm1, %v5288_v44 }
0x28ac   :  { %4885 = vmatprep.subr.bf16.mxu1 %v5288_v44 }
0x28af   :  { %4886 = vmatpush3.bf16.msra.mxu1 %v6128_v11 }
0x28b0   :  { %4899 = vmatprep.subr.bf16.mxu1 %v5288_v44 }
0x28fd   :  { %v2985_v13 = vpop.f32.mrb[88].mxu0 }
0x28fe   :  { %v3105_v17 = vadd.f32 %v2985_v13, %v390_v9  ;;  %v4865_v8 = vpop.f32.mrb[89].mxu0 }
0x28ff   :  { %v2988_v30 = vpop.f32.mrb[90].mxu0 }
0x2900   :  { %v4295_v16 = vmul.f32 -1.442695, %v3105_v17  ;;  %v4866_v7 = vpop.f32.mrb[91].mxu0 }
0x2902   :  { %5189 = vpow2.f32 %v4295_v16 }
0x290c   :  { %v5190_v32 = vpop.eup %5189 }
0x290d   :  { %v3109_v19 = vadd.f32 1.0, %v5190_v32 }
0x290f   :  { %5191 = vrcp.f32 %v3109_v19 }
0x2919   :  { %v5192_v39 = vpop.eup %5191 }
0x291a   :  { %v3112_v41 = vmul.f32 2.0, %v5192_v39  ;;  %v3114_v58 = vmul.f32 %v5192_v39, %v6144_v21 }
0x291c   :  { %v4296_v42 = vadd.f32 -1.0, %v3112_v41 }
0x291e   :  { %3116 = vrot.lane.b32.xlu1 %v4296_v42, %s5286_s3 }
0x2975   :  { %v2911_v18 = vpop.f32.mrb[84].mxu1 }
0x2976   :  { %v4857_v45 = vpop.f32.mrb[85].mxu1 }
0x2977   :  { %v2914_v24 = vpop.f32.mrb[86].mxu1 }
0x2978   :  { %v4858_v43 = vpop.f32.mrb[87].mxu1 }
0x297d   :  { %v3025_v25 = vpop.f32.mrb[88].mxu1 }
0x297e   :  { %v3026_v48 = vadd.f32 %v3025_v25, %v2911_v18  ;;  %v4873_v34 = vpop.f32.mrb[89].mxu1 }
0x297f   :  { %v3028_v61 = vpop.f32.mrb[90].mxu1 }
0x2980   :  { %v3031_v26 = vadd.f32 %v6138_v29, %v3026_v48  ;;  %v4874_v49 = vpop.f32.mrb[91].mxu1 }
0x2982   :  { %v4292_v52 = vmul.f32 -1.442695, %v3031_v26 }
0x2984   :  { %5193 = vpow2.f32 %v4292_v52 }
0x298e   :  { %v5194_v23 = vpop.eup %5193 }
0x298f   :  { %v3035_v54 = vadd.f32 1.0, %v5194_v23 }
0x2990   :  { %v3117_v22 = vpop.permute.xlu1 %3116 }
0x2991   :  { %5195 = vrcp.f32 %v3035_v54  ;;  %v3119_v51 = vmul.f32 %v5192_v39, %v3117_v22 }
0x2993   :  { %3121 = vrot.lane.b32.xlu1 %v3119_v51, %s5287_s14 }
0x299b   :  { %v5196_v15 = vpop.eup %5195 }
0x299c   :  { %v3038_v56 = vmul.f32 2.0, %v5196_v15  ;;  %v3040_v28 = vmul.f32 %v5196_v15, %v6150_v3 }
0x299e   :  { %v4293_v47 = vadd.f32 -1.0, %v3038_v56 }
0x29a0   :  { %3042 = vrot.lane.b32.xlu0 %v4293_v47, %s5286_s3 }
0x2a05   :  { %v3122_v59 = vpop.permute.xlu1 %3121 }
0x2a06   :  { %v6194_v53 = vadd.f32 %v3122_v59, %v3114_v58 }
0x2a08   :  { %5197 = vtanh.f32 %v6194_v53 }
0x2a12   :  { %v5198_v60 = vpop.eup %5197  ;;  %v3043_v62 = vpop.permute.xlu0 %3042 }
0x2a13   :  { %v3045_v63 = vmul.f32 %v5196_v15, %v3043_v62  ;;  %3127 = vrot.lane.b32.xlu1 %v5198_v60, %s5286_s3 }
0x2a15   :  { %3047 = vrot.lane.b32.xlu0 %v3045_v63, %s5287_s14 }
0x2a85   :  { %v3128_v14 = vpop.permute.xlu1 %3127 }
0x2a86   :  { %v3130_v1 = vmul.f32 %v5192_v39, %v3128_v14 }
0x2a87   :  { %v3048_v57 = vpop.permute.xlu0 %3047 }
0x2a88   :  { %v3131_v27 = vpack.c.bf16 %v3130_v1, %v3130_v1  ;;  %v6200_v6 = vadd.f32 %v3048_v57, %v3040_v28 }
0x2a8a   :  { %5199 = vtanh.f32 %v6200_v6  ;;  %3133 = vrot.lane.b32.xlu1 %v3131_v27, %s5287_s14 }
0x2a94   :  { %v5200_v21 = vpop.eup %5199 }
0x2a95   :  { %3053 = vrot.lane.b32.xlu0 %v5200_v21, %s5286_s3 }
0x2afc   :  { %v3134_v46 = vpop.permute.xlu1 %3133 }
0x2afd   :  { %4888 = vmatmul.mubr.msk.bf16.vlgmr.msra.gmra.mrb[92].mxu1 %vm268_vm0, %v3134_v46 }
0x2afe   :  { %4900 = vmatpush3.bf16.msra.mxu1 %v6159_v50  ;;  %4903 = vmatprep.mubr.msk.bf16.mxu1 %vm5289_vm1, %v5288_v44 }
0x2aff   :  { %4901 = vmatprep.subr.bf16.mxu1 %v5288_v44 }
0x2b02   :  { %4902 = vmatpush3.bf16.msra.mxu1 %v6169_v40 }
0x2b03   :  { %4915 = vmatprep.subr.bf16.mxu1 %v5288_v44 }
0x2b07   :  { %v3054_v3 = vpop.permute.xlu0 %3053 }
0x2b08   :  { %v3056_v20 = vmul.f32 %v5196_v15, %v3054_v3 }
0x2b0a   :  { %v3057_v0 = vpack.c.bf16 %v3056_v20, %v3056_v20  ;;  %v398_v20 = vadd.f32 %v6070_v31, %v5661_v36 }
0x2b0c   :  { %3059 = vrot.lane.b32.xlu0 %v3057_v0, %s5287_s14 }
0x2b7e   :  { %v3060_v5 = vpop.permute.xlu0 %3059 }
0x2b7f   :  { %4880 = vmatmul.mubr.msk.bf16.vlgmr.msra.gmra.mrb[92].mxu0 %vm268_vm0, %v3060_v5 }
0x2b80   :  { %4892 = vmatpush3.bf16.msra.mxu0 %v6102_v4  ;;  %4895 = vmatprep.mubr.msk.bf16.mxu0 %vm5289_vm1, %v5288_v44 }
0x2b81   :  { %4893 = vmatprep.subr.bf16.mxu0 %v5288_v44 }
0x2b84   :  { %4894 = vmatpush3.bf16.msra.mxu0 %v6111_v55 }
0x2b85   :  { %4907 = vmatprep.subr.bf16.mxu0 %v5288_v44 }
0x2b87   :  { %4896 = vmatmul.mubr.msk.bf16.vlgmr.msra.gmra.mrb[96].mxu0 %vm268_vm0, %v3134_v46 }
0x2b88   :  { %4908 = vmatpush3.bf16.msra.mxu0 %v6119_v2  ;;  %4911 = vmatprep.mubr.msk.bf16.mxu0 %vm5289_vm1, %v5288_v44 }
0x2b89   :  { %4909 = vmatprep.subr.bf16.mxu0 %v5288_v44 }
0x2b8c   :  { %4910 = vmatpush3.bf16.msra.mxu0 %v6128_v11 }
0x2b8d   :  { %4923 = vmatprep.subr.bf16.mxu0 %v5288_v44 }
0x2bd0   :  { %v3172_v10 = vpop.f32.mrb[92].mxu1 }
0x2bd1   :  { %v3292_v9 = vadd.f32 %v3172_v10, %v393_v12  ;;  %v4889_v13 = vpop.f32.mrb[93].mxu1 }
0x2bd2   :  { %v3175_v17 = vpop.f32.mrb[94].mxu1 }
0x2bd3   :  { %v4302_v8 = vmul.f32 -1.442695, %v3292_v9  ;;  %v4890_v30 = vpop.f32.mrb[95].mxu1 }
0x2bd5   :  { %5201 = vpow2.f32 %v4302_v8 }
0x2bdf   :  { %v5202_v16 = vpop.eup %5201 }
0x2be0   :  { %v3296_v7 = vadd.f32 1.0, %v5202_v16 }
0x2be2   :  { %5203 = vrcp.f32 %v3296_v7 }
0x2bec   :  { %v5204_v32 = vpop.eup %5203 }
0x2bed   :  { %v3299_v19 = vmul.f32 2.0, %v5204_v32  ;;  %v3301_v15 = vmul.f32 %v5204_v32, %v6194_v53 }
0x2bef   :  { %v4303_v39 = vadd.f32 -1.0, %v3299_v19 }
0x2bf1   :  { %3303 = vrot.lane.b32.xlu1 %v4303_v39, %s5286_s3 }
0x2c52   :  { %v3098_v41 = vpop.f32.mrb[92].mxu0 }
0x2c53   :  { %v4881_v42 = vpop.f32.mrb[93].mxu0 }
0x2c54   :  { %v3101_v18 = vpop.f32.mrb[94].mxu0 }
0x2c55   :  { %v4882_v45 = vpop.f32.mrb[95].mxu0 }
0x2c5a   :  { %v3212_v33 = vpop.f32.mrb[96].mxu0 }
0x2c5b   :  { %v3213_v24 = vadd.f32 %v3212_v33, %v3098_v41  ;;  %v4897_v43 = vpop.f32.mrb[97].mxu0 }
0x2c5c   :  { %v3215_v25 = vpop.f32.mrb[98].mxu0 }
0x2c5d   :  { %v3218_v48 = vadd.f32 %v6138_v29, %v3213_v24  ;;  %v4898_v34 = vpop.f32.mrb[99].mxu0 }
0x2c5f   :  { %v4299_v61 = vmul.f32 -1.442695, %v3218_v48 }
0x2c61   :  { %5205 = vpow2.f32 %v4299_v61 }
0x2c63   :  { %v3304_v26 = vpop.permute.xlu1 %3303 }
0x2c64   :  { %v3306_v49 = vmul.f32 %v5204_v32, %v3304_v26 }
0x2c66   :  { %3308 = vrot.lane.b32.xlu1 %v3306_v49, %s5287_s14 }
0x2c6b   :  { %v5206_v52 = vpop.eup %5205 }
0x2c6c   :  { %v3222_v23 = vadd.f32 1.0, %v5206_v52 }
0x2c6e   :  { %5207 = vrcp.f32 %v3222_v23 }
0x2c78   :  { %v5208_v54 = vpop.eup %5207 }
0x2c79   :  { %v3225_v22 = vmul.f32 2.0, %v5208_v54  ;;  %v3227_v1 = vmul.f32 %v5208_v54, %v6200_v6 }
0x2c7b   :  { %v4300_v51 = vadd.f32 -1.0, %v3225_v22 }
0x2c7d   :  { %3229 = vrot.lane.b32.xlu0 %v4300_v51, %s5286_s3 }
0x2cd8   :  { %v3309_v56 = vpop.permute.xlu1 %3308 }
0x2cd9   :  { %v6234_v47 = vadd.f32 %v3309_v56, %v3301_v15 }
0x2cdb   :  { %5209 = vtanh.f32 %v6234_v47 }
0x2ce5   :  { %v5210_v58 = vpop.eup %5209 }
0x2ce6   :  { %3314 = vrot.lane.b32.xlu1 %v5210_v58, %s5286_s3 }
0x2cef   :  { %v3230_v59 = vpop.permute.xlu0 %3229 }
0x2cf0   :  { %v3232_v60 = vmul.f32 %v5208_v54, %v3230_v59 }
0x2cf2   :  { %3234 = vrot.lane.b32.xlu0 %v3232_v60, %s5287_s14 }
0x2d58   :  { %v3315_v62 = vpop.permute.xlu1 %3314 }
0x2d59   :  { %v3317_v63 = vmul.f32 %v5204_v32, %v3315_v62 }
0x2d5b   :  { %v3318_v14 = vpack.c.bf16 %v3317_v63, %v3317_v63 }
0x2d5d   :  { %3320 = vrot.lane.b32.xlu1 %v3318_v14, %s5287_s14 }
0x2d64   :  { %v3235_v53 = vpop.permute.xlu0 %3234 }
0x2d65   :  { %v6241_v28 = vadd.f32 %v3235_v53, %v3227_v1 }
0x2d67   :  { %5211 = vtanh.f32 %v6241_v28 }
0x2d71   :  { %v5212_v57 = vpop.eup %5211 }
0x2d72   :  { %3240 = vrot.lane.b32.xlu0 %v5212_v57, %s5286_s3 }
0x2dcf   :  { %v3321_v27 = vpop.permute.xlu1 %3320 }
0x2dd0   :  { %4912 = vmatmul.mubr.msk.bf16.vlgmr.msra.gmra.mrb[100].mxu0 %vm268_vm0, %v3321_v27 }
0x2dd1   :  { %4924 = vmatpush3.bf16.msra.mxu0 %v6159_v50  ;;  %4927 = vmatprep.mubr.msk.bf16.mxu0 %vm5289_vm1, %v5288_v44 }
0x2dd2   :  { %4925 = vmatprep.subr.bf16.mxu0 %v5288_v44 }
0x2dd5   :  { %4926 = vmatpush3.bf16.msra.mxu0 %v6169_v40 }
0x2dd6   :  { %4939 = vmatprep.subr.bf16.mxu0 %v5288_v44 }
0x2de4   :  { %v3241_v6 = vpop.permute.xlu0 %3240 }
0x2de5   :  { %v3243_v21 = vmul.f32 %v5208_v54, %v3241_v6  ;;  %v401_v6 = vadd.f32 %v6070_v31, %v5665_v38 }
0x2de7   :  { %v3244_v46 = vpack.c.bf16 %v3243_v21, %v3243_v21 }
0x2de9   :  { %3246 = vrot.lane.b32.xlu0 %v3244_v46, %s5287_s14 }
0x2e5b   :  { %v3247_v3 = vpop.permute.xlu0 %3246 }
0x2e5c   :  { %4904 = vmatmul.mubr.msk.bf16.vlgmr.msra.gmra.mrb[96].mxu1 %vm268_vm0, %v3247_v3 }
0x2e5d   :  { %4916 = vmatpush3.bf16.msra.mxu1 %v6102_v4  ;;  %4919 = vmatprep.mubr.msk.bf16.mxu1 %vm5289_vm1, %v5288_v44 }
0x2e5e   :  { %4917 = vmatprep.subr.bf16.mxu1 %v5288_v44 }
0x2e61   :  { %4918 = vmatpush3.bf16.msra.mxu1 %v6111_v55 }
0x2e62   :  { %4931 = vmatprep.subr.bf16.mxu1 %v5288_v44 }
0x2e64   :  { %4920 = vmatmul.mubr.msk.bf16.vlgmr.msra.gmra.mrb[100].mxu1 %vm268_vm0, %v3321_v27 }
0x2e65   :  { %4932 = vmatpush3.bf16.msra.mxu1 %v6119_v2  ;;  %4935 = vmatprep.mubr.msk.bf16.mxu1 %vm5289_vm1, %v5288_v44 }
0x2e66   :  { %4933 = vmatprep.subr.bf16.mxu1 %v5288_v44 }
0x2e69   :  { %4934 = vmatpush3.bf16.msra.mxu1 %v6128_v11 }
0x2e6a   :  { %4947 = vmatprep.subr.bf16.mxu1 %v5288_v44 }
0x2ea3   :  { %v3359_v0 = vpop.f32.mrb[100].mxu0 }
0x2ea4   :  { %v3479_v5 = vadd.f32 %v3359_v0, %v398_v20  ;;  %v4913_v12 = vpop.f32.mrb[101].mxu0 }
0x2ea5   :  { %v3362_v10 = vpop.f32.mrb[102].mxu0 }
0x2ea6   :  { %v4309_v9 = vmul.f32 -1.442695, %v3479_v5  ;;  %v4914_v13 = vpop.f32.mrb[103].mxu0 }
0x2ea8   :  { %5213 = vpow2.f32 %v4309_v9 }
0x2eb2   :  { %v5214_v17 = vpop.eup %5213 }
0x2eb3   :  { %v3483_v8 = vadd.f32 1.0, %v5214_v17 }
0x2eb5   :  { %5215 = vrcp.f32 %v3483_v8 }
0x2ebf   :  { %v5216_v30 = vpop.eup %5215 }
0x2ec0   :  { %v3486_v16 = vmul.f32 2.0, %v5216_v30  ;;  %v3488_v23 = vmul.f32 %v5216_v30, %v6234_v47 }
0x2ec2   :  { %v4310_v7 = vadd.f32 -1.0, %v3486_v16 }
0x2ec4   :  { %3490 = vrot.lane.b32.xlu1 %v4310_v7, %s5286_s3 }
0x2f2f   :  { %v3285_v32 = vpop.f32.mrb[96].mxu1 }
0x2f30   :  { %v4905_v19 = vpop.f32.mrb[97].mxu1 }
0x2f31   :  { %v3288_v39 = vpop.f32.mrb[98].mxu1 }
0x2f32   :  { %v4906_v41 = vpop.f32.mrb[99].mxu1 }
0x2f36   :  { %v3491_v36 = vpop.permute.xlu1 %3490 }
0x2f37   :  { %v3493_v42 = vmul.f32 %v5216_v30, %v3491_v36  ;;  %v3399_v18 = vpop.f32.mrb[100].mxu1 }
0x2f38   :  { %v3400_v45 = vadd.f32 %v3399_v18, %v3285_v32  ;;  %v4921_v33 = vpop.f32.mrb[101].mxu1 }
0x2f39   :  { %3495 = vrot.lane.b32.xlu1 %v3493_v42, %s5287_s14  ;;  %v3402_v24 = vpop.f32.mrb[102].mxu1 }
0x2f3a   :  { %v3405_v43 = vadd.f32 %v6138_v29, %v3400_v45  ;;  %v4922_v25 = vpop.f32.mrb[103].mxu1 }
0x2f3c   :  { %v4306_v48 = vmul.f32 -1.442695, %v3405_v43 }
0x2f3e   :  { %5217 = vpow2.f32 %v4306_v48 }
0x2f48   :  { %v5218_v34 = vpop.eup %5217 }
0x2f49   :  { %v3409_v61 = vadd.f32 1.0, %v5218_v34 }
0x2f4b   :  { %5219 = vrcp.f32 %v3409_v61 }
0x2f55   :  { %v5220_v26 = vpop.eup %5219 }
0x2f56   :  { %v3412_v49 = vmul.f32 2.0, %v5220_v26  ;;  %v3414_v62 = vmul.f32 %v5220_v26, %v6241_v28 }
0x2f58   :  { %v4307_v52 = vadd.f32 -1.0, %v3412_v49 }
0x2f5a   :  { %3416 = vrot.lane.b32.xlu0 %v4307_v52, %s5286_s3 }
0x2fab   :  { %v3496_v54 = vpop.permute.xlu1 %3495 }
0x2fac   :  { %v6274_v22 = vadd.f32 %v3496_v54, %v3488_v23 }
0x2fae   :  { %5221 = vtanh.f32 %v6274_v22 }
0x2fb8   :  { %v5222_v51 = vpop.eup %5221 }
0x2fb9   :  { %3501 = vrot.lane.b32.xlu1 %v5222_v51, %s5286_s3 }
0x2fcc   :  { %v3417_v15 = vpop.permute.xlu0 %3416 }
0x2fcd   :  { %v3419_v56 = vmul.f32 %v5220_v26, %v3417_v15 }
0x2fcf   :  { %3421 = vrot.lane.b32.xlu0 %v3419_v56, %s5287_s14 }
0x302b   :  { %v3502_v58 = vpop.permute.xlu1 %3501 }
0x302c   :  { %v3504_v59 = vmul.f32 %v5216_v30, %v3502_v58 }
0x302e   :  { %v3505_v60 = vpack.c.bf16 %v3504_v59, %v3504_v59 }
0x3030   :  { %3507 = vrot.lane.b32.xlu1 %v3505_v60, %s5287_s14 }
0x3041   :  { %v3422_v47 = vpop.permute.xlu0 %3421 }
0x3042   :  { %v6281_v63 = vadd.f32 %v3422_v47, %v3414_v62 }
0x3044   :  { %5223 = vtanh.f32 %v6281_v63 }
0x304e   :  { %v5224_v14 = vpop.eup %5223 }
0x304f   :  { %3427 = vrot.lane.b32.xlu0 %v5224_v14, %s5286_s3 }
0x30a2   :  { %v3508_v1 = vpop.permute.xlu1 %3507 }
0x30a3   :  { %4936 = vmatmul.mubr.msk.bf16.vlgmr.msra.gmra.mrb[104].mxu1 %vm268_vm0, %v3508_v1 }
0x30a4   :  { %4948 = vmatpush3.bf16.msra.mxu1 %v6159_v50  ;;  %4951 = vmatprep.mubr.msk.bf16.mxu1 %vm5289_vm1, %v5288_v44 }
0x30a5   :  { %4949 = vmatprep.subr.bf16.mxu1 %v5288_v44 }
0x30a8   :  { %4950 = vmatpush3.bf16.msra.mxu1 %v6169_v40 }
0x30a9   :  { %4963 = vmatprep.subr.bf16.mxu1 %v5288_v44 }
0x30c1   :  { %v3428_v53 = vpop.permute.xlu0 %3427 }
0x30c2   :  { %v3430_v28 = vmul.f32 %v5220_v26, %v3428_v53 }
0x30c4   :  { %v3431_v57 = vpack.c.bf16 %v3430_v28, %v3430_v28 }
0x30c6   :  { %3433 = vrot.lane.b32.xlu0 %v3431_v57, %s5287_s14 }
0x3138   :  { %v3434_v27 = vpop.permute.xlu0 %3433 }
0x3139   :  { %4928 = vmatmul.mubr.msk.bf16.vlgmr.msra.gmra.mrb[104].mxu0 %vm268_vm0, %v3434_v27 }
0x313a   :  { %4940 = vmatpush3.bf16.msra.mxu0 %v6102_v4  ;;  %4943 = vmatprep.mubr.msk.bf16.mxu0 %vm5289_vm1, %v5288_v44 }
0x313b   :  { %4941 = vmatprep.subr.bf16.mxu0 %v5288_v44 }
0x313e   :  { %4942 = vmatpush3.bf16.msra.mxu0 %v6111_v55 }
0x313f   :  { %4955 = vmatprep.subr.bf16.mxu0 %v5288_v44 }
0x3141   :  { %4944 = vmatmul.mubr.msk.bf16.vlgmr.msra.gmra.mrb[108].mxu0 %vm268_vm0, %v3508_v1  ;;  %v406_v1 = vadd.f32 %v6070_v31, %v5659_v35 }
0x3142   :  { %4956 = vmatpush3.bf16.msra.mxu0 %v6119_v2  ;;  %4959 = vmatprep.mubr.msk.bf16.mxu0 %vm5289_vm1, %v5288_v44 }
0x3143   :  { %4957 = vmatprep.subr.bf16.mxu0 %v5288_v44 }
0x3146   :  { %4958 = vmatpush3.bf16.msra.mxu0 %v6128_v11 }
0x3147   :  { %4971 = vmatprep.subr.bf16.mxu0 %v5288_v44 }
0x3176   :  { %v3546_v21 = vpop.f32.mrb[104].mxu1 }
0x3177   :  { %v3666_v46 = vadd.f32 %v3546_v21, %v401_v6  ;;  %v4937_v3 = vpop.f32.mrb[105].mxu1 }
0x3178   :  { %v3549_v20 = vpop.f32.mrb[106].mxu1 }
0x3179   :  { %v4316_v0 = vmul.f32 -1.442695, %v3666_v46  ;;  %v4938_v5 = vpop.f32.mrb[107].mxu1 }
0x317b   :  { %5225 = vpow2.f32 %v4316_v0 }
0x3185   :  { %v5226_v12 = vpop.eup %5225 }
0x3186   :  { %v3670_v10 = vadd.f32 1.0, %v5226_v12 }
0x3188   :  { %5227 = vrcp.f32 %v3670_v10 }
0x3192   :  { %v5228_v9 = vpop.eup %5227 }
0x3193   :  { %v3673_v13 = vmul.f32 2.0, %v5228_v9  ;;  %v3675_v34 = vmul.f32 %v5228_v9, %v6274_v22 }
0x3195   :  { %v4317_v17 = vadd.f32 -1.0, %v3673_v13 }
0x3197   :  { %3677 = vrot.lane.b32.xlu1 %v4317_v17, %s5286_s3 }
0x3209   :  { %v3678_v8 = vpop.permute.xlu1 %3677 }
0x320a   :  { %v3680_v30 = vmul.f32 %v5228_v9, %v3678_v8 }
0x320c   :  { %v3472_v16 = vpop.f32.mrb[104].mxu0  ;;  %3682 = vrot.lane.b32.xlu1 %v3680_v30, %s5287_s14 }
0x320d   :  { %v4929_v38 = vpop.f32.mrb[105].mxu0 }
0x320e   :  { %v3475_v7 = vpop.f32.mrb[106].mxu0 }
0x320f   :  { %v4930_v32 = vpop.f32.mrb[107].mxu0 }
0x3214   :  { %v3586_v19 = vpop.f32.mrb[108].mxu0 }
0x3215   :  { %v3587_v39 = vadd.f32 %v3586_v19, %v3472_v16  ;;  %v4945_v41 = vpop.f32.mrb[109].mxu0 }
0x3216   :  { %v3589_v36 = vpop.f32.mrb[110].mxu0 }
0x3217   :  { %v3592_v42 = vadd.f32 %v6138_v29, %v3587_v39  ;;  %v4946_v18 = vpop.f32.mrb[111].mxu0 }
0x3219   :  { %v4313_v45 = vmul.f32 -1.442695, %v3592_v42 }
0x321b   :  { %5229 = vpow2.f32 %v4313_v45 }
0x3225   :  { %v5230_v33 = vpop.eup %5229 }
0x3226   :  { %v3596_v24 = vadd.f32 1.0, %v5230_v33 }
0x3228   :  { %5231 = vrcp.f32 %v3596_v24 }
0x3232   :  { %v5232_v43 = vpop.eup %5231 }
0x3233   :  { %v3599_v25 = vmul.f32 2.0, %v5232_v43  ;;  %v3601_v56 = vmul.f32 %v5232_v43, %v6281_v63 }
0x3235   :  { %v4314_v48 = vadd.f32 -1.0, %v3599_v25 }
0x3237   :  { %3603 = vrot.lane.b32.xlu0 %v4314_v48, %s5286_s3 }
0x327e   :  { %v3683_v61 = vpop.permute.xlu1 %3682 }
0x327f   :  { %v6314_v26 = vadd.f32 %v3683_v61, %v3675_v34 }
0x3281   :  { %5233 = vtanh.f32 %v6314_v26 }
0x328b   :  { %v5234_v49 = vpop.eup %5233 }
0x328c   :  { %3688 = vrot.lane.b32.xlu1 %v5234_v49, %s5286_s3 }
0x32a9   :  { %v3604_v52 = vpop.permute.xlu0 %3603 }
0x32aa   :  { %v3606_v23 = vmul.f32 %v5232_v43, %v3604_v52 }
0x32ac   :  { %3608 = vrot.lane.b32.xlu0 %v3606_v23, %s5287_s14 }
0x32fe   :  { %v3689_v54 = vpop.permute.xlu1 %3688 }
0x32ff   :  { %v3691_v51 = vmul.f32 %v5228_v9, %v3689_v54 }
0x3301   :  { %v3692_v15 = vpack.c.bf16 %v3691_v51, %v3691_v51 }
0x3303   :  { %3694 = vrot.lane.b32.xlu1 %v3692_v15, %s5287_s14 }
0x331e   :  { %v3609_v22 = vpop.permute.xlu0 %3608 }
0x331f   :  { %v6321_v58 = vadd.f32 %v3609_v22, %v3601_v56 }
0x3321   :  { %5235 = vtanh.f32 %v6321_v58 }
0x332b   :  { %v5236_v59 = vpop.eup %5235 }
0x332c   :  { %3614 = vrot.lane.b32.xlu0 %v5236_v59, %s5286_s3 }
0x3375   :  { %v3695_v60 = vpop.permute.xlu1 %3694 }
0x3376   :  { %4960 = vmatmul.mubr.msk.bf16.vlgmr.msra.gmra.mrb[112].mxu0 %vm268_vm0, %v3695_v60 }
0x3377   :  { %4972 = vmatpush3.bf16.msra.mxu0 %v6159_v50  ;;  %4975 = vmatprep.mubr.msk.bf16.mxu0 %vm5289_vm1, %v5288_v44 }
0x3378   :  { %4973 = vmatprep.subr.bf16.mxu0 %v5288_v44 }
0x337b   :  { %4974 = vmatpush3.bf16.msra.mxu0 %v6169_v40 }
0x337c   :  { %4987 = vmatprep.subr.bf16.mxu0 %v5288_v44 }
0x339e   :  { %v3615_v62 = vpop.permute.xlu0 %3614 }
0x339f   :  { %v3617_v47 = vmul.f32 %v5232_v43, %v3615_v62 }
0x33a1   :  { %v3618_v63 = vpack.c.bf16 %v3617_v47, %v3617_v47 }
0x33a3   :  { %3620 = vrot.lane.b32.xlu0 %v3618_v63, %s5287_s14 }
0x3415   :  { %v3621_v14 = vpop.permute.xlu0 %3620 }
0x3416   :  { %4952 = vmatmul.mubr.msk.bf16.vlgmr.msra.gmra.mrb[108].mxu1 %vm268_vm0, %v3621_v14 }
0x3417   :  { %4964 = vmatpush3.bf16.msra.mxu1 %v6102_v4  ;;  %4967 = vmatprep.mubr.msk.bf16.mxu1 %vm5289_vm1, %v5288_v44 }
0x3418   :  { %4965 = vmatprep.subr.bf16.mxu1 %v5288_v44 }
0x341b   :  { %4966 = vmatpush3.bf16.msra.mxu1 %v6111_v55 }
0x341c   :  { %4979 = vmatprep.subr.bf16.mxu1 %v5288_v44 }
0x341e   :  { %4968 = vmatmul.mubr.msk.bf16.vlgmr.msra.gmra.mrb[112].mxu1 %vm268_vm0, %v3695_v60 }
0x341f   :  { %4980 = vmatpush3.bf16.msra.mxu1 %v6119_v2  ;;  %4983 = vmatprep.mubr.msk.bf16.mxu1 %vm5289_vm1, %v5288_v44 }
0x3420   :  { %4981 = vmatprep.subr.bf16.mxu1 %v5288_v44 }
0x3423   :  { %4982 = vmatpush3.bf16.msra.mxu1 %v6128_v11 }
0x3424   :  { %4995 = vmatprep.subr.bf16.mxu1 %v5288_v44 }
0x3449   :  { %v3733_v53 = vpop.f32.mrb[112].mxu0 }
0x344a   :  { %v3853_v28 = vadd.f32 %v3733_v53, %v406_v1  ;;  %v4961_v57 = vpop.f32.mrb[113].mxu0 }
0x344b   :  { %v3736_v27 = vpop.f32.mrb[114].mxu0 }
0x344c   :  { %v4323_v6 = vmul.f32 -1.442695, %v3853_v28  ;;  %v4962_v21 = vpop.f32.mrb[115].mxu0 }
0x344e   :  { %5237 = vpow2.f32 %v4323_v6 }
0x3458   :  { %v5238_v2 = vpop.eup %5237 }
0x3459   :  { %v3857_v46 = vadd.f32 1.0, %v5238_v2 }
0x345b   :  { %5239 = vrcp.f32 %v3857_v46 }
0x3465   :  { %v5240_v3 = vpop.eup %5239 }
0x3466   :  { %v3860_v20 = vmul.f32 2.0, %v5240_v3  ;;  %v3862_v36 = vmul.f32 %v5240_v3, %v6314_v26 }
0x3468   :  { %v4324_v0 = vadd.f32 -1.0, %v3860_v20 }
0x346a   :  { %3864 = vrot.lane.b32.xlu1 %v4324_v0, %s5286_s3 }
0x34dc   :  { %v3865_v11 = vpop.permute.xlu1 %3864 }
0x34dd   :  { %v3867_v5 = vmul.f32 %v5240_v3, %v3865_v11 }
0x34df   :  { %3869 = vrot.lane.b32.xlu1 %v3867_v5, %s5287_s14 }
0x34e9   :  { %v3659_v35 = vpop.f32.mrb[108].mxu1 }
0x34ea   :  { %v4953_v31 = vpop.f32.mrb[109].mxu1 }
0x34eb   :  { %v3662_v12 = vpop.f32.mrb[110].mxu1 }
0x34ec   :  { %v4954_v10 = vpop.f32.mrb[111].mxu1 }
0x34f1   :  { %v3773_v9 = vpop.f32.mrb[112].mxu1 }
0x34f2   :  { %v3774_v13 = vadd.f32 %v3773_v9, %v3659_v35  ;;  %v4969_v17 = vpop.f32.mrb[113].mxu1 }
0x34f3   :  { %v3776_v8 = vpop.f32.mrb[114].mxu1 }
0x34f4   :  { %v3779_v30 = vadd.f32 %v6138_v29, %v3774_v13  ;;  %v4970_v16 = vpop.f32.mrb[115].mxu1 }
0x34f6   :  { %v4320_v38 = vmul.f32 -1.442695, %v3779_v30 }
0x34f8   :  { %5241 = vpow2.f32 %v4320_v38 }
0x3502   :  { %v5242_v7 = vpop.eup %5241 }
0x3503   :  { %v3783_v32 = vadd.f32 1.0, %v5242_v7 }
0x3505   :  { %5243 = vrcp.f32 %v3783_v32 }
0x350f   :  { %v5244_v19 = vpop.eup %5243 }
0x3510   :  { %v3786_v39 = vmul.f32 2.0, %v5244_v19  ;;  %v3788_v34 = vmul.f32 %v5244_v19, %v6321_v58 }
0x3512   :  { %v4321_v41 = vadd.f32 -1.0, %v3786_v39 }
0x3514   :  { %3790 = vrot.lane.b32.xlu0 %v4321_v41, %s5286_s3 }
0x3551   :  { %v3870_v42 = vpop.permute.xlu1 %3869 }
0x3552   :  { %v6354_v18 = vadd.f32 %v3870_v42, %v3862_v36 }
0x3554   :  { %5245 = vtanh.f32 %v6354_v18 }
0x355e   :  { %v5246_v45 = vpop.eup %5245 }
0x355f   :  { %3875 = vrot.lane.b32.xlu1 %v5246_v45, %s5286_s3 }
0x3586   :  { %v3791_v33 = vpop.permute.xlu0 %3790 }
0x3587   :  { %v3793_v24 = vmul.f32 %v5244_v19, %v3791_v33 }
0x3589   :  { %3795 = vrot.lane.b32.xlu0 %v3793_v24, %s5287_s14 }
0x35d1   :  { %v3876_v43 = vpop.permute.xlu1 %3875 }
0x35d2   :  { %v3878_v25 = vmul.f32 %v5240_v3, %v3876_v43 }
0x35d4   :  { %v3879_v48 = vpack.c.bf16 %v3878_v25, %v3878_v25 }
0x35d6   :  { %3881 = vrot.lane.b32.xlu1 %v3879_v48, %s5287_s14 }
0x35fb   :  { %v3796_v61 = vpop.permute.xlu0 %3795 }
0x35fc   :  { %v6361_v26 = vadd.f32 %v3796_v61, %v3788_v34 }
0x35fe   :  { %5247 = vtanh.f32 %v6361_v26 }
0x3608   :  { %v5248_v49 = vpop.eup %5247 }
0x3609   :  { %3801 = vrot.lane.b32.xlu0 %v5248_v49, %s5286_s3 }
0x3648   :  { %v3882_v52 = vpop.permute.xlu1 %3881 }
0x3649   :  { %4984 = vmatmul.mubr.msk.bf16.vlgmr.msra.gmra.mrb[116].mxu1 %vm268_vm0, %v3882_v52 }
0x364a   :  { %4996 = vmatpush3.bf16.msra.mxu1 %v6159_v50  ;;  %4999 = vmatprep.mubr.msk.bf16.mxu1 %vm5289_vm1, %v5288_v44  ;;  %v5283_v50 = vld [vmem:[%s6424_s4] ss:$0 sm:$0xff] }
0x364b   :  { %4997 = vmatprep.subr.bf16.mxu1 %v5288_v44 }
0x364e   :  { %4998 = vmatpush3.bf16.msra.mxu1 %v6169_v40  ;;  %v409_v40 = vadd.f32 %v5283_v50, %v5663_v37 }
0x367b   :  { %v3802_v23 = vpop.permute.xlu0 %3801 }
0x367c   :  { %v3804_v54 = vmul.f32 %v5244_v19, %v3802_v23 }
0x367e   :  { %v3805_v51 = vpack.c.bf16 %v3804_v54, %v3804_v54 }
0x3680   :  { %3807 = vrot.lane.b32.xlu0 %v3805_v51, %s5287_s14 }
0x36f2   :  { %v3808_v15 = vpop.permute.xlu0 %3807 }
0x36f3   :  { %4976 = vmatmul.mubr.msk.bf16.vlgmr.msra.gmra.mrb[116].mxu0 %vm268_vm0, %v3808_v15 }
0x36f4   :  { %4988 = vmatpush3.bf16.msra.mxu0 %v6102_v4  ;;  %4991 = vmatprep.mubr.msk.bf16.mxu0 %vm5289_vm1, %v5288_v44 }
0x36f5   :  { %4989 = vmatprep.subr.bf16.mxu0 %v5288_v44 }
0x36f8   :  { %4990 = vmatpush3.bf16.msra.mxu0 %v6111_v55 }
0x36f9   :  { %5003 = vmatprep.subr.bf16.mxu0 %v5288_v44 }
0x36fb   :  { %4992 = vmatmul.mubr.msk.bf16.vlgmr.msra.gmra.mrb[120].mxu0 %vm268_vm0, %v3882_v52 }
0x36fc   :  { %5004 = vmatpush3.bf16.msra.mxu0 %v6102_v4  ;;  %5007 = vmatprep.mubr.msk.bf16.mxu0 %vm5289_vm1, %v5288_v44 }
0x36fd   :  { %5005 = vmatprep.subr.bf16.mxu0 %v5288_v44 }
0x3700   :  { %5006 = vmatpush3.bf16.msra.mxu0 %v6111_v55 }
0x371c   :  { %v3920_v56 = vpop.f32.mrb[116].mxu1 }
0x371d   :  { %v4040_v22 = vadd.f32 %v3920_v56, %v409_v40  ;;  %v4985_v58 = vpop.f32.mrb[117].mxu1 }
0x371e   :  { %v3923_v59 = vpop.f32.mrb[118].mxu1  ;;  %v4335_v58 = vld [vmem:[%s6429_s9] ss:$0 sm:$0xff] }
0x371f   :  { %v4330_v60 = vmul.f32 -1.442695, %v4040_v22  ;;  %v4986_v62 = vpop.f32.mrb[119].mxu1 }
0x3721   :  { %5249 = vpow2.f32 %v4330_v60 }
0x372b   :  { %v5250_v4 = vpop.eup %5249 }
0x372c   :  { %v4044_v47 = vadd.f32 1.0, %v5250_v4 }
0x372e   :  { %5251 = vrcp.f32 %v4044_v47  ;;  %v16_v47 = vstv %s6430_s10 }
0x372f   :  { %17 = vst [vmem:[#allocation3] sm:$0x1] %v16_v47 }
0x3738   :  { %v5252_v63 = vpop.eup %5251 }
0x3739   :  { %v4047_v44 = vmul.f32 2.0, %v5252_v63  ;;  %v4049_v12 = vmul.f32 %v5252_v63, %v6354_v18 }
0x373b   :  { %v4331_v14 = vadd.f32 -1.0, %v4047_v44 }
0x373d   :  { %4051 = vrot.lane.b32.xlu1 %v4331_v14, %s5286_s3 }
0x37af   :  { %v4052_v55 = vpop.permute.xlu1 %4051 }
0x37b0   :  { %v4054_v1 = vmul.f32 %v5252_v63, %v4052_v55 }
0x37b2   :  { %4056 = vrot.lane.b32.xlu1 %v4054_v1, %s5287_s14 }
0x37c6   :  { %v3846_v37 = vpop.f32.mrb[116].mxu0 }
0x37c7   :  { %v4977_v53 = vpop.f32.mrb[117].mxu0 }
0x37c8   :  { %v3849_v28 = vpop.f32.mrb[118].mxu0 }
0x37c9   :  { %v4978_v57 = vpop.f32.mrb[119].mxu0 }
0x37ce   :  { %v3960_v27 = vpop.f32.mrb[120].mxu0 }
0x37cf   :  { %v3961_v6 = vadd.f32 %v3960_v27, %v3846_v37  ;;  %v4993_v21 = vpop.f32.mrb[121].mxu0  ;;  %v4336_v27 = vld [vmem:[#allocation3] ss:$0 sm:$0xff] }
0x37d0   :  { %v3963_v2 = vpop.f32.mrb[122].mxu0 }
0x37d1   :  { %v3966_v46 = vadd.f32 %v6138_v29, %v3961_v6  ;;  %v4994_v3 = vpop.f32.mrb[123].mxu0 }
0x37d3   :  { %v4327_v20 = vmul.f32 -1.442695, %v3966_v46 }
0x37d5   :  { %5253 = vpow2.f32 %v4327_v20 }
0x37df   :  { %v5254_v0 = vpop.eup %5253 }
0x37e0   :  { %v3970_v11 = vadd.f32 1.0, %v5254_v0 }
0x37e2   :  { %5255 = vrcp.f32 %v3970_v11 }
0x37ec   :  { %v5256_v5 = vpop.eup %5255 }
0x37ed   :  { %v3973_v35 = vmul.f32 2.0, %v5256_v5  ;;  %v3975_v38 = vmul.f32 %v5256_v5, %v6361_v26  ;;  %v5284_v26 = vld [vmem:[%s6427_s8] ss:$0 sm:$0xff]  ;;  %s5290_s8 = smov 96  }
0x37ef   :  { %v4328_v31 = vadd.f32 -1.0, %v3973_v35 }
0x37f1   :  { %3977 = vrot.lane.b32.xlu0 %v4328_v31, %s5286_s3 }
0x3824   :  { %v4057_v10 = vpop.permute.xlu1 %4056 }
0x3825   :  { %v4059_v9 = vadd.f32 %v4057_v10, %v4049_v12 }
0x3827   :  { %5257 = vtanh.f32 %v4059_v9 }
0x3831   :  { %v5258_v13 = vpop.eup %5257 }
0x3832   :  { %4062 = vrot.lane.b32.xlu1 %v5258_v13, %s5286_s3 }
0x3863   :  { %v3978_v29 = vpop.permute.xlu0 %3977 }
0x3864   :  { %v3980_v17 = vmul.f32 %v5256_v5, %v3978_v29 }
0x3866   :  { %3982 = vrot.lane.b32.xlu0 %v3980_v17, %s5287_s14 }
0x38a4   :  { %v4063_v8 = vpop.permute.xlu1 %4062 }
0x38a5   :  { %v4065_v30 = vmul.f32 %v5252_v63, %v4063_v8 }
0x38a7   :  { %v4066_v16 = vpack.c.bf16 %v4065_v30, %v4065_v30 }
0x38a9   :  { %4068 = vrot.lane.b32.xlu1 %v4066_v16, %s5287_s14 }
0x38d8   :  { %v3983_v7 = vpop.permute.xlu0 %3982 }
0x38d9   :  { %v3985_v32 = vadd.f32 %v3983_v7, %v3975_v38 }
0x38db   :  { %5259 = vtanh.f32 %v3985_v32 }
0x38e5   :  { %v5260_v19 = vpop.eup %5259 }
0x38e6   :  { %3988 = vrot.lane.b32.xlu0 %v5260_v19, %s5286_s3 }
0x391b   :  { %v4069_v39 = vpop.permute.xlu1 %4068 }
0x391c   :  { %5008 = vmatmul.mubr.msk.bf16.vlgmr.msra.gmra.mrb[124].mxu0 %vm268_vm0, %v4069_v39 }
0x3958   :  { %v3989_v41 = vpop.permute.xlu0 %3988 }
0x3959   :  { %v3991_v36 = vmul.f32 %v5256_v5, %v3989_v41 }
0x395b   :  { %v3992_v42 = vpack.c.bf16 %v3991_v36, %v3991_v36 }
0x395d   :  { %3994 = vrot.lane.b32.xlu0 %v3992_v42, %s5287_s14 }
0x39cf   :  { %v3995_v18 = vpop.permute.xlu0 %3994 }
0x39d0   :  { %5000 = vmatmul.mubr.msk.bf16.vlgmr.msra.gmra.mrb[120].mxu1 %vm268_vm0, %v3995_v18 }
0x39ef   :  { %v4107_v45 = vpop.f32.mrb[124].mxu0 }
0x39f0   :  { %v5009_v33 = vpop.f32.mrb[125].mxu0 }
0x39f1   :  { %v4110_v24 = vpop.f32.mrb[126].mxu0 }
0x39f2   :  { %v5010_v43 = vpop.f32.mrb[127].mxu0 }
0x3aa3   :  { %v4033_v25 = vpop.f32.mrb[120].mxu1 }
0x3aa4   :  { %v4108_v48 = vadd.f32 %v4107_v45, %v4033_v25  ;;  %v5001_v34 = vpop.f32.mrb[121].mxu1 }
0x3aa5   :  { %v4036_v61 = vpop.f32.mrb[122].mxu1 }
0x3aa6   :  { %v4113_v49 = vadd.f32 %v5284_v26, %v4108_v48  ;;  %v5002_v52 = vpop.f32.mrb[123].mxu1 }
0x3aa8   :  { %v4333_v23 = vmul.f32 -1.442695, %v4113_v49 }
0x3aaa   :  { %5261 = vpow2.f32 %v4333_v23 }
0x3ab4   :  { %v5262_v54 = vpop.eup %5261 }
0x3ab5   :  { %v4117_v51 = vadd.f32 1.0, %v5262_v54 }
0x3ab7   :  { %5263 = vrcp.f32 %v4117_v51 }
0x3ac1   :  { %v5264_v15 = vpop.eup %5263 }
0x3ac2   :  { %v4120_v50 = vmul.f32 2.0, %v5264_v15  ;;  %v4122_v59 = vmul.f32 %v5264_v15, %v3985_v32 }
0x3ac4   :  { %v4334_v40 = vadd.f32 -1.0, %v4120_v50 }
0x3ac6   :  { %4124 = vrot.lane.b32.xlu0 %v4334_v40, %s5286_s3 }
0x3b38   :  { %v4125_v56 = vpop.permute.xlu0 %4124 }
0x3b39   :  { %v4127_v22 = vmul.f32 %v5264_v15, %v4125_v56 }
0x3b3b   :  { %4129 = vrot.lane.b32.xlu1 %v4127_v22, %s5287_s14 }
0x3b3f   :  { %4145 = vrot.lane.b32.xlu1 %v4335_v58, %s5290_s8 }
0x3bad   :  { %v4130_v60 = vpop.permute.xlu1 %4129 }
0x3bae   :  { %v4132_v62 = vadd.f32 %v4130_v60, %v4122_v59 }
0x3bb0   :  { %5265 = vtanh.f32 %v4132_v62 }
0x3bb1   :  { %v4146_v44 = vpop.permute.xlu1 %4145 }
0x3bb2   :  { %v4148_v1 = vmul.f32 %v4146_v44, %v4065_v30 }
0x3bba   :  { %v5266_v4 = vpop.eup %5265 }
0x3bbb   :  { %4135 = vrot.lane.b32.xlu0 %v5266_v4, %s5286_s3 }
0x3bbf   :  { %4149 = vrot.lane.b32.xlu0 %v4335_v58, %s5286_s3 }
0x3c2d   :  { %v4136_v63 = vpop.permute.xlu0 %4135 }
0x3c2e   :  { %v4138_v14 = vmul.f32 %v5264_v15, %v4136_v63 }
0x3c31   :  { %v4150_v55 = vpop.permute.xlu0 %4149 }
0x3c32   :  { %v4152_v37 = vmul.f32 %v4150_v55, %v4138_v14 }
0x3c34   :  { %v4153_v53 = vadd.f32 %v4152_v37, %v4148_v1 }
0x3c36   :  { %4155 = vrot.lane.b32.xlu1 %v4153_v53, %s5287_s14 }
0x3ca8   :  { %v4156_v28 = vpop.permute.xlu1 %4155 }
0x3ca9   :  { %v4158_v57 = vsel %vm268_vm0, %v4156_v28, 0.0 }
0x3caa   :  { %4159 = vadd.xlane.f32.xlu0 %v4158_v57 }
0x3d37   :  { %v4160_v6 = vpop.xlane.xlu0 %4159 }
0x3d38   :  { %v4168_v21 = vadd.f32 %v4336_v27, %v4160_v6 }
0x3d3a   :  { %4170 = vst.msk [vmem:[%s6431_s11] sm:$0xff] %vm4169_vm2, %v4168_v21 }

</bundles_post_ra>
